<compile_context>
chip_gen: v7x
topology: tpu7x:2x2x1
jax: 0.10.0
libtpu: 0.0.40
codegen_flags: <defaults>
</compile_context>

<pallas_src>
import jax
import jax.numpy as jnp
from jax.experimental import pallas as pl
from jax.experimental.pallas import tpu as pltpu

IMG_FEAT = 10000       # input feature dim of the image embeddings
K_PAD = 10016          # padded once at init to a multiple of 32 (int8 sublane packing)
HID = 256              # hidden width of the image MLP
DIM = 16               # fused token dim (module default dim=16)
NUM_CLASSES = 3
BP_ALIGN = 16          # bf16 packs 16 rows per sublane group


# ---------------------------------------------------------------------------
# Single fused kernel (grid=(1,)): int8->bf16 dequant, x @ W1 on the MXU,
# then the whole rest of the model runs out of VMEM.
# ---------------------------------------------------------------------------
def fused_forward_kernel(
        x_ref, w1q_ref, w1s_ref, b1_ref, w2_ref, b2_ref,
        xt_ref, add_ref, wqkv_ref, wo_ref,
        g1_ref, be1_ref, g2_ref, be2_ref, wc_ref, bc_ref,
        o_ref):
    # ---- image MLP: [Bp, K_PAD] @ [K_PAD, HID] with int8 weight ----
    # int8 values are exactly representable in bf16, so casting in VMEM and
    # applying the per-output-channel scale after the f32-accumulated dot is
    # lossless w.r.t. the quantized weights.
    w1 = w1q_ref[...].astype(jnp.bfloat16)                                # [K_PAD, HID]
    acc = jnp.dot(x_ref[...], w1, preferred_element_type=jnp.float32)     # [Bp, HID] f32
    acc = acc * w1s_ref[...]                                              # dequant scale

    h = jnp.maximum(acc + b1_ref[...], 0.0)                               # bias + ReLU
    img = jnp.dot(h, w2_ref[...],
                  preferred_element_type=jnp.float32) + b2_ref[...]       # [Bp, DIM]

    # ---- fusion module (stand-in) ----
    def layer_norm(v, g, b):
        mu = jnp.mean(v, axis=-1, keepdims=True)
        var = jnp.mean(jnp.square(v - mu), axis=-1, keepdims=True)
        return (v - mu) * jax.lax.rsqrt(var + 1e-5) * g + b

    # token 0 = image (type 0, pos 0), token 1 = table (type 1, pos 0);
    # position_ids = [0, 0] matches the reference (range(1)+range(1)).
    tok0 = img + add_ref[0:1, :]
    tok1 = xt_ref[...] + add_ref[1:2, :]

    h0 = layer_norm(tok0, g1_ref[...], be1_ref[...])                      # [Bp, DIM]
    h1 = layer_norm(tok1, g1_ref[...], be1_ref[...])

    # single fused QKV projection; only the CLS (image) token's query is needed
    qkv0 = jnp.dot(h0, wqkv_ref[...], preferred_element_type=jnp.float32)
    qkv1 = jnp.dot(h1, wqkv_ref[...], preferred_element_type=jnp.float32)
    q0 = qkv0[:, :DIM]
    k0, v0 = qkv0[:, DIM:2 * DIM], qkv0[:, 2 * DIM:]
    k1, v1 = qkv1[:, DIM:2 * DIM], qkv1[:, 2 * DIM:]

    scale = 1.0 / jnp.sqrt(jnp.float32(DIM))
    s00 = jnp.sum(q0 * k0, axis=-1, keepdims=True) * scale                # [Bp, 1]
    s01 = jnp.sum(q0 * k1, axis=-1, keepdims=True) * scale
    m = jnp.maximum(s00, s01)
    e00 = jnp.exp(s00 - m)
    e01 = jnp.exp(s01 - m)
    denom = e00 + e01
    ctx0 = (e00 / denom) * v0 + (e01 / denom) * v1                        # [Bp, DIM]
    ctx0 = jnp.dot(ctx0, wo_ref[...], preferred_element_type=jnp.float32)

    cls = layer_norm(h0 + ctx0, g2_ref[...], be2_ref[...])                # [Bp, DIM]
    o_ref[...] = (jnp.dot(cls, wc_ref[...],
                          preferred_element_type=jnp.float32)
                  + bc_ref[...]).astype(o_ref.dtype)


# ---------------------------------------------------------------------------
# Parameter init (W1 quantized to int8 + per-channel scale ONCE here)
# ---------------------------------------------------------------------------
def init_params(key):
    ks = jax.random.split(key, 10)
    s = 0.02
    w1 = jax.random.normal(ks[0], (IMG_FEAT, HID), jnp.float32) * s
    # weight-only int8 quantization, per output channel
    w1_scale = jnp.maximum(jnp.max(jnp.abs(w1), axis=0, keepdims=True), 1e-12) / 127.0
    w1_q = jnp.clip(jnp.round(w1 / w1_scale), -127, 127).astype(jnp.int8)
    w1_q = jnp.pad(w1_q, ((0, K_PAD - IMG_FEAT), (0, 0)))       # pad rows with zeros
    wq = jax.random.normal(ks[4], (DIM, DIM), jnp.float32) * s
    wk = jax.random.normal(ks[5], (DIM, DIM), jnp.float32) * s
    wv = jax.random.normal(ks[6], (DIM, DIM), jnp.float32) * s
    return {
        # image MLP branch (quantized first layer)
        'w1_q': w1_q,                                           # [K_PAD, HID] int8
        'w1_scale': w1_scale,                                   # [1, HID]    f32
        'b1': jnp.zeros((1, HID), jnp.float32),
        'w2': jax.random.normal(ks[1], (HID, DIM), jnp.float32) * s,
        'b2': jnp.zeros((1, DIM), jnp.float32),
        # fusion module
        'tok_type_emb': jax.random.normal(ks[2], (2, DIM), jnp.float32) * s,
        'pos_emb': jax.random.normal(ks[3], (8, DIM), jnp.float32) * s,
        'wqkv': jnp.concatenate([wq, wk, wv], axis=1),          # [DIM, 3*DIM]
        'wo': jax.random.normal(ks[7], (DIM, DIM), jnp.float32) * s,
        'g1': jnp.ones((1, DIM), jnp.float32),
        'be1': jnp.zeros((1, DIM), jnp.float32),
        'g2': jnp.ones((1, DIM), jnp.float32),
        'be2': jnp.zeros((1, DIM), jnp.float32),
        'wc': jax.random.normal(ks[8], (DIM, NUM_CLASSES), jnp.float32) * s,
        'bc': jnp.zeros((1, NUM_CLASSES), jnp.float32),
    }


# ---------------------------------------------------------------------------
# Forward: one pallas_call, single grid step, no accumulator scratch
# ---------------------------------------------------------------------------
def multimodal_forward(params, x_image, x_table):
    B = x_image.shape[0]
    Bp = max(BP_ALIGN, ((B + BP_ALIGN - 1) // BP_ALIGN) * BP_ALIGN)

    # pad batch to a full bf16 sublane group; pad K to the (pre-padded) weight rows
    x_p = jnp.pad(x_image.astype(jnp.bfloat16),
                  ((0, Bp - B), (0, K_PAD - IMG_FEAT)))                  # [Bp, K_PAD] bf16
    xt_p = jnp.pad(x_table.astype(jnp.float32), ((0, Bp - B), (0, 0)))   # [Bp, DIM]

    # token_type_ids = [0, 1], position_ids = [0, 0] (matches the reference)
    add_rows = params['tok_type_emb'] + params['pos_emb'][0:1, :]        # [2, DIM]

    out = pl.pallas_call(
        fused_forward_kernel,
        out_shape=jax.ShapeDtypeStruct((Bp, NUM_CLASSES), jnp.float32),
        grid_spec=pltpu.PrefetchScalarGridSpec(
            num_scalar_prefetch=0,
            grid=(1,),
            in_specs=[
                pl.BlockSpec((Bp, K_PAD), lambda k: (0, 0)),             # x  (bf16)
                pl.BlockSpec((K_PAD, HID), lambda k: (0, 0)),            # W1 (int8)
                pl.BlockSpec((1, HID), lambda k: (0, 0)),                # W1 scale
                pl.BlockSpec((1, HID), lambda k: (0, 0)),                # b1
                pl.BlockSpec((HID, DIM), lambda k: (0, 0)),              # W2
                pl.BlockSpec((1, DIM), lambda k: (0, 0)),                # b2
                pl.BlockSpec((Bp, DIM), lambda k: (0, 0)),               # x_table
                pl.BlockSpec((2, DIM), lambda k: (0, 0)),                # emb addend
                pl.BlockSpec((DIM, 3 * DIM), lambda k: (0, 0)),          # Wqkv
                pl.BlockSpec((DIM, DIM), lambda k: (0, 0)),              # Wo
                pl.BlockSpec((1, DIM), lambda k: (0, 0)),                # g1
                pl.BlockSpec((1, DIM), lambda k: (0, 0)),                # be1
                pl.BlockSpec((1, DIM), lambda k: (0, 0)),                # g2
                pl.BlockSpec((1, DIM), lambda k: (0, 0)),                # be2
                pl.BlockSpec((DIM, NUM_CLASSES), lambda k: (0, 0)),      # Wc
                pl.BlockSpec((1, NUM_CLASSES), lambda k: (0, 0)),        # bc
            ],
            out_specs=pl.BlockSpec((Bp, NUM_CLASSES), lambda k: (0, 0)),
        ),
        compiler_params=pltpu.CompilerParams(
            dimension_semantics=("arbitrary",),
            vmem_limit_bytes=32 * 1024 * 1024),
    )(x_p, params['w1_q'], params['w1_scale'], params['b1'],
      params['w2'], params['b2'],
      xt_p, add_rows, params['wqkv'], params['wo'],
      params['g1'], params['be1'], params['g2'], params['be2'],
      params['wc'], params['bc'])

    # drop the batch padding, then .squeeze() to match the PyTorch module
    return jnp.squeeze(out[:B])


if __name__ == "__main__":
    key = jax.random.PRNGKey(0)
    k_param, k_img, k_tab = jax.random.split(key, 3)

    params = init_params(k_param)
    x_image = jax.random.normal(k_img, (2, IMG_FEAT), jnp.float32)   # [B, 10000]
    x_table = jax.random.normal(k_tab, (2, DIM), jnp.float32)        # [B, 16]

    out = jax.jit(multimodal_forward)(params, x_image, x_table)
    out = jax.block_until_ready(out)
    assert out.shape == (2, NUM_CLASSES), out.shape
    assert bool(jnp.all(jnp.isfinite(out)))
    print("KERNEL_OK")
</pallas_src>

<mosaic_0001>
module attributes {stable_mosaic.version = 11 : i64} {
  func.func @fused_forward_kernel(%arg0: i32, %arg1: memref<16x10016xbf16, #tpu.memory_space<vmem>>, %arg2: memref<10016x256xi8, #tpu.memory_space<vmem>>, %arg3: memref<1x256xf32, #tpu.memory_space<vmem>>, %arg4: memref<1x256xf32, #tpu.memory_space<vmem>>, %arg5: memref<256x16xf32, #tpu.memory_space<vmem>>, %arg6: memref<1x16xf32, #tpu.memory_space<vmem>>, %arg7: memref<16x16xf32, #tpu.memory_space<vmem>>, %arg8: memref<2x16xf32, #tpu.memory_space<vmem>>, %arg9: memref<16x48xf32, #tpu.memory_space<vmem>>, %arg10: memref<16x16xf32, #tpu.memory_space<vmem>>, %arg11: memref<1x16xf32, #tpu.memory_space<vmem>>, %arg12: memref<1x16xf32, #tpu.memory_space<vmem>>, %arg13: memref<1x16xf32, #tpu.memory_space<vmem>>, %arg14: memref<1x16xf32, #tpu.memory_space<vmem>>, %arg15: memref<16x3xf32, #tpu.memory_space<vmem>>, %arg16: memref<1x3xf32, #tpu.memory_space<vmem>>, %arg17: memref<16x3xf32, #tpu.memory_space<vmem>>) attributes {dimension_semantics = [#tpu.dimension_semantics<arbitrary>], iteration_bounds = array<i64: 1>, scalar_prefetch = 0 : i64, scratch_operands = 0 : i64, tpu.core_type = #tpu.core_type<tc>, window_params = [{pipeline_mode = #tpu.pipeline_mode<synchronous>, transform_indices = @transform_0, window_bounds = array<i64: 16, 10016>}, {pipeline_mode = #tpu.pipeline_mode<synchronous>, transform_indices = @transform_1, window_bounds = array<i64: 10016, 256>}, {pipeline_mode = #tpu.pipeline_mode<synchronous>, transform_indices = @transform_2, window_bounds = array<i64: 1, 256>}, {pipeline_mode = #tpu.pipeline_mode<synchronous>, transform_indices = @transform_3, window_bounds = array<i64: 1, 256>}, {pipeline_mode = #tpu.pipeline_mode<synchronous>, transform_indices = @transform_4, window_bounds = array<i64: 256, 16>}, {pipeline_mode = #tpu.pipeline_mode<synchronous>, transform_indices = @transform_5, window_bounds = array<i64: 1, 16>}, {pipeline_mode = #tpu.pipeline_mode<synchronous>, transform_indices = @transform_6, window_bounds = array<i64: 16, 16>}, {pipeline_mode = #tpu.pipeline_mode<synchronous>, transform_indices = @transform_7, window_bounds = array<i64: 2, 16>}, {pipeline_mode = #tpu.pipeline_mode<synchronous>, transform_indices = @transform_8, window_bounds = array<i64: 16, 48>}, {pipeline_mode = #tpu.pipeline_mode<synchronous>, transform_indices = @transform_9, window_bounds = array<i64: 16, 16>}, {pipeline_mode = #tpu.pipeline_mode<synchronous>, transform_indices = @transform_10, window_bounds = array<i64: 1, 16>}, {pipeline_mode = #tpu.pipeline_mode<synchronous>, transform_indices = @transform_11, window_bounds = array<i64: 1, 16>}, {pipeline_mode = #tpu.pipeline_mode<synchronous>, transform_indices = @transform_12, window_bounds = array<i64: 1, 16>}, {pipeline_mode = #tpu.pipeline_mode<synchronous>, transform_indices = @transform_13, window_bounds = array<i64: 1, 16>}, {pipeline_mode = #tpu.pipeline_mode<synchronous>, transform_indices = @transform_14, window_bounds = array<i64: 16, 3>}, {pipeline_mode = #tpu.pipeline_mode<synchronous>, transform_indices = @transform_15, window_bounds = array<i64: 1, 3>}, {pipeline_mode = #tpu.pipeline_mode<synchronous>, transform_indices = @transform_16, window_bounds = array<i64: 16, 3>}]} {
    %c0 = arith.constant 0 : index
    %c0_0 = arith.constant 0 : index
    %0 = vector.load %arg2[%c0, %c0_0] : memref<10016x256xi8, #tpu.memory_space<vmem>>, vector<10016x256xi8>
    %1 = arith.sitofp %0 : vector<10016x256xi8> to vector<10016x256xbf16>
    %c0_1 = arith.constant 0 : index
    %c0_2 = arith.constant 0 : index
    %2 = vector.load %arg1[%c0_1, %c0_2] : memref<16x10016xbf16, #tpu.memory_space<vmem>>, vector<16x10016xbf16>
    %cst = arith.constant dense<0.000000e+00> : vector<16x256xf32>
    %3 = tpu.matmul %2, %1, %cst {dimension_numbers = #tpu.dot_dimension_numbers<[1], [0], [0], [1], [0, 0, 1, 1], [], []>} : vector<16x10016xbf16>, vector<10016x256xbf16>, vector<16x256xf32> -> vector<16x256xf32>
    %c0_3 = arith.constant 0 : index
    %c0_4 = arith.constant 0 : index
    %4 = vector.load %arg3[%c0_3, %c0_4] : memref<1x256xf32, #tpu.memory_space<vmem>>, vector<1x256xf32>
    %5 = vector.broadcast %4 : vector<1x256xf32> to vector<16x256xf32>
    %6 = arith.mulf %3, %5 : vector<16x256xf32>
    %c0_5 = arith.constant 0 : index
    %c0_6 = arith.constant 0 : index
    %7 = vector.load %arg4[%c0_5, %c0_6] : memref<1x256xf32, #tpu.memory_space<vmem>>, vector<1x256xf32>
    %8 = vector.broadcast %7 : vector<1x256xf32> to vector<16x256xf32>
    %9 = arith.addf %6, %8 : vector<16x256xf32>
    %cst_7 = arith.constant 0.000000e+00 : f32
    %10 = vector.broadcast %cst_7 : f32 to vector<16x256xf32>
    %11 = arith.maximumf %9, %10 : vector<16x256xf32>
    %c0_8 = arith.constant 0 : index
    %c0_9 = arith.constant 0 : index
    %12 = vector.load %arg5[%c0_8, %c0_9] : memref<256x16xf32, #tpu.memory_space<vmem>>, vector<256x16xf32>
    %cst_10 = arith.constant dense<0.000000e+00> : vector<16x16xf32>
    %13 = tpu.matmul %11, %12, %cst_10 {dimension_numbers = #tpu.dot_dimension_numbers<[1], [0], [0], [1], [0, 0, 1, 1], [], []>} : vector<16x256xf32>, vector<256x16xf32>, vector<16x16xf32> -> vector<16x16xf32>
    %c0_11 = arith.constant 0 : index
    %c0_12 = arith.constant 0 : index
    %14 = vector.load %arg6[%c0_11, %c0_12] : memref<1x16xf32, #tpu.memory_space<vmem>>, vector<1x16xf32>
    %15 = vector.broadcast %14 : vector<1x16xf32> to vector<16x16xf32>
    %16 = arith.addf %13, %15 : vector<16x16xf32>
    %c0_13 = arith.constant 0 : index
    %c0_14 = arith.constant 0 : index
    %17 = vector.load %arg8[%c0_13, %c0_14] : memref<2x16xf32, #tpu.memory_space<vmem>>, vector<1x16xf32>
    %18 = vector.broadcast %17 : vector<1x16xf32> to vector<16x16xf32>
    %19 = arith.addf %16, %18 : vector<16x16xf32>
    %c0_15 = arith.constant 0 : index
    %c0_16 = arith.constant 0 : index
    %20 = vector.load %arg7[%c0_15, %c0_16] : memref<16x16xf32, #tpu.memory_space<vmem>>, vector<16x16xf32>
    %c1 = arith.constant 1 : index
    %c0_17 = arith.constant 0 : index
    %21 = vector.load %arg8[%c1, %c0_17] : memref<2x16xf32, #tpu.memory_space<vmem>>, vector<1x16xf32>
    %22 = vector.broadcast %21 : vector<1x16xf32> to vector<16x16xf32>
    %23 = arith.addf %20, %22 : vector<16x16xf32>
    %c0_18 = arith.constant 0 : index
    %c0_19 = arith.constant 0 : index
    %24 = vector.load %arg11[%c0_18, %c0_19] : memref<1x16xf32, #tpu.memory_space<vmem>>, vector<1x16xf32>
    %c0_20 = arith.constant 0 : index
    %c0_21 = arith.constant 0 : index
    %25 = vector.load %arg12[%c0_20, %c0_21] : memref<1x16xf32, #tpu.memory_space<vmem>>, vector<1x16xf32>
    %cst_22 = arith.constant dense<0.000000e+00> : vector<16xf32>
    %26 = vector.multi_reduction <add>, %19, %cst_22 [1] : vector<16x16xf32> to vector<16xf32>
    %27 = vector.shape_cast %26 : vector<16xf32> to vector<16x1xf32>
    %cst_23 = arith.constant 1.600000e+01 : f32
    %28 = vector.broadcast %cst_23 : f32 to vector<16x1xf32>
    %29 = arith.divf %27, %28 : vector<16x1xf32>
    %30 = vector.broadcast %29 : vector<16x1xf32> to vector<16x16xf32>
    %31 = arith.subf %19, %30 : vector<16x16xf32>
    %32 = arith.mulf %31, %31 : vector<16x16xf32>
    %cst_24 = arith.constant dense<0.000000e+00> : vector<16xf32>
    %33 = vector.multi_reduction <add>, %32, %cst_24 [1] : vector<16x16xf32> to vector<16xf32>
    %34 = vector.shape_cast %33 : vector<16xf32> to vector<16x1xf32>
    %cst_25 = arith.constant 1.600000e+01 : f32
    %35 = vector.broadcast %cst_25 : f32 to vector<16x1xf32>
    %36 = arith.divf %34, %35 : vector<16x1xf32>
    %37 = vector.broadcast %29 : vector<16x1xf32> to vector<16x16xf32>
    %38 = arith.subf %19, %37 : vector<16x16xf32>
    %cst_26 = arith.constant 9.99999974E-6 : f32
    %39 = vector.broadcast %cst_26 : f32 to vector<16x1xf32>
    %40 = arith.addf %36, %39 : vector<16x1xf32>
    %41 = math.rsqrt %40 : vector<16x1xf32>
    %42 = vector.broadcast %41 : vector<16x1xf32> to vector<16x16xf32>
    %43 = arith.mulf %38, %42 : vector<16x16xf32>
    %44 = vector.broadcast %24 : vector<1x16xf32> to vector<16x16xf32>
    %45 = arith.mulf %43, %44 : vector<16x16xf32>
    %46 = vector.broadcast %25 : vector<1x16xf32> to vector<16x16xf32>
    %47 = arith.addf %45, %46 : vector<16x16xf32>
    %c0_27 = arith.constant 0 : index
    %c0_28 = arith.constant 0 : index
    %48 = vector.load %arg11[%c0_27, %c0_28] : memref<1x16xf32, #tpu.memory_space<vmem>>, vector<1x16xf32>
    %c0_29 = arith.constant 0 : index
    %c0_30 = arith.constant 0 : index
    %49 = vector.load %arg12[%c0_29, %c0_30] : memref<1x16xf32, #tpu.memory_space<vmem>>, vector<1x16xf32>
    %cst_31 = arith.constant dense<0.000000e+00> : vector<16xf32>
    %50 = vector.multi_reduction <add>, %23, %cst_31 [1] : vector<16x16xf32> to vector<16xf32>
    %51 = vector.shape_cast %50 : vector<16xf32> to vector<16x1xf32>
    %cst_32 = arith.constant 1.600000e+01 : f32
    %52 = vector.broadcast %cst_32 : f32 to vector<16x1xf32>
    %53 = arith.divf %51, %52 : vector<16x1xf32>
    %54 = vector.broadcast %53 : vector<16x1xf32> to vector<16x16xf32>
    %55 = arith.subf %23, %54 : vector<16x16xf32>
    %56 = arith.mulf %55, %55 : vector<16x16xf32>
    %cst_33 = arith.constant dense<0.000000e+00> : vector<16xf32>
    %57 = vector.multi_reduction <add>, %56, %cst_33 [1] : vector<16x16xf32> to vector<16xf32>
    %58 = vector.shape_cast %57 : vector<16xf32> to vector<16x1xf32>
    %cst_34 = arith.constant 1.600000e+01 : f32
    %59 = vector.broadcast %cst_34 : f32 to vector<16x1xf32>
    %60 = arith.divf %58, %59 : vector<16x1xf32>
    %61 = vector.broadcast %53 : vector<16x1xf32> to vector<16x16xf32>
    %62 = arith.subf %23, %61 : vector<16x16xf32>
    %cst_35 = arith.constant 9.99999974E-6 : f32
    %63 = vector.broadcast %cst_35 : f32 to vector<16x1xf32>
    %64 = arith.addf %60, %63 : vector<16x1xf32>
    %65 = math.rsqrt %64 : vector<16x1xf32>
    %66 = vector.broadcast %65 : vector<16x1xf32> to vector<16x16xf32>
    %67 = arith.mulf %62, %66 : vector<16x16xf32>
    %68 = vector.broadcast %48 : vector<1x16xf32> to vector<16x16xf32>
    %69 = arith.mulf %67, %68 : vector<16x16xf32>
    %70 = vector.broadcast %49 : vector<1x16xf32> to vector<16x16xf32>
    %71 = arith.addf %69, %70 : vector<16x16xf32>
    %c0_36 = arith.constant 0 : index
    %c0_37 = arith.constant 0 : index
    %72 = vector.load %arg9[%c0_36, %c0_37] : memref<16x48xf32, #tpu.memory_space<vmem>>, vector<16x48xf32>
    %cst_38 = arith.constant dense<0.000000e+00> : vector<16x48xf32>
    %73 = tpu.matmul %47, %72, %cst_38 {dimension_numbers = #tpu.dot_dimension_numbers<[1], [0], [0], [1], [0, 0, 1, 1], [], []>} : vector<16x16xf32>, vector<16x48xf32>, vector<16x48xf32> -> vector<16x48xf32>
    %c0_39 = arith.constant 0 : index
    %c0_40 = arith.constant 0 : index
    %74 = vector.load %arg9[%c0_39, %c0_40] : memref<16x48xf32, #tpu.memory_space<vmem>>, vector<16x48xf32>
    %cst_41 = arith.constant dense<0.000000e+00> : vector<16x48xf32>
    %75 = tpu.matmul %71, %74, %cst_41 {dimension_numbers = #tpu.dot_dimension_numbers<[1], [0], [0], [1], [0, 0, 1, 1], [], []>} : vector<16x16xf32>, vector<16x48xf32>, vector<16x48xf32> -> vector<16x48xf32>
    %76 = vector.extract_strided_slice %73 {offsets = [0, 0], sizes = [16, 16], strides = [1, 1]} : vector<16x48xf32> to vector<16x16xf32>
    %77 = vector.extract_strided_slice %73 {offsets = [0, 16], sizes = [16, 16], strides = [1, 1]} : vector<16x48xf32> to vector<16x16xf32>
    %78 = vector.extract_strided_slice %73 {offsets = [0, 32], sizes = [16, 16], strides = [1, 1]} : vector<16x48xf32> to vector<16x16xf32>
    %79 = vector.extract_strided_slice %75 {offsets = [0, 16], sizes = [16, 16], strides = [1, 1]} : vector<16x48xf32> to vector<16x16xf32>
    %80 = vector.extract_strided_slice %75 {offsets = [0, 32], sizes = [16, 16], strides = [1, 1]} : vector<16x48xf32> to vector<16x16xf32>
    %cst_42 = arith.constant 1.600000e+01 : f32
    %81 = math.sqrt %cst_42 : f32
    %cst_43 = arith.constant 1.000000e+00 : f32
    %82 = arith.divf %cst_43, %81 : f32
    %83 = arith.mulf %76, %77 : vector<16x16xf32>
    %cst_44 = arith.constant dense<0.000000e+00> : vector<16xf32>
    %84 = vector.multi_reduction <add>, %83, %cst_44 [1] : vector<16x16xf32> to vector<16xf32>
    %85 = vector.shape_cast %84 : vector<16xf32> to vector<16x1xf32>
    %86 = vector.broadcast %82 : f32 to vector<16x1xf32>
    %87 = arith.mulf %85, %86 : vector<16x1xf32>
    %88 = arith.mulf %76, %79 : vector<16x16xf32>
    %cst_45 = arith.constant dense<0.000000e+00> : vector<16xf32>
    %89 = vector.multi_reduction <add>, %88, %cst_45 [1] : vector<16x16xf32> to vector<16xf32>
    %90 = vector.shape_cast %89 : vector<16xf32> to vector<16x1xf32>
    %91 = vector.broadcast %82 : f32 to vector<16x1xf32>
    %92 = arith.mulf %90, %91 : vector<16x1xf32>
    %93 = arith.maximumf %87, %92 : vector<16x1xf32>
    %94 = arith.subf %87, %93 : vector<16x1xf32>
    %95 = math.exp %94 : vector<16x1xf32>
    %96 = arith.subf %92, %93 : vector<16x1xf32>
    %97 = math.exp %96 : vector<16x1xf32>
    %98 = arith.addf %95, %97 : vector<16x1xf32>
    %99 = arith.divf %95, %98 : vector<16x1xf32>
    %100 = vector.broadcast %99 : vector<16x1xf32> to vector<16x16xf32>
    %101 = arith.mulf %100, %78 : vector<16x16xf32>
    %102 = arith.divf %97, %98 : vector<16x1xf32>
    %103 = vector.broadcast %102 : vector<16x1xf32> to vector<16x16xf32>
    %104 = arith.mulf %103, %80 : vector<16x16xf32>
    %105 = arith.addf %101, %104 : vector<16x16xf32>
    %c0_46 = arith.constant 0 : index
    %c0_47 = arith.constant 0 : index
    %106 = vector.load %arg10[%c0_46, %c0_47] : memref<16x16xf32, #tpu.memory_space<vmem>>, vector<16x16xf32>
    %cst_48 = arith.constant dense<0.000000e+00> : vector<16x16xf32>
    %107 = tpu.matmul %105, %106, %cst_48 {dimension_numbers = #tpu.dot_dimension_numbers<[1], [0], [0], [1], [0, 0, 1, 1], [], []>} : vector<16x16xf32>, vector<16x16xf32>, vector<16x16xf32> -> vector<16x16xf32>
    %108 = arith.addf %47, %107 : vector<16x16xf32>
    %c0_49 = arith.constant 0 : index
    %c0_50 = arith.constant 0 : index
    %109 = vector.load %arg13[%c0_49, %c0_50] : memref<1x16xf32, #tpu.memory_space<vmem>>, vector<1x16xf32>
    %c0_51 = arith.constant 0 : index
    %c0_52 = arith.constant 0 : index
    %110 = vector.load %arg14[%c0_51, %c0_52] : memref<1x16xf32, #tpu.memory_space<vmem>>, vector<1x16xf32>
    %cst_53 = arith.constant dense<0.000000e+00> : vector<16xf32>
    %111 = vector.multi_reduction <add>, %108, %cst_53 [1] : vector<16x16xf32> to vector<16xf32>
    %112 = vector.shape_cast %111 : vector<16xf32> to vector<16x1xf32>
    %cst_54 = arith.constant 1.600000e+01 : f32
    %113 = vector.broadcast %cst_54 : f32 to vector<16x1xf32>
    %114 = arith.divf %112, %113 : vector<16x1xf32>
    %115 = vector.broadcast %114 : vector<16x1xf32> to vector<16x16xf32>
    %116 = arith.subf %108, %115 : vector<16x16xf32>
    %117 = arith.mulf %116, %116 : vector<16x16xf32>
    %cst_55 = arith.constant dense<0.000000e+00> : vector<16xf32>
    %118 = vector.multi_reduction <add>, %117, %cst_55 [1] : vector<16x16xf32> to vector<16xf32>
    %119 = vector.shape_cast %118 : vector<16xf32> to vector<16x1xf32>
    %cst_56 = arith.constant 1.600000e+01 : f32
    %120 = vector.broadcast %cst_56 : f32 to vector<16x1xf32>
    %121 = arith.divf %119, %120 : vector<16x1xf32>
    %122 = vector.broadcast %114 : vector<16x1xf32> to vector<16x16xf32>
    %123 = arith.subf %108, %122 : vector<16x16xf32>
    %cst_57 = arith.constant 9.99999974E-6 : f32
    %124 = vector.broadcast %cst_57 : f32 to vector<16x1xf32>
    %125 = arith.addf %121, %124 : vector<16x1xf32>
    %126 = math.rsqrt %125 : vector<16x1xf32>
    %127 = vector.broadcast %126 : vector<16x1xf32> to vector<16x16xf32>
    %128 = arith.mulf %123, %127 : vector<16x16xf32>
    %129 = vector.broadcast %109 : vector<1x16xf32> to vector<16x16xf32>
    %130 = arith.mulf %128, %129 : vector<16x16xf32>
    %131 = vector.broadcast %110 : vector<1x16xf32> to vector<16x16xf32>
    %132 = arith.addf %130, %131 : vector<16x16xf32>
    %c0_58 = arith.constant 0 : index
    %c0_59 = arith.constant 0 : index
    %133 = vector.load %arg15[%c0_58, %c0_59] : memref<16x3xf32, #tpu.memory_space<vmem>>, vector<16x3xf32>
    %cst_60 = arith.constant dense<0.000000e+00> : vector<16x3xf32>
    %134 = tpu.matmul %132, %133, %cst_60 {dimension_numbers = #tpu.dot_dimension_numbers<[1], [0], [0], [1], [0, 0, 1, 1], [], []>} : vector<16x16xf32>, vector<16x3xf32>, vector<16x3xf32> -> vector<16x3xf32>
    %c0_61 = arith.constant 0 : index
    %c0_62 = arith.constant 0 : index
    %135 = vector.load %arg16[%c0_61, %c0_62] : memref<1x3xf32, #tpu.memory_space<vmem>>, vector<1x3xf32>
    %136 = vector.broadcast %135 : vector<1x3xf32> to vector<16x3xf32>
    %137 = arith.addf %134, %136 : vector<16x3xf32>
    %c0_63 = arith.constant 0 : index
    %c0_64 = arith.constant 0 : index
    %138 = vector.load %arg17[%c0_63, %c0_64] : memref<16x3xf32, #tpu.memory_space<vmem>>, vector<16x3xf32>
    tpu.vector_store %arg17[%c0_63, %c0_64], %137 {strides = array<i32>} : memref<16x3xf32, #tpu.memory_space<vmem>>, vector<16x3xf32>,
    return
  }
  func.func @transform_0(%arg0: i32) -> (i32, i32) {
    %c0_i32 = arith.constant 0 : i32
    %c0_i32_0 = arith.constant 0 : i32
    %c0_i32_1 = arith.constant 0 : i32
    return %c0_i32, %c0_i32_0 : i32, i32
  }
  func.func @transform_1(%arg0: i32) -> (i32, i32) {
    %c0_i32 = arith.constant 0 : i32
    %c0_i32_0 = arith.constant 0 : i32
    %c0_i32_1 = arith.constant 0 : i32
    return %c0_i32, %c0_i32_0 : i32, i32
  }
  func.func @transform_2(%arg0: i32) -> (i32, i32) {
    %c0_i32 = arith.constant 0 : i32
    %c0_i32_0 = arith.constant 0 : i32
    %c0_i32_1 = arith.constant 0 : i32
    return %c0_i32, %c0_i32_0 : i32, i32
  }
  func.func @transform_3(%arg0: i32) -> (i32, i32) {
    %c0_i32 = arith.constant 0 : i32
    %c0_i32_0 = arith.constant 0 : i32
    %c0_i32_1 = arith.constant 0 : i32
    return %c0_i32, %c0_i32_0 : i32, i32
  }
  func.func @transform_4(%arg0: i32) -> (i32, i32) {
    %c0_i32 = arith.constant 0 : i32
    %c0_i32_0 = arith.constant 0 : i32
    %c0_i32_1 = arith.constant 0 : i32
    return %c0_i32, %c0_i32_0 : i32, i32
  }
  func.func @transform_5(%arg0: i32) -> (i32, i32) {
    %c0_i32 = arith.constant 0 : i32
    %c0_i32_0 = arith.constant 0 : i32
    %c0_i32_1 = arith.constant 0 : i32
    return %c0_i32, %c0_i32_0 : i32, i32
  }
  func.func @transform_6(%arg0: i32) -> (i32, i32) {
    %c0_i32 = arith.constant 0 : i32
    %c0_i32_0 = arith.constant 0 : i32
    %c0_i32_1 = arith.constant 0 : i32
    return %c0_i32, %c0_i32_0 : i32, i32
  }
  func.func @transform_7(%arg0: i32) -> (i32, i32) {
    %c0_i32 = arith.constant 0 : i32
    %c0_i32_0 = arith.constant 0 : i32
    %c0_i32_1 = arith.constant 0 : i32
    return %c0_i32, %c0_i32_0 : i32, i32
  }
  func.func @transform_8(%arg0: i32) -> (i32, i32) {
    %c0_i32 = arith.constant 0 : i32
    %c0_i32_0 = arith.constant 0 : i32
    %c0_i32_1 = arith.constant 0 : i32
    return %c0_i32, %c0_i32_0 : i32, i32
  }
  func.func @transform_9(%arg0: i32) -> (i32, i32) {
    %c0_i32 = arith.constant 0 : i32
    %c0_i32_0 = arith.constant 0 : i32
    %c0_i32_1 = arith.constant 0 : i32
    return %c0_i32, %c0_i32_0 : i32, i32
  }
  func.func @transform_10(%arg0: i32) -> (i32, i32) {
    %c0_i32 = arith.constant 0 : i32
    %c0_i32_0 = arith.constant 0 : i32
    %c0_i32_1 = arith.constant 0 : i32
    return %c0_i32, %c0_i32_0 : i32, i32
  }
  func.func @transform_11(%arg0: i32) -> (i32, i32) {
    %c0_i32 = arith.constant 0 : i32
    %c0_i32_0 = arith.constant 0 : i32
    %c0_i32_1 = arith.constant 0 : i32
    return %c0_i32, %c0_i32_0 : i32, i32
  }
  func.func @transform_12(%arg0: i32) -> (i32, i32) {
    %c0_i32 = arith.constant 0 : i32
    %c0_i32_0 = arith.constant 0 : i32
    %c0_i32_1 = arith.constant 0 : i32
    return %c0_i32, %c0_i32_0 : i32, i32
  }
  func.func @transform_13(%arg0: i32) -> (i32, i32) {
    %c0_i32 = arith.constant 0 : i32
    %c0_i32_0 = arith.constant 0 : i32
    %c0_i32_1 = arith.constant 0 : i32
    return %c0_i32, %c0_i32_0 : i32, i32
  }
  func.func @transform_14(%arg0: i32) -> (i32, i32) {
    %c0_i32 = arith.constant 0 : i32
    %c0_i32_0 = arith.constant 0 : i32
    %c0_i32_1 = arith.constant 0 : i32
    return %c0_i32, %c0_i32_0 : i32, i32
  }
  func.func @transform_15(%arg0: i32) -> (i32, i32) {
    %c0_i32 = arith.constant 0 : i32
    %c0_i32_0 = arith.constant 0 : i32
    %c0_i32_1 = arith.constant 0 : i32
    return %c0_i32, %c0_i32_0 : i32, i32
  }
  func.func @transform_16(%arg0: i32) -> (i32, i32) {
    %c0_i32 = arith.constant 0 : i32
    %c0_i32_0 = arith.constant 0 : i32
    %c0_i32_1 = arith.constant 0 : i32
    return %c0_i32, %c0_i32_0 : i32, i32
  }
}

</mosaic_0001>

<bundles_post_ra>
// kernel: multimodal_forward.1
= control target key start
LH: loop header
LB: loop body
LE: loop exit
PB: predicated region body
PF: predicated region fallthrough
CT: control target
= control target key end

     0   :  { %s6428_s0 = inlined_call_operand.vmem [shape: bf16[16,10016], index: 0, kind: input, shape index: {}]   ;;  %s6429_s1 = inlined_call_operand.hbm [shape: s8[10016,256], index: 1, kind: input, shape index: {}]   ;;  %s6430_s2 = inlined_call_operand.hbm [shape: f32[1,256], index: 2, kind: input, shape index: {}]   ;;  %s6431_s3 = inlined_call_operand.hbm [shape: f32[1,256], index: 3, kind: input, shape index: {}]   ;;  %s6432_s4 = inlined_call_operand.vmem [shape: f32[256,16], index: 4, kind: input, shape index: {}]   ;;  %s6433_s5 = inlined_call_operand.hbm [shape: f32[1,16], index: 5, kind: input, shape index: {}]   ;;  %s6434_s6 = inlined_call_operand.vmem [shape: f32[16,16], index: 6, kind: input, shape index: {}]   ;;  %s6435_s7 = inlined_call_operand.vmem [shape: f32[2,16], index: 7, kind: input, shape index: {}]   ;;  %s6436_s8 = inlined_call_operand.hbm [shape: f32[16,48], index: 8, kind: input, shape index: {}]   ;;  %s6437_s9 = inlined_call_operand.hbm [shape: f32[16,16], index: 9, kind: input, shape index: {}]   ;;  %s6438_s10 = inlined_call_operand.hbm [shape: f32[1,16], index: 10, kind: input, shape index: {}]   ;;  %s6439_s11 = inlined_call_operand.hbm [shape: f32[1,16], index: 11, kind: input, shape index: {}]   ;;  %s6440_s12 = inlined_call_operand.hbm [shape: f32[1,16], index: 12, kind: input, shape index: {}]   ;;  %s6441_s13 = inlined_call_operand.hbm [shape: f32[1,16], index: 13, kind: input, shape index: {}]   ;;  %s6442_s14 = inlined_call_operand.vmem [shape: f32[16,3], index: 14, kind: input, shape index: {}]   ;;  %s6443_s15 = inlined_call_operand.hbm [shape: f32[1,3], index: 15, kind: input, shape index: {}]   ;;  %s6444_s16 = inlined_call_operand.vmem [shape: f32[16,3], index: 16, kind: output, shape index: {}]  }
   0x1   :  { %6446 = sst [smem:[#allocation25_spill]] %s6428_s0 }
   0x2   :  { %21 = vsyncpa [#allocation3], 0 }
   0x3   :  { %22 = vsyncpa [#allocation5], 0 }
   0x4   :  { %23 = vsyncpa [#allocation8], 0 }
   0x5   :  { %24 = vsyncpa [#allocation11], 0 }
   0x6   :  { %25 = vsyncpa [#allocation14], 0 }
   0x7   :  { %26 = vsyncpa [#allocation17], 0  ;;  %s5766_s21 = smov [#allocation4]   ;;  %s5767_s23 = smov [#allocation7]  }
   0x8   :  { %s47_s22 = sshll.u32 %s5766_s21, 4  ;;  %s69_s24 = sshll.u32 %s5767_s23, 4  ;;  %s48_s22 = int_to_ptr.vmem [resolvable:$true] %s47_s22  ;;  %s70_s24 = int_to_ptr.vmem [resolvable:$true] %s69_s24 }
   0x9   :  { %s5512_s27 = scalar_lea.hbm %s6430_s2, 32 }
   0xa   :  { %p5513_p0 = scmp.ne.s32.totalorder %s6430_s2, %s5512_s27  ;;  %p5516_p1 = scmp.lt.u32.totalorder %s5512_s27, %s6430_s2 }
   0xc   :  { %p5518_p2 = pnand %p5516_p1, %p5513_p0 }
   0xe   :  { %5521 = shalt.err (!%p5518_p2)
}
   0xf   :  { %s5522_s17 = scalar_lea.vmem %s48_s22, 32  ;;  %p5527_p4 = scmp.lt.s32.totalorder %s48_s22, %s48_s22 }
  0x10   :  { %p5523_p3 = scmp.ne.s32.totalorder %s48_s22, %s5522_s17  ;;  %p5528_p5 = scmp.lt.s32.totalorder %s5522_s17, %s5522_s17 }
  0x12   :  { %p5529_p6 = por %p5528_p5, %p5527_p4 }
  0x14   :  { %p5530_p7 = pnand %p5529_p6, %p5523_p3 }
  0x16   :  { %5533 = shalt.err (!%p5530_p7)
}
  0x17   :  { %50 = dma.hbm_to_vmem [thread:$0]  %s6430_s2, 32, %s48_s22, [#allocation5]  }
  0x18   :  { %s5534_s23 = scalar_lea.hbm %s6433_s5, 16 }
  0x19   :  { %p5535_p8 = scmp.ne.s32.totalorder %s6433_s5, %s5534_s23  ;;  %p5538_p9 = scmp.lt.u32.totalorder %s5534_s23, %s6433_s5 }
  0x1b   :  { %p5540_p10 = pnand %p5538_p9, %p5535_p8 }
  0x1d   :  { %5543 = shalt.err (!%p5540_p10)
}
  0x1e   :  { %s5544_s29 = scalar_lea.vmem %s70_s24, 16  ;;  %s5548_s30 = scalar_lea.vmem %s70_s24, 32 }
  0x1f   :  { %p5545_p11 = scmp.ne.s32.totalorder %s70_s24, %s5544_s29  ;;  %p5549_p12 = scmp.lt.s32.totalorder %s70_s24, %s70_s24 }
  0x20   :  { %p5550_p13 = scmp.lt.s32.totalorder %s5548_s30, %s5544_s29 }
  0x22   :  { %p5551_p0 = por %p5550_p13, %p5549_p12 }
  0x24   :  { %p5552_p1 = pnand %p5551_p0, %p5545_p11 }
  0x26   :  { %5555 = shalt.err (!%p5552_p1)
}
  0x27   :  { %72 = dma.hbm_to_vmem [thread:$0]  %s6433_s5, 16, %s70_s24, [#allocation8]  }
  0x28   :  { %s5768_s0 = smov [#allocation10]   ;;  %s5769_s18 = smov [#allocation13]  }
  0x29   :  { %s94_s17 = sshll.u32 %s5768_s0, 4  ;;  %s117_s19 = sshll.u32 %s5769_s18, 4  ;;  %s95_s17 = int_to_ptr.vmem [resolvable:$true] %s94_s17  ;;  %s5893_s19 = int_to_ptr.vmem [resolvable:$true] %s117_s19 }
  0x2a   :  { %s5556_s23 = scalar_lea.hbm %s6437_s9, 256 }
  0x2b   :  { %p5557_p2 = scmp.ne.s32.totalorder %s6437_s9, %s5556_s23  ;;  %p5560_p3 = scmp.lt.u32.totalorder %s5556_s23, %s6437_s9 }
  0x2d   :  { %p5562_p4 = pnand %p5560_p3, %p5557_p2 }
  0x2f   :  { %5565 = shalt.err (!%p5562_p4)
}
  0x30   :  { %s5566_s5 = scalar_lea.vmem %s95_s17, 256  ;;  %p5571_p6 = scmp.lt.s32.totalorder %s95_s17, %s95_s17 }
  0x31   :  { %p5567_p5 = scmp.ne.s32.totalorder %s95_s17, %s5566_s5  ;;  %p5572_p7 = scmp.lt.s32.totalorder %s5566_s5, %s5566_s5 }
  0x33   :  { %p5573_p8 = por %p5572_p7, %p5571_p6 }
  0x35   :  { %p5574_p9 = pnand %p5573_p8, %p5567_p5 }
  0x37   :  { %5577 = shalt.err (!%p5574_p9)
}
  0x38   :  { %s5770_s24 = smov 128   ;;  %s5771_s29 = smov 8  }
  0x39   :  { %100 = dma.hbm_to_vmem [thread:$0]  %s6437_s9, 256, %s95_s17, [#allocation11], %s5770_s24, %s5770_s24, %s5771_s29  }
  0x3a   :  { %s5578_s18 = scalar_lea.hbm %s6439_s11, 16 }
  0x3b   :  { %p5579_p10 = scmp.ne.s32.totalorder %s6439_s11, %s5578_s18  ;;  %p5582_p11 = scmp.lt.u32.totalorder %s5578_s18, %s6439_s11 }
  0x3d   :  { %p5584_p12 = pnand %p5582_p11, %p5579_p10 }
  0x3f   :  { %5587 = shalt.err (!%p5584_p12)
}
  0x40   :  { %s5588_s26 = scalar_lea.vmem %s5893_s19, 16  ;;  %s5592_s9 = scalar_lea.vmem %s5893_s19, 32 }
  0x41   :  { %p5589_p13 = scmp.ne.s32.totalorder %s5893_s19, %s5588_s26  ;;  %p5593_p0 = scmp.lt.s32.totalorder %s5893_s19, %s5893_s19 }
  0x42   :  { %p5594_p1 = scmp.lt.s32.totalorder %s5592_s9, %s5588_s26 }
  0x44   :  { %p5595_p2 = por %p5594_p1, %p5593_p0 }
  0x46   :  { %p5596_p3 = pnand %p5595_p2, %p5589_p13 }
  0x48   :  { %5599 = shalt.err (!%p5596_p3)
}
  0x49   :  { %120 = dma.hbm_to_vmem [thread:$0]  %s6439_s11, 16, %s5893_s19, [#allocation14]  }
  0x4a   :  { %s5772_s28 = smov [#allocation16]   ;;  %s5773_s30 = smov [#allocation2]  }
  0x4b   :  { %s137_s5 = sshll.u32 %s5772_s28, 4  ;;  %s34_s2 = sshll.u32 %s5773_s30, 4  ;;  %s138_s5 = int_to_ptr.vmem [resolvable:$true] %s137_s5  ;;  %s5928_s2 = int_to_ptr.vmem [resolvable:$true] %s34_s2 }
  0x4c   :  { %s5600_s18 = scalar_lea.hbm %s6441_s13, 16 }
  0x4d   :  { %p5601_p4 = scmp.ne.s32.totalorder %s6441_s13, %s5600_s18  ;;  %p5604_p5 = scmp.lt.u32.totalorder %s5600_s18, %s6441_s13 }
  0x4f   :  { %p5606_p6 = pnand %p5604_p5, %p5601_p4 }
  0x51   :  { %5609 = shalt.err (!%p5606_p6)
}
  0x52   :  { %s5610_s11 = scalar_lea.vmem %s138_s5, 16  ;;  %s5614_s19 = scalar_lea.vmem %s138_s5, 32 }
  0x53   :  { %p5611_p7 = scmp.ne.s32.totalorder %s138_s5, %s5610_s11  ;;  %p5615_p8 = scmp.lt.s32.totalorder %s138_s5, %s138_s5 }
  0x54   :  { %p5616_p9 = scmp.lt.s32.totalorder %s5614_s19, %s5610_s11 }
  0x56   :  { %p5617_p10 = por %p5616_p9, %p5615_p8 }
  0x58   :  { %p5618_p11 = pnand %p5617_p10, %p5611_p7 }
  0x5a   :  { %5621 = shalt.err (!%p5618_p11)
}
  0x5b   :  { %140 = dma.hbm_to_vmem [thread:$0]  %s6441_s13, 16, %s138_s5, [#allocation17]  }
  0x5c   :  { %s5622_s28 = scalar_lea.hbm %s6429_s1, 80128 }
  0x5d   :  { %p5623_p12 = scmp.ne.s32.totalorder %s6429_s1, %s5622_s28  ;;  %p5626_p13 = scmp.lt.u32.totalorder %s5622_s28, %s6429_s1 }
  0x5f   :  { %p5628_p0 = pnand %p5626_p13, %p5623_p12 }
  0x61   :  { %5631 = shalt.err (!%p5628_p0)
}
  0x62   :  { %s5632_s20 = scalar_lea.vmem %s5928_s2, 80128  ;;  %p5637_p2 = scmp.lt.s32.totalorder %s5928_s2, %s5928_s2 }
  0x63   :  { %p5633_p1 = scmp.ne.s32.totalorder %s5928_s2, %s5632_s20  ;;  %p5638_p3 = scmp.lt.s32.totalorder %s5632_s20, %s5632_s20 }
  0x65   :  { %p5639_p4 = por %p5638_p3, %p5637_p2 }
  0x67   :  { %p5640_p5 = pnand %p5639_p4, %p5633_p1 }
  0x69   :  { %5643 = shalt.err (!%p5640_p5)
}
  0x6a   :  { %s5774_s13 = smov 256   ;;  %s5775_s5 = smov 16  }
  0x6b   :  { %40 = dma.hbm_to_vmem [thread:$0]  %s6429_s1, 80128, %s5928_s2, [#allocation3], %s5774_s13, %s5774_s13, %s5775_s5  }
  0x6c   :  { %s5776_s25 = smov [#allocation6]   ;;  %s5777_s19 = smov [#allocation9]  }
  0x6d   :  { %s57_s11 = sshll.u32 %s5776_s25, 4  ;;  %s82_s26 = sshll.u32 %s5777_s19, 4  ;;  %s58_s11 = int_to_ptr.vmem [resolvable:$true] %s57_s11  ;;  %s5959_s26 = int_to_ptr.vmem [resolvable:$true] %s82_s26 }
  0x6e   :  { %s5644_s27 = scalar_lea.hbm %s6431_s3, 32 }
  0x6f   :  { %p5645_p6 = scmp.ne.s32.totalorder %s6431_s3, %s5644_s27  ;;  %p5648_p7 = scmp.lt.u32.totalorder %s5644_s27, %s6431_s3 }
  0x71   :  { %p5650_p8 = pnand %p5648_p7, %p5645_p6 }
  0x73   :  { %5653 = shalt.err (!%p5650_p8)
}
  0x74   :  { %s5654_s1 = scalar_lea.vmem %s58_s11, 32  ;;  %p5659_p10 = scmp.lt.s32.totalorder %s58_s11, %s58_s11 }
  0x75   :  { %p5655_p9 = scmp.ne.s32.totalorder %s58_s11, %s5654_s1  ;;  %p5660_p11 = scmp.lt.s32.totalorder %s5654_s1, %s5654_s1 }
  0x77   :  { %p5661_p12 = por %p5660_p11, %p5659_p10 }
  0x79   :  { %p5662_p13 = pnand %p5661_p12, %p5655_p9 }
  0x7b   :  { %5665 = shalt.err (!%p5662_p13)
}
  0x7c   :  { %60 = dma.hbm_to_vmem [thread:$0]  %s6431_s3, 32, %s58_s11, [#allocation5]  }
  0x7d   :  { %s5666_s5 = scalar_lea.hbm %s6436_s8, 256 }
  0x7e   :  { %p5667_p0 = scmp.ne.s32.totalorder %s6436_s8, %s5666_s5  ;;  %p5670_p1 = scmp.lt.u32.totalorder %s5666_s5, %s6436_s8 }
  0x80   :  { %p5672_p2 = pnand %p5670_p1, %p5667_p0 }
  0x82   :  { %5675 = shalt.err (!%p5672_p2)
}
  0x83   :  { %s5676_s9 = scalar_lea.vmem %s5959_s26, 256  ;;  %p5681_p4 = scmp.lt.s32.totalorder %s5959_s26, %s5959_s26 }
  0x84   :  { %p5677_p3 = scmp.ne.s32.totalorder %s5959_s26, %s5676_s9  ;;  %p5682_p5 = scmp.lt.s32.totalorder %s5676_s9, %s5676_s9 }
  0x86   :  { %p5683_p6 = por %p5682_p5, %p5681_p4 }
  0x88   :  { %p5684_p7 = pnand %p5683_p6, %p5677_p3 }
  0x8a   :  { %5687 = shalt.err (!%p5684_p7)
}
  0x8b   :  { %88 = dma.hbm_to_vmem [thread:$0]  %s6436_s8, 256, %s5959_s26, [#allocation8], %s5770_s24, %s5770_s24, %s5771_s29  }
  0x8c   :  { %s5778_s17 = smov [#allocation12]   ;;  %s5779_s28 = smov [#allocation15]  }
  0x8d   :  { %s107_s27 = sshll.u32 %s5778_s17, 4  ;;  %s127_s30 = sshll.u32 %s5779_s28, 4  ;;  %s108_s27 = int_to_ptr.vmem [resolvable:$true] %s107_s27  ;;  %s128_s30 = int_to_ptr.vmem [resolvable:$true] %s127_s30 }
  0x8e   :  { %s5688_s1 = scalar_lea.hbm %s6438_s10, 16 }
  0x8f   :  { %p5689_p8 = scmp.ne.s32.totalorder %s6438_s10, %s5688_s1  ;;  %p5692_p9 = scmp.lt.u32.totalorder %s5688_s1, %s6438_s10 }
  0x91   :  { %p5694_p10 = pnand %p5692_p9, %p5689_p8 }
  0x93   :  { %5697 = shalt.err (!%p5694_p10)
}
  0x94   :  { %s5698_s8 = scalar_lea.vmem %s108_s27, 16  ;;  %s5702_s24 = scalar_lea.vmem %s108_s27, 32 }
  0x95   :  { %p5699_p11 = scmp.ne.s32.totalorder %s108_s27, %s5698_s8  ;;  %p5703_p12 = scmp.lt.s32.totalorder %s108_s27, %s108_s27 }
  0x96   :  { %p5704_p13 = scmp.lt.s32.totalorder %s5702_s24, %s5698_s8 }
  0x98   :  { %p5705_p0 = por %p5704_p13, %p5703_p12 }
  0x9a   :  { %p5706_p1 = pnand %p5705_p0, %p5699_p11 }
  0x9c   :  { %5709 = shalt.err (!%p5706_p1)
}
  0x9d   :  { %110 = dma.hbm_to_vmem [thread:$0]  %s6438_s10, 16, %s108_s27, [#allocation11]  }
  0x9e   :  { %s5710_s23 = scalar_lea.hbm %s6440_s12, 16 }
  0x9f   :  { %p5711_p2 = scmp.ne.s32.totalorder %s6440_s12, %s5710_s23  ;;  %p5714_p3 = scmp.lt.u32.totalorder %s5710_s23, %s6440_s12 }
  0xa1   :  { %p5716_p4 = pnand %p5714_p3, %p5711_p2 }
  0xa3   :  { %5719 = shalt.err (!%p5716_p4)
}
  0xa4   :  { %s5720_s11 = scalar_lea.vmem %s128_s30, 16  ;;  %s5724_s17 = scalar_lea.vmem %s128_s30, 32 }
  0xa5   :  { %p5721_p5 = scmp.ne.s32.totalorder %s128_s30, %s5720_s11  ;;  %p5725_p6 = scmp.lt.s32.totalorder %s128_s30, %s128_s30 }
  0xa6   :  { %p5726_p7 = scmp.lt.s32.totalorder %s5724_s17, %s5720_s11 }
  0xa8   :  { %p5727_p8 = por %p5726_p7, %p5725_p6 }
  0xaa   :  { %p5728_p9 = pnand %p5727_p8, %p5721_p5 }
  0xac   :  { %5731 = shalt.err (!%p5728_p9)
}
  0xad   :  { %130 = dma.hbm_to_vmem [thread:$0]  %s6440_s12, 16, %s128_s30, [#allocation14]  }
  0xae   :  { %s5780_s28 = smov [#allocation18]   ;;  %s5732_s2 = scalar_lea.hbm %s6443_s15, 16 }
  0xaf   :  { %s149_s22 = sshll.u32 %s5780_s28, 4  ;;  %p5733_p10 = scmp.ne.s32.totalorder %s6443_s15, %s5732_s2  ;;  %s150_s22 = int_to_ptr.vmem [resolvable:$true] %s149_s22 }
  0xb0   :  { %p5736_p11 = scmp.lt.u32.totalorder %s5732_s2, %s6443_s15 }
  0xb2   :  { %p5738_p12 = pnand %p5736_p11, %p5733_p10 }
  0xb4   :  { %5741 = shalt.err (!%p5738_p12)
}
  0xb5   :  { %s5742_s24 = scalar_lea.vmem %s150_s22, 16  ;;  %s5746_s12 = scalar_lea.vmem %s150_s22, 32 }
  0xb6   :  { %p5743_p13 = scmp.ne.s32.totalorder %s150_s22, %s5742_s24  ;;  %p5747_p0 = scmp.lt.s32.totalorder %s150_s22, %s150_s22 }
  0xb7   :  { %p5748_p1 = scmp.lt.s32.totalorder %s5746_s12, %s5742_s24 }
  0xb9   :  { %p5749_p2 = por %p5748_p1, %p5747_p0 }
  0xbb   :  { %p5750_p3 = pnand %p5749_p2, %p5743_p13 }
  0xbd   :  { %5753 = shalt.err (!%p5750_p3)
}
  0xbe   :  { %152 = dma.hbm_to_vmem [thread:$0]  %s6443_s15, 16, %s150_s22, [#allocation17]  }
  0xbf   :  { %5754 = dma.done.wait [#allocation3], 80128  }
  0xc0   :  { %5755 = vsyncadd [#allocation3], 4294887168 }
  0xc1   :  { %5756 = dma.done.wait [#allocation5], 64  }
  0xc2   :  { %5757 = vsyncadd [#allocation5], 4294967232 }
  0xc3   :  { %5758 = dma.done.wait [#allocation8], 272  }
  0xc4   :  { %5759 = vsyncadd [#allocation8], 4294967024 }
  0xc5   :  { %5760 = dma.done.wait [#allocation11], 272  }
  0xc6   :  { %5761 = vsyncadd [#allocation11], 4294967024 }
  0xc7   :  { %5762 = dma.done.wait [#allocation14], 32  }
  0xc8   :  { %5763 = vsyncadd [#allocation14], 4294967264 }
  0xc9   :  { %5764 = dma.done.wait [#allocation17], 32  }
  0xca   :  { %5765 = vsyncadd [#allocation17], 4294967264  ;;  %v188_v0 = vld [vmem:[#allocation2 + $0x8] sm:$0xff]  ;;  %v187_v2 = vld [vmem:[#allocation2] sm:$0xff]  ;;  %s6447_s5 = sld [smem:[#allocation25_spill]]  ;;  %vm2540_vm0 = vcmask 261120  }
  0xcb   :  { %v492_v1 = vld [vmem:[#allocation2 + $0x988] sm:$0xff]  ;;  %v814_v3 = vunpack.c.l.s8.bf16 %v188_v0  ;;  %v816_v4 = vunpack.c.h.s8.bf16 %v188_v0  ;;  %v491_v7 = vld [vmem:[#allocation2 + $0x980] sm:$0xff]  ;;  %v813_v8 = vunpack.c.l.s8.bf16 %v187_v2  ;;  %v190_v10 = vld [vmem:[#allocation2 + $0x18] sm:$0xff]  ;;  %v815_v12 = vunpack.c.h.s8.bf16 %v187_v2 }
  0xcc   :  { %v1422_v5 = vunpack.c.l.s8.bf16 %v492_v1  ;;  %v1424_v6 = vunpack.c.h.s8.bf16 %v492_v1  ;;  %v1421_v9 = vunpack.c.l.s8.bf16 %v491_v7  ;;  %v494_v11 = vld [vmem:[#allocation2 + $0x998] sm:$0xff]  ;;  %v1423_v13 = vunpack.c.h.s8.bf16 %v491_v7  ;;  %v189_v16 = vld [vmem:[#allocation2 + $0x10] sm:$0xff]  ;;  %v192_v22 = vld [vmem:[#allocation2 + $0x28] sm:$0xff] }
  0xcd   :  { %2544 = vmatprep.subr.bf16.mxu1 %v814_v3  ;;  %v818_v14 = vunpack.c.l.s8.bf16 %v190_v10  ;;  %v1426_v15 = vunpack.c.l.s8.bf16 %v494_v11  ;;  %v493_v17 = vld [vmem:[#allocation2 + $0x990] sm:$0xff]  ;;  %v817_v18 = vunpack.c.l.s8.bf16 %v189_v16  ;;  %v820_v20 = vunpack.c.h.s8.bf16 %v190_v10  ;;  %v496_v23 = vld [vmem:[#allocation2 + $0x9a8] sm:$0xff]  ;;  %v191_v29 = vld [vmem:[#allocation2 + $0x20] sm:$0xff] }
  0xce   :  { %3361 = vmatprep.subr.bf16.mxu0 %v1422_v5  ;;  %2545 = vmatpush1.bf16.msra.mxu1 %v813_v8  ;;  %v1425_v19 = vunpack.c.l.s8.bf16 %v493_v17  ;;  %v1428_v21 = vunpack.c.h.s8.bf16 %v494_v11  ;;  %v819_v25 = vunpack.c.h.s8.bf16 %v189_v16  ;;  %v1427_v26 = vunpack.c.h.s8.bf16 %v493_v17  ;;  %v495_v30 = vld [vmem:[#allocation2 + $0x9a0] sm:$0xff]  ;;  %v194_v36 = vld [vmem:[#allocation2 + $0x38] sm:$0xff]  ;;  %v193_v42 = vld [vmem:[#allocation2 + $0x30] sm:$0xff] }
  0xcf   :  { %3362 = vmatpush1.bf16.msra.mxu0 %v1421_v9  ;;  %2546 = vmatprep.subr.bf16.mxu1 %v816_v4  ;;  %v822_v27 = vunpack.c.l.s8.bf16 %v192_v22  ;;  %v1430_v28 = vunpack.c.l.s8.bf16 %v496_v23  ;;  %v821_v32 = vunpack.c.l.s8.bf16 %v191_v29  ;;  %v1429_v33 = vunpack.c.l.s8.bf16 %v495_v30  ;;  %v498_v37 = vld [vmem:[#allocation2 + $0x9b8] sm:$0xff]  ;;  %v497_v43 = vld [vmem:[#allocation2 + $0x9b0] sm:$0xff]  ;;  %v196_v48 = vld [vmem:[#allocation2 + $0x48] sm:$0xff] }
  0xd0   :  { %3363 = vmatprep.subr.bf16.mxu0 %v1424_v6  ;;  %v5372_v24 = vld [vmem:[%s6447_s5 + $0x4] ss:$316 sps:$4 sm:$0xff]   ;;  %v5375_v31 = vld [vmem:[%s6447_s5 + $0x9c] ss:$316 sps:$4 sm:$0xff]   ;;  %v824_v34 = vunpack.c.h.s8.bf16 %v192_v22  ;;  %v1432_v35 = vunpack.c.h.s8.bf16 %v496_v23  ;;  %v823_v38 = vunpack.c.h.s8.bf16 %v191_v29  ;;  %v1431_v39 = vunpack.c.h.s8.bf16 %v495_v30  ;;  %v500_v49 = vld [vmem:[#allocation2 + $0x9c8] sm:$0xff] }
  0xd1   :  { %2576 = vmatprep.mubr.bf16.mxu1 %v5372_v24  ;;  %3393 = vmatprep.mubr.bf16.mxu0 %v5375_v31  ;;  %v826_v40 = vunpack.c.l.s8.bf16 %v194_v36  ;;  %v1434_v41 = vunpack.c.l.s8.bf16 %v498_v37  ;;  %v825_v44 = vunpack.c.l.s8.bf16 %v193_v42  ;;  %v1433_v45 = vunpack.c.l.s8.bf16 %v497_v43  ;;  %v195_v54 = vld [vmem:[#allocation2 + $0x40] sm:$0xff]  ;;  %v198_v60 = vld [vmem:[#allocation2 + $0x58] sm:$0xff]  ;;  %v197_v62 = vld [vmem:[#allocation2 + $0x50] sm:$0xff] }
  0xd2   :  { %2547 = vmatpush1.bf16.msra.mxu1 %v815_v12  ;;  %v828_v46 = vunpack.c.h.s8.bf16 %v194_v36  ;;  %v1436_v47 = vunpack.c.h.s8.bf16 %v498_v37  ;;  %v827_v50 = vunpack.c.h.s8.bf16 %v193_v42  ;;  %v1435_v51 = vunpack.c.h.s8.bf16 %v497_v43  ;;  %v499_v55 = vld [vmem:[#allocation2 + $0x9c0] sm:$0xff]  ;;  %v502_v61 = vld [vmem:[#allocation2 + $0x9d8] sm:$0xff]  ;;  %v501_v63 = vld [vmem:[#allocation2 + $0x9d0] sm:$0xff] }
  0xd3   :  { %3364 = vmatpush1.bf16.msra.mxu0 %v1423_v13  ;;  %2548 = vmatprep.subr.bf16.mxu1 %v818_v14  ;;  %v830_v52 = vunpack.c.l.s8.bf16 %v196_v48  ;;  %v1438_v53 = vunpack.c.l.s8.bf16 %v500_v49  ;;  %v829_v56 = vunpack.c.l.s8.bf16 %v195_v54  ;;  %v1437_v57 = vunpack.c.l.s8.bf16 %v499_v55  ;;  %v200_v8 = vld [vmem:[#allocation2 + $0x68] sm:$0xff]  ;;  %v199_v10 = vld [vmem:[#allocation2 + $0x60] sm:$0xff]  ;;  %v201_v22 = vld [vmem:[#allocation2 + $0x70] sm:$0xff] }
  0xd4   :  { %3365 = vmatprep.subr.bf16.mxu0 %v1426_v15  ;;  %v832_v58 = vunpack.c.h.s8.bf16 %v196_v48  ;;  %v1440_v59 = vunpack.c.h.s8.bf16 %v500_v49  ;;  %v831_v0 = vunpack.c.h.s8.bf16 %v195_v54  ;;  %v1439_v1 = vunpack.c.h.s8.bf16 %v499_v55  ;;  %v504_v9 = vld [vmem:[#allocation2 + $0x9e8] sm:$0xff]  ;;  %v503_v11 = vld [vmem:[#allocation2 + $0x9e0] sm:$0xff]  ;;  %v505_v23 = vld [vmem:[#allocation2 + $0x9f0] sm:$0xff] }
  0xd5   :  { %v834_v2 = vunpack.c.l.s8.bf16 %v198_v60  ;;  %v1442_v3 = vunpack.c.l.s8.bf16 %v502_v61  ;;  %v833_v4 = vunpack.c.l.s8.bf16 %v197_v62  ;;  %v1441_v5 = vunpack.c.l.s8.bf16 %v501_v63  ;;  %v5378_v48 = vld [vmem:[%s6447_s5 + $0xc] ss:$316 sps:$4 sm:$0xff]   ;;  %v5381_v49 = vld [vmem:[%s6447_s5 + $0xa4] ss:$316 sps:$4 sm:$0xff]   ;;  %v205_v54 = vld [vmem:[#allocation2 + $0x90] sm:$0xff] }
  0xd6   :  { %2549 = vmatpush1.bf16.msra.mxu1 %v817_v18  ;;  %v836_v6 = vunpack.c.h.s8.bf16 %v198_v60  ;;  %v1444_v7 = vunpack.c.h.s8.bf16 %v502_v61  ;;  %v835_v12 = vunpack.c.h.s8.bf16 %v197_v62  ;;  %v1443_v13 = vunpack.c.h.s8.bf16 %v501_v63  ;;  %v509_v55 = vld [vmem:[#allocation2 + $0xa10] sm:$0xff]  ;;  %v208_v60 = vld [vmem:[#allocation2 + $0xa8] sm:$0xff] }
  0xd7   :  { %3366 = vmatpush1.bf16.msra.mxu0 %v1425_v19  ;;  %2550 = vmatprep.subr.bf16.mxu1 %v820_v20  ;;  %v838_v14 = vunpack.c.l.s8.bf16 %v200_v8  ;;  %v1446_v15 = vunpack.c.l.s8.bf16 %v504_v9  ;;  %v837_v16 = vunpack.c.l.s8.bf16 %v199_v10  ;;  %v1445_v17 = vunpack.c.l.s8.bf16 %v503_v11  ;;  %v202_v20 = vld [vmem:[#allocation2 + $0x78] sm:$0xff]  ;;  %v512_v61 = vld [vmem:[#allocation2 + $0xa28] sm:$0xff] }
  0xd8   :  { %3367 = vmatprep.subr.bf16.mxu0 %v1428_v21  ;;  %v840_v18 = vunpack.c.h.s8.bf16 %v200_v8  ;;  %v1448_v19 = vunpack.c.h.s8.bf16 %v504_v9  ;;  %v506_v21 = vld [vmem:[#allocation2 + $0x9f8] sm:$0xff]  ;;  %v839_v24 = vunpack.c.h.s8.bf16 %v199_v10  ;;  %v1449_v29 = vunpack.c.l.s8.bf16 %v505_v23 }
  0xd9   :  { %v844_v30 = vunpack.c.h.s8.bf16 %v202_v20  ;;  %v1452_v31 = vunpack.c.h.s8.bf16 %v506_v21  ;;  %v851_v62 = vunpack.c.h.s8.bf16 %v205_v54  ;;  %v1459_v63 = vunpack.c.h.s8.bf16 %v509_v55  ;;  %v210_v8 = vld [vmem:[#allocation2 + $0xb8] sm:$0xff] }
  0xda   :  { %2551 = vmatpush1.bf16.msra.mxu1 %v819_v25  ;;  %v1447_v25 = vunpack.c.h.s8.bf16 %v503_v11  ;;  %v514_v9 = vld [vmem:[#allocation2 + $0xa38] sm:$0xff]  ;;  %vm4432_vm1 = vcmask 130048   ;;  %vm4957_vm2 = vcmask 23552  }
  0xdb   :  { %3368 = vmatpush1.bf16.msra.mxu0 %v1427_v26  ;;  %2552 = vmatprep.subr.bf16.mxu1 %v822_v27  ;;  %v842_v26 = vunpack.c.l.s8.bf16 %v202_v20  ;;  %v1450_v27 = vunpack.c.l.s8.bf16 %v506_v21  ;;  %v212_v20 = vld [vmem:[#allocation2 + $0xc8] sm:$0xff] }
  0xdc   :  { %3369 = vmatprep.subr.bf16.mxu0 %v1430_v28  ;;  %v841_v28 = vunpack.c.l.s8.bf16 %v201_v22  ;;  %v516_v21 = vld [vmem:[#allocation2 + $0xa48] sm:$0xff] }
  0xde   :  { %2553 = vmatpush1.bf16.msra.mxu1 %v821_v32  ;;  %v204_v32 = vld [vmem:[#allocation2 + $0x88] sm:$0xff] }
  0xdf   :  { %3370 = vmatpush1.bf16.msra.mxu0 %v1429_v33  ;;  %2554 = vmatprep.subr.bf16.mxu1 %v824_v34  ;;  %v508_v33 = vld [vmem:[#allocation2 + $0xa08] sm:$0xff]  ;;  %v843_v34 = vunpack.c.h.s8.bf16 %v201_v22  ;;  %v846_v36 = vunpack.c.l.s8.bf16 %v204_v32 }
  0xe0   :  { %3371 = vmatprep.subr.bf16.mxu0 %v1432_v35  ;;  %v1451_v35 = vunpack.c.h.s8.bf16 %v505_v23  ;;  %v1454_v37 = vunpack.c.l.s8.bf16 %v508_v33 }
  0xe2   :  { %2555 = vmatpush1.bf16.msra.mxu1 %v823_v38  ;;  %v203_v38 = vld [vmem:[#allocation2 + $0x80] sm:$0xff] }
  0xe3   :  { %3372 = vmatpush1.bf16.msra.mxu0 %v1431_v39  ;;  %2556 = vmatprep.subr.bf16.mxu1 %v826_v40  ;;  %v507_v39 = vld [vmem:[#allocation2 + $0xa00] sm:$0xff]  ;;  %v845_v42 = vunpack.c.l.s8.bf16 %v203_v38 }
  0xe4   :  { %3373 = vmatprep.subr.bf16.mxu0 %v1434_v41  ;;  %v5370_v40 = vld [vmem:[%s6447_s5] ss:$316 sps:$4 sm:$0xff]   ;;  %v5373_v41 = vld [vmem:[%s6447_s5 + $0x98] ss:$316 sps:$4 sm:$0xff]   ;;  %v1453_v43 = vunpack.c.l.s8.bf16 %v507_v39 }
  0xe6   :  { %2557 = vmatpush1.bf16.msra.mxu1 %v825_v44  ;;  %v848_v44 = vunpack.c.h.s8.bf16 %v204_v32  ;;  %v214_v32 = vld [vmem:[#allocation2 + $0xd8] sm:$0xff] }
  0xe7   :  { %3374 = vmatpush1.bf16.msra.mxu0 %v1433_v45  ;;  %2558 = vmatprep.subr.bf16.mxu1 %v828_v46  ;;  %v1456_v45 = vunpack.c.h.s8.bf16 %v508_v33  ;;  %v206_v46 = vld [vmem:[#allocation2 + $0x98] sm:$0xff] }
  0xe8   :  { %3375 = vmatprep.subr.bf16.mxu0 %v1436_v47  ;;  %v510_v47 = vld [vmem:[#allocation2 + $0xa18] sm:$0xff] }
  0xe9   :  { %v518_v33 = vld [vmem:[#allocation2 + $0xa58] sm:$0xff] }
  0xea   :  { %2559 = vmatpush1.bf16.msra.mxu1 %v827_v50  ;;  %v847_v50 = vunpack.c.h.s8.bf16 %v203_v38  ;;  %v213_v38 = vld [vmem:[#allocation2 + $0xd0] sm:$0xff] }
  0xeb   :  { %3376 = vmatpush1.bf16.msra.mxu0 %v1435_v51  ;;  %2560 = vmatprep.subr.bf16.mxu1 %v830_v52  ;;  %v1455_v51 = vunpack.c.h.s8.bf16 %v507_v39  ;;  %v850_v52 = vunpack.c.l.s8.bf16 %v206_v46  ;;  %v517_v39 = vld [vmem:[#allocation2 + $0xa50] sm:$0xff] }
  0xec   :  { %3377 = vmatprep.subr.bf16.mxu0 %v1438_v53  ;;  %v1458_v53 = vunpack.c.l.s8.bf16 %v510_v47 }
  0xee   :  { %2561 = vmatpush1.bf16.msra.mxu1 %v829_v56  ;;  %v849_v56 = vunpack.c.l.s8.bf16 %v205_v54 }
  0xef   :  { %3378 = vmatpush1.bf16.msra.mxu0 %v1437_v57  ;;  %2562 = vmatprep.subr.bf16.mxu1 %v832_v58  ;;  %v1457_v57 = vunpack.c.l.s8.bf16 %v509_v55  ;;  %v852_v58 = vunpack.c.h.s8.bf16 %v206_v46  ;;  %v867_v46 = vunpack.c.h.s8.bf16 %v213_v38 }
  0xf0   :  { %3379 = vmatprep.subr.bf16.mxu0 %v1440_v59  ;;  %v1460_v59 = vunpack.c.h.s8.bf16 %v510_v47  ;;  %v1475_v47 = vunpack.c.h.s8.bf16 %v517_v39 }
  0xf2   :  { %2563 = vmatpush1.bf16.msra.mxu1 %v831_v0  ;;  %v854_v0 = vunpack.c.l.s8.bf16 %v208_v60 }
  0xf3   :  { %3380 = vmatpush1.bf16.msra.mxu0 %v1439_v1  ;;  %2564 = vmatprep.subr.bf16.mxu1 %v834_v2  ;;  %v1462_v1 = vunpack.c.l.s8.bf16 %v512_v61  ;;  %v207_v2 = vld [vmem:[#allocation2 + $0xa0] sm:$0xff] }
  0xf4   :  { %3381 = vmatprep.subr.bf16.mxu0 %v1442_v3  ;;  %v511_v3 = vld [vmem:[#allocation2 + $0xa20] sm:$0xff]  ;;  %v855_v10 = vunpack.c.h.s8.bf16 %v207_v2 }
  0xf5   :  { %v1463_v11 = vunpack.c.h.s8.bf16 %v511_v3 }
  0xf6   :  { %2565 = vmatpush1.bf16.msra.mxu1 %v833_v4  ;;  %v853_v4 = vunpack.c.l.s8.bf16 %v207_v2 }
  0xf7   :  { %3382 = vmatpush1.bf16.msra.mxu0 %v1441_v5  ;;  %2566 = vmatprep.subr.bf16.mxu1 %v836_v6  ;;  %v1461_v5 = vunpack.c.l.s8.bf16 %v511_v3  ;;  %v856_v6 = vunpack.c.h.s8.bf16 %v208_v60 }
  0xf8   :  { %3383 = vmatprep.subr.bf16.mxu0 %v1444_v7  ;;  %v1464_v7 = vunpack.c.h.s8.bf16 %v512_v61 }
  0xfa   :  { %2567 = vmatpush1.bf16.msra.mxu1 %v835_v12  ;;  %v858_v12 = vunpack.c.l.s8.bf16 %v210_v8 }
  0xfb   :  { %3384 = vmatpush1.bf16.msra.mxu0 %v1443_v13  ;;  %2568 = vmatprep.subr.bf16.mxu1 %v838_v14  ;;  %v1466_v13 = vunpack.c.l.s8.bf16 %v514_v9  ;;  %v209_v14 = vld [vmem:[#allocation2 + $0xb0] sm:$0xff] }
  0xfc   :  { %3385 = vmatprep.subr.bf16.mxu0 %v1446_v15  ;;  %v513_v15 = vld [vmem:[#allocation2 + $0xa30] sm:$0xff]  ;;  %v859_v22 = vunpack.c.h.s8.bf16 %v209_v14 }
  0xfd   :  { %v1467_v23 = vunpack.c.h.s8.bf16 %v513_v15 }
  0xfe   :  { %2569 = vmatpush1.bf16.msra.mxu1 %v837_v16  ;;  %v857_v16 = vunpack.c.l.s8.bf16 %v209_v14 }
  0xff   :  { %3386 = vmatpush1.bf16.msra.mxu0 %v1445_v17  ;;  %2570 = vmatprep.subr.bf16.mxu1 %v840_v18  ;;  %v1465_v17 = vunpack.c.l.s8.bf16 %v513_v15  ;;  %v860_v18 = vunpack.c.h.s8.bf16 %v210_v8 }
 0x100   :  { %3387 = vmatprep.subr.bf16.mxu0 %v1448_v19  ;;  %v1468_v19 = vunpack.c.h.s8.bf16 %v514_v9 }
 0x102   :  { %2571 = vmatpush1.bf16.msra.mxu1 %v839_v24  ;;  %v862_v24 = vunpack.c.l.s8.bf16 %v212_v20 }
 0x103   :  { %3388 = vmatpush1.bf16.msra.mxu0 %v1447_v25  ;;  %2572 = vmatprep.subr.bf16.mxu1 %v842_v26  ;;  %v1470_v25 = vunpack.c.l.s8.bf16 %v516_v21  ;;  %v211_v26 = vld [vmem:[#allocation2 + $0xc0] sm:$0xff] }
 0x104   :  { %3389 = vmatprep.subr.bf16.mxu0 %v1450_v27  ;;  %v515_v27 = vld [vmem:[#allocation2 + $0xa40] sm:$0xff] }
 0x106   :  { %2573 = vmatpush1.bf16.msra.mxu1 %v841_v28  ;;  %v861_v28 = vunpack.c.l.s8.bf16 %v211_v26 }
 0x107   :  { %3390 = vmatpush1.bf16.msra.mxu0 %v1449_v29  ;;  %2574 = vmatprep.subr.bf16.mxu1 %v844_v30  ;;  %v1469_v29 = vunpack.c.l.s8.bf16 %v515_v27  ;;  %v864_v30 = vunpack.c.h.s8.bf16 %v212_v20  ;;  %v5384_v20 = vld [vmem:[%s6447_s5 + $0x14] ss:$316 sps:$4 sm:$0xff]  }
 0x108   :  { %3391 = vmatprep.subr.bf16.mxu0 %v1452_v31  ;;  %v1472_v31 = vunpack.c.h.s8.bf16 %v516_v21  ;;  %v5387_v21 = vld [vmem:[%s6447_s5 + $0xac] ss:$316 sps:$4 sm:$0xff]  }
 0x10a   :  { %2575 = vmatpush1.bf16.msra.mxu1 %v843_v34  ;;  %v863_v34 = vunpack.c.h.s8.bf16 %v211_v26  ;;  %v221_v26 = vld [vmem:[#allocation2 + $0x110] sm:$0xff] }
 0x10b   :  { %3392 = vmatpush1.bf16.msra.mxu0 %v1451_v35  ;;  %2587 = vmatprep.subr.bf16.mxu1 %v846_v36  ;;  %v1471_v35 = vunpack.c.h.s8.bf16 %v515_v27  ;;  %v866_v36 = vunpack.c.l.s8.bf16 %v214_v32  ;;  %v525_v27 = vld [vmem:[#allocation2 + $0xa90] sm:$0xff] }
 0x10c   :  { %3404 = vmatprep.subr.bf16.mxu0 %v1454_v37  ;;  %v1474_v37 = vunpack.c.l.s8.bf16 %v518_v33 }
 0x10d   :  { %2577 = vmatmul.mubr.bf16.vlgmr.msra.gmra.mrb[0].mxu1 %v5370_v40  ;;  %v865_v40 = vunpack.c.l.s8.bf16 %v213_v38  ;;  %v223_v38 = vld [vmem:[#allocation2 + $0x120] sm:$0xff] }
 0x10e   :  { %3394 = vmatmul.mubr.bf16.vlgmr.msra.gmra.mrb[0].mxu0 %v5373_v41  ;;  %2588 = vmatpush1.bf16.msra.mxu1 %v845_v42  ;;  %v1473_v41 = vunpack.c.l.s8.bf16 %v517_v39  ;;  %v868_v42 = vunpack.c.h.s8.bf16 %v214_v32  ;;  %v224_v32 = vld [vmem:[#allocation2 + $0x128] sm:$0xff]  ;;  %v527_v39 = vld [vmem:[#allocation2 + $0xaa0] sm:$0xff] }
 0x10f   :  { %3405 = vmatpush1.bf16.msra.mxu0 %v1453_v43  ;;  %2589 = vmatprep.subr.bf16.mxu1 %v848_v44  ;;  %v1476_v43 = vunpack.c.h.s8.bf16 %v518_v33  ;;  %v216_v44 = vld [vmem:[#allocation2 + $0xe8] sm:$0xff] }
 0x110   :  { %3406 = vmatprep.subr.bf16.mxu0 %v1456_v45  ;;  %2619 = vmatprep.mubr.bf16.mxu1 %v5378_v48  ;;  %v520_v45 = vld [vmem:[#allocation2 + $0xa68] sm:$0xff]  ;;  %v870_v48 = vunpack.c.l.s8.bf16 %v216_v44  ;;  %v872_v54 = vunpack.c.h.s8.bf16 %v216_v44  ;;  %v226_v44 = vld [vmem:[#allocation2 + $0x138] sm:$0xff] }
 0x111   :  { %3436 = vmatprep.mubr.bf16.mxu0 %v5381_v49  ;;  %v1478_v49 = vunpack.c.l.s8.bf16 %v520_v45  ;;  %v1480_v55 = vunpack.c.h.s8.bf16 %v520_v45  ;;  %v528_v33 = vld [vmem:[#allocation2 + $0xaa8] sm:$0xff]  ;;  %v530_v45 = vld [vmem:[#allocation2 + $0xab8] sm:$0xff] }
 0x112   :  { %2590 = vmatpush1.bf16.msra.mxu1 %v847_v50  ;;  %v215_v50 = vld [vmem:[#allocation2 + $0xe0] sm:$0xff] }
 0x113   :  { %3407 = vmatpush1.bf16.msra.mxu0 %v1455_v51  ;;  %2591 = vmatprep.subr.bf16.mxu1 %v850_v52  ;;  %v519_v51 = vld [vmem:[#allocation2 + $0xa60] sm:$0xff]  ;;  %v869_v52 = vunpack.c.l.s8.bf16 %v215_v50 }
 0x114   :  { %3408 = vmatprep.subr.bf16.mxu0 %v1458_v53  ;;  %v1477_v53 = vunpack.c.l.s8.bf16 %v519_v51 }
 0x116   :  { %2592 = vmatpush1.bf16.msra.mxu1 %v849_v56  ;;  %v218_v56 = vld [vmem:[#allocation2 + $0xf8] sm:$0xff] }
 0x117   :  { %3409 = vmatpush1.bf16.msra.mxu0 %v1457_v57  ;;  %2593 = vmatprep.subr.bf16.mxu1 %v852_v58  ;;  %v522_v57 = vld [vmem:[#allocation2 + $0xa78] sm:$0xff]  ;;  %v871_v58 = vunpack.c.h.s8.bf16 %v215_v50  ;;  %v874_v60 = vunpack.c.l.s8.bf16 %v218_v56  ;;  %v876_v2 = vunpack.c.h.s8.bf16 %v218_v56  ;;  %v225_v50 = vld [vmem:[#allocation2 + $0x130] sm:$0xff]  ;;  %v228_v56 = vld [vmem:[#allocation2 + $0x148] sm:$0xff] }
 0x118   :  { %3410 = vmatprep.subr.bf16.mxu0 %v1460_v59  ;;  %v1479_v59 = vunpack.c.h.s8.bf16 %v519_v51  ;;  %v1482_v61 = vunpack.c.l.s8.bf16 %v522_v57  ;;  %v1484_v3 = vunpack.c.h.s8.bf16 %v522_v57  ;;  %v529_v51 = vld [vmem:[#allocation2 + $0xab0] sm:$0xff]  ;;  %v532_v57 = vld [vmem:[#allocation2 + $0xac8] sm:$0xff] }
 0x11a   :  { %2594 = vmatpush1.bf16.msra.mxu1 %v851_v62  ;;  %v217_v62 = vld [vmem:[#allocation2 + $0xf0] sm:$0xff] }
 0x11b   :  { %3411 = vmatpush1.bf16.msra.mxu0 %v1459_v63  ;;  %2595 = vmatprep.subr.bf16.mxu1 %v854_v0  ;;  %v521_v63 = vld [vmem:[#allocation2 + $0xa70] sm:$0xff]  ;;  %v873_v0 = vunpack.c.l.s8.bf16 %v217_v62 }
 0x11c   :  { %3412 = vmatprep.subr.bf16.mxu0 %v1462_v1  ;;  %v1481_v1 = vunpack.c.l.s8.bf16 %v521_v63 }
 0x11e   :  { %2596 = vmatpush1.bf16.msra.mxu1 %v853_v4  ;;  %v220_v4 = vld [vmem:[#allocation2 + $0x108] sm:$0xff] }
 0x11f   :  { %3413 = vmatpush1.bf16.msra.mxu0 %v1461_v5  ;;  %2597 = vmatprep.subr.bf16.mxu1 %v856_v6  ;;  %v524_v5 = vld [vmem:[#allocation2 + $0xa88] sm:$0xff]  ;;  %v875_v6 = vunpack.c.h.s8.bf16 %v217_v62  ;;  %v878_v8 = vunpack.c.l.s8.bf16 %v220_v4  ;;  %v227_v62 = vld [vmem:[#allocation2 + $0x140] sm:$0xff] }
 0x120   :  { %3414 = vmatprep.subr.bf16.mxu0 %v1464_v7  ;;  %v1483_v7 = vunpack.c.h.s8.bf16 %v521_v63  ;;  %v1486_v9 = vunpack.c.l.s8.bf16 %v524_v5  ;;  %v531_v63 = vld [vmem:[#allocation2 + $0xac0] sm:$0xff] }
 0x122   :  { %2598 = vmatpush1.bf16.msra.mxu1 %v855_v10  ;;  %v219_v10 = vld [vmem:[#allocation2 + $0x100] sm:$0xff] }
 0x123   :  { %3415 = vmatpush1.bf16.msra.mxu0 %v1463_v11  ;;  %2599 = vmatprep.subr.bf16.mxu1 %v858_v12  ;;  %v523_v11 = vld [vmem:[#allocation2 + $0xa80] sm:$0xff]  ;;  %v877_v14 = vunpack.c.l.s8.bf16 %v219_v10 }
 0x124   :  { %3416 = vmatprep.subr.bf16.mxu0 %v1466_v13  ;;  %v5376_v12 = vld [vmem:[%s6447_s5 + $0x8] ss:$316 sps:$4 sm:$0xff]   ;;  %v5379_v13 = vld [vmem:[%s6447_s5 + $0xa0] ss:$316 sps:$4 sm:$0xff]   ;;  %v1485_v15 = vunpack.c.l.s8.bf16 %v523_v11 }
 0x126   :  { %2600 = vmatpush1.bf16.msra.mxu1 %v857_v16  ;;  %v880_v16 = vunpack.c.h.s8.bf16 %v220_v4  ;;  %v230_v4 = vld [vmem:[#allocation2 + $0x158] sm:$0xff] }
 0x127   :  { %3417 = vmatpush1.bf16.msra.mxu0 %v1465_v17  ;;  %2601 = vmatprep.subr.bf16.mxu1 %v860_v18  ;;  %v1488_v17 = vunpack.c.h.s8.bf16 %v524_v5  ;;  %v222_v18 = vld [vmem:[#allocation2 + $0x118] sm:$0xff] }
 0x128   :  { %3418 = vmatprep.subr.bf16.mxu0 %v1468_v19  ;;  %v526_v19 = vld [vmem:[#allocation2 + $0xa98] sm:$0xff] }
 0x129   :  { %v534_v5 = vld [vmem:[#allocation2 + $0xad8] sm:$0xff] }
 0x12a   :  { %2602 = vmatpush1.bf16.msra.mxu1 %v859_v22  ;;  %v879_v22 = vunpack.c.h.s8.bf16 %v219_v10  ;;  %v229_v10 = vld [vmem:[#allocation2 + $0x150] sm:$0xff] }
 0x12b   :  { %3419 = vmatpush1.bf16.msra.mxu0 %v1467_v23  ;;  %2603 = vmatprep.subr.bf16.mxu1 %v862_v24  ;;  %v1487_v23 = vunpack.c.h.s8.bf16 %v523_v11  ;;  %v882_v24 = vunpack.c.l.s8.bf16 %v222_v18  ;;  %v533_v11 = vld [vmem:[#allocation2 + $0xad0] sm:$0xff] }
 0x12c   :  { %3420 = vmatprep.subr.bf16.mxu0 %v1470_v25  ;;  %v1490_v25 = vunpack.c.l.s8.bf16 %v526_v19 }
 0x12e   :  { %2604 = vmatpush1.bf16.msra.mxu1 %v861_v28  ;;  %v881_v28 = vunpack.c.l.s8.bf16 %v221_v26 }
 0x12f   :  { %3421 = vmatpush1.bf16.msra.mxu0 %v1469_v29  ;;  %2605 = vmatprep.subr.bf16.mxu1 %v864_v30  ;;  %v1489_v29 = vunpack.c.l.s8.bf16 %v525_v27  ;;  %v884_v30 = vunpack.c.h.s8.bf16 %v222_v18  ;;  %v899_v18 = vunpack.c.h.s8.bf16 %v229_v10 }
 0x130   :  { %3422 = vmatprep.subr.bf16.mxu0 %v1472_v31  ;;  %v1492_v31 = vunpack.c.h.s8.bf16 %v526_v19  ;;  %v1507_v19 = vunpack.c.h.s8.bf16 %v533_v11 }
 0x132   :  { %2606 = vmatpush1.bf16.msra.mxu1 %v863_v34  ;;  %v883_v34 = vunpack.c.h.s8.bf16 %v221_v26 }
 0x133   :  { %3423 = vmatpush1.bf16.msra.mxu0 %v1471_v35  ;;  %2607 = vmatprep.subr.bf16.mxu1 %v866_v36  ;;  %v1491_v35 = vunpack.c.h.s8.bf16 %v525_v27  ;;  %v886_v36 = vunpack.c.l.s8.bf16 %v224_v32 }
 0x134   :  { %3424 = vmatprep.subr.bf16.mxu0 %v1474_v37  ;;  %v1494_v37 = vunpack.c.l.s8.bf16 %v528_v33 }
 0x136   :  { %2608 = vmatpush1.bf16.msra.mxu1 %v865_v40  ;;  %v885_v40 = vunpack.c.l.s8.bf16 %v223_v38 }
 0x137   :  { %3425 = vmatpush1.bf16.msra.mxu0 %v1473_v41  ;;  %2609 = vmatprep.subr.bf16.mxu1 %v868_v42  ;;  %v1493_v41 = vunpack.c.l.s8.bf16 %v527_v39  ;;  %v888_v42 = vunpack.c.h.s8.bf16 %v224_v32 }
 0x138   :  { %3426 = vmatprep.subr.bf16.mxu0 %v1476_v43  ;;  %v1496_v43 = vunpack.c.h.s8.bf16 %v528_v33 }
 0x13a   :  { %2610 = vmatpush1.bf16.msra.mxu1 %v867_v46  ;;  %v887_v46 = vunpack.c.h.s8.bf16 %v223_v38 }
 0x13b   :  { %3427 = vmatpush1.bf16.msra.mxu0 %v1475_v47  ;;  %2611 = vmatprep.subr.bf16.mxu1 %v870_v48  ;;  %v1495_v47 = vunpack.c.h.s8.bf16 %v527_v39  ;;  %v890_v48 = vunpack.c.l.s8.bf16 %v226_v44 }
 0x13c   :  { %3428 = vmatprep.subr.bf16.mxu0 %v1478_v49  ;;  %v1498_v49 = vunpack.c.l.s8.bf16 %v530_v45 }
 0x13e   :  { %2612 = vmatpush1.bf16.msra.mxu1 %v869_v52  ;;  %v889_v52 = vunpack.c.l.s8.bf16 %v225_v50 }
 0x13f   :  { %3429 = vmatpush1.bf16.msra.mxu0 %v1477_v53  ;;  %2613 = vmatprep.subr.bf16.mxu1 %v872_v54  ;;  %v1497_v53 = vunpack.c.l.s8.bf16 %v529_v51  ;;  %v892_v54 = vunpack.c.h.s8.bf16 %v226_v44 }
 0x140   :  { %3430 = vmatprep.subr.bf16.mxu0 %v1480_v55  ;;  %v1500_v55 = vunpack.c.h.s8.bf16 %v530_v45 }
 0x142   :  { %2614 = vmatpush1.bf16.msra.mxu1 %v871_v58  ;;  %v891_v58 = vunpack.c.h.s8.bf16 %v225_v50 }
 0x143   :  { %3431 = vmatpush1.bf16.msra.mxu0 %v1479_v59  ;;  %2615 = vmatprep.subr.bf16.mxu1 %v874_v60  ;;  %v1499_v59 = vunpack.c.h.s8.bf16 %v529_v51  ;;  %v894_v60 = vunpack.c.l.s8.bf16 %v228_v56 }
 0x144   :  { %3432 = vmatprep.subr.bf16.mxu0 %v1482_v61  ;;  %v1502_v61 = vunpack.c.l.s8.bf16 %v532_v57 }
 0x146   :  { %2616 = vmatpush1.bf16.msra.mxu1 %v873_v0  ;;  %v893_v0 = vunpack.c.l.s8.bf16 %v227_v62 }
 0x147   :  { %3433 = vmatpush1.bf16.msra.mxu0 %v1481_v1  ;;  %2617 = vmatprep.subr.bf16.mxu1 %v876_v2  ;;  %v1501_v1 = vunpack.c.l.s8.bf16 %v531_v63  ;;  %v896_v2 = vunpack.c.h.s8.bf16 %v228_v56  ;;  %v5390_v56 = vld [vmem:[%s6447_s5 + $0x1c] ss:$316 sps:$4 sm:$0xff]  }
 0x148   :  { %3434 = vmatprep.subr.bf16.mxu0 %v1484_v3  ;;  %v1504_v3 = vunpack.c.h.s8.bf16 %v532_v57  ;;  %v5393_v57 = vld [vmem:[%s6447_s5 + $0xb4] ss:$316 sps:$4 sm:$0xff]  }
 0x14a   :  { %2618 = vmatpush1.bf16.msra.mxu1 %v875_v6  ;;  %v895_v6 = vunpack.c.h.s8.bf16 %v227_v62  ;;  %v237_v62 = vld [vmem:[#allocation2 + $0x190] sm:$0xff] }
 0x14b   :  { %3435 = vmatpush1.bf16.msra.mxu0 %v1483_v7  ;;  %2630 = vmatprep.subr.bf16.mxu1 %v878_v8  ;;  %v1503_v7 = vunpack.c.h.s8.bf16 %v531_v63  ;;  %v898_v8 = vunpack.c.l.s8.bf16 %v230_v4  ;;  %v541_v63 = vld [vmem:[#allocation2 + $0xb10] sm:$0xff] }
 0x14c   :  { %3447 = vmatprep.subr.bf16.mxu0 %v1486_v9  ;;  %v1506_v9 = vunpack.c.l.s8.bf16 %v534_v5 }
 0x14d   :  { %2620 = vmatmul.mubr.bf16.vlgmr.msra.gmra.mrb[0].mxu1 %v5376_v12  ;;  %v897_v12 = vunpack.c.l.s8.bf16 %v229_v10  ;;  %v239_v10 = vld [vmem:[#allocation2 + $0x1a0] sm:$0xff] }
 0x14e   :  { %3437 = vmatmul.mubr.bf16.vlgmr.msra.gmra.mrb[0].mxu0 %v5379_v13  ;;  %2631 = vmatpush1.bf16.msra.mxu1 %v877_v14  ;;  %v1505_v13 = vunpack.c.l.s8.bf16 %v533_v11  ;;  %v900_v14 = vunpack.c.h.s8.bf16 %v230_v4  ;;  %v240_v4 = vld [vmem:[#allocation2 + $0x1a8] sm:$0xff]  ;;  %v543_v11 = vld [vmem:[#allocation2 + $0xb20] sm:$0xff] }
 0x14f   :  { %3448 = vmatpush1.bf16.msra.mxu0 %v1485_v15  ;;  %2632 = vmatprep.subr.bf16.mxu1 %v880_v16  ;;  %v1508_v15 = vunpack.c.h.s8.bf16 %v534_v5  ;;  %v232_v16 = vld [vmem:[#allocation2 + $0x168] sm:$0xff] }
 0x150   :  { %3449 = vmatprep.subr.bf16.mxu0 %v1488_v17  ;;  %2662 = vmatprep.mubr.bf16.mxu1 %v5384_v20  ;;  %v536_v17 = vld [vmem:[#allocation2 + $0xae8] sm:$0xff]  ;;  %v902_v20 = vunpack.c.l.s8.bf16 %v232_v16  ;;  %v904_v26 = vunpack.c.h.s8.bf16 %v232_v16  ;;  %v242_v16 = vld [vmem:[#allocation2 + $0x1b8] sm:$0xff] }
 0x151   :  { %3479 = vmatprep.mubr.bf16.mxu0 %v5387_v21  ;;  %v1510_v21 = vunpack.c.l.s8.bf16 %v536_v17  ;;  %v1512_v27 = vunpack.c.h.s8.bf16 %v536_v17  ;;  %v544_v5 = vld [vmem:[#allocation2 + $0xb28] sm:$0xff]  ;;  %v546_v17 = vld [vmem:[#allocation2 + $0xb38] sm:$0xff] }
 0x152   :  { %2633 = vmatpush1.bf16.msra.mxu1 %v879_v22  ;;  %v231_v22 = vld [vmem:[#allocation2 + $0x160] sm:$0xff] }
 0x153   :  { %3450 = vmatpush1.bf16.msra.mxu0 %v1487_v23  ;;  %2634 = vmatprep.subr.bf16.mxu1 %v882_v24  ;;  %v535_v23 = vld [vmem:[#allocation2 + $0xae0] sm:$0xff]  ;;  %v901_v24 = vunpack.c.l.s8.bf16 %v231_v22 }
 0x154   :  { %3451 = vmatprep.subr.bf16.mxu0 %v1490_v25  ;;  %v1509_v25 = vunpack.c.l.s8.bf16 %v535_v23 }
 0x156   :  { %2635 = vmatpush1.bf16.msra.mxu1 %v881_v28  ;;  %v234_v28 = vld [vmem:[#allocation2 + $0x178] sm:$0xff] }
 0x157   :  { %3452 = vmatpush1.bf16.msra.mxu0 %v1489_v29  ;;  %2636 = vmatprep.subr.bf16.mxu1 %v884_v30  ;;  %v538_v29 = vld [vmem:[#allocation2 + $0xaf8] sm:$0xff]  ;;  %v903_v30 = vunpack.c.h.s8.bf16 %v231_v22  ;;  %v906_v32 = vunpack.c.l.s8.bf16 %v234_v28  ;;  %v908_v38 = vunpack.c.h.s8.bf16 %v234_v28  ;;  %v241_v22 = vld [vmem:[#allocation2 + $0x1b0] sm:$0xff]  ;;  %v244_v28 = vld [vmem:[#allocation2 + $0x1c8] sm:$0xff] }
 0x158   :  { %3453 = vmatprep.subr.bf16.mxu0 %v1492_v31  ;;  %v1511_v31 = vunpack.c.h.s8.bf16 %v535_v23  ;;  %v1514_v33 = vunpack.c.l.s8.bf16 %v538_v29  ;;  %v1516_v39 = vunpack.c.h.s8.bf16 %v538_v29  ;;  %v545_v23 = vld [vmem:[#allocation2 + $0xb30] sm:$0xff]  ;;  %v548_v29 = vld [vmem:[#allocation2 + $0xb48] sm:$0xff] }
 0x15a   :  { %2637 = vmatpush1.bf16.msra.mxu1 %v883_v34  ;;  %v233_v34 = vld [vmem:[#allocation2 + $0x170] sm:$0xff] }
 0x15b   :  { %3454 = vmatpush1.bf16.msra.mxu0 %v1491_v35  ;;  %2638 = vmatprep.subr.bf16.mxu1 %v886_v36  ;;  %v537_v35 = vld [vmem:[#allocation2 + $0xaf0] sm:$0xff]  ;;  %v905_v36 = vunpack.c.l.s8.bf16 %v233_v34 }
 0x15c   :  { %3455 = vmatprep.subr.bf16.mxu0 %v1494_v37  ;;  %v1513_v37 = vunpack.c.l.s8.bf16 %v537_v35 }
 0x15e   :  { %2639 = vmatpush1.bf16.msra.mxu1 %v885_v40  ;;  %v236_v40 = vld [vmem:[#allocation2 + $0x188] sm:$0xff] }
 0x15f   :  { %3456 = vmatpush1.bf16.msra.mxu0 %v1493_v41  ;;  %2640 = vmatprep.subr.bf16.mxu1 %v888_v42  ;;  %v540_v41 = vld [vmem:[#allocation2 + $0xb08] sm:$0xff]  ;;  %v907_v42 = vunpack.c.h.s8.bf16 %v233_v34  ;;  %v910_v44 = vunpack.c.l.s8.bf16 %v236_v40  ;;  %v243_v34 = vld [vmem:[#allocation2 + $0x1c0] sm:$0xff] }
 0x160   :  { %3457 = vmatprep.subr.bf16.mxu0 %v1496_v43  ;;  %v1515_v43 = vunpack.c.h.s8.bf16 %v537_v35  ;;  %v1518_v45 = vunpack.c.l.s8.bf16 %v540_v41  ;;  %v547_v35 = vld [vmem:[#allocation2 + $0xb40] sm:$0xff] }
 0x162   :  { %2641 = vmatpush1.bf16.msra.mxu1 %v887_v46  ;;  %v235_v46 = vld [vmem:[#allocation2 + $0x180] sm:$0xff] }
 0x163   :  { %3458 = vmatpush1.bf16.msra.mxu0 %v1495_v47  ;;  %2642 = vmatprep.subr.bf16.mxu1 %v890_v48  ;;  %v539_v47 = vld [vmem:[#allocation2 + $0xb00] sm:$0xff]  ;;  %v5382_v48 = vld [vmem:[%s6447_s5 + $0x10] ss:$316 sps:$4 sm:$0xff]   ;;  %v909_v50 = vunpack.c.l.s8.bf16 %v235_v46 }
 0x164   :  { %3459 = vmatprep.subr.bf16.mxu0 %v1498_v49  ;;  %v5385_v49 = vld [vmem:[%s6447_s5 + $0xa8] ss:$316 sps:$4 sm:$0xff]   ;;  %v1517_v51 = vunpack.c.l.s8.bf16 %v539_v47 }
 0x166   :  { %2643 = vmatpush1.bf16.msra.mxu1 %v889_v52  ;;  %v912_v52 = vunpack.c.h.s8.bf16 %v236_v40  ;;  %v246_v40 = vld [vmem:[#allocation2 + $0x1d8] sm:$0xff] }
 0x167   :  { %3460 = vmatpush1.bf16.msra.mxu0 %v1497_v53  ;;  %2644 = vmatprep.subr.bf16.mxu1 %v892_v54  ;;  %v1520_v53 = vunpack.c.h.s8.bf16 %v540_v41  ;;  %v238_v54 = vld [vmem:[#allocation2 + $0x198] sm:$0xff] }
 0x168   :  { %3461 = vmatprep.subr.bf16.mxu0 %v1500_v55  ;;  %v542_v55 = vld [vmem:[#allocation2 + $0xb18] sm:$0xff] }
 0x169   :  { %v550_v41 = vld [vmem:[#allocation2 + $0xb58] sm:$0xff] }
 0x16a   :  { %2645 = vmatpush1.bf16.msra.mxu1 %v891_v58  ;;  %v911_v58 = vunpack.c.h.s8.bf16 %v235_v46  ;;  %v245_v46 = vld [vmem:[#allocation2 + $0x1d0] sm:$0xff] }
 0x16b   :  { %3462 = vmatpush1.bf16.msra.mxu0 %v1499_v59  ;;  %2646 = vmatprep.subr.bf16.mxu1 %v894_v60  ;;  %v1519_v59 = vunpack.c.h.s8.bf16 %v539_v47  ;;  %v914_v60 = vunpack.c.l.s8.bf16 %v238_v54  ;;  %v549_v47 = vld [vmem:[#allocation2 + $0xb50] sm:$0xff] }
 0x16c   :  { %3463 = vmatprep.subr.bf16.mxu0 %v1502_v61  ;;  %v1522_v61 = vunpack.c.l.s8.bf16 %v542_v55 }
 0x16e   :  { %2647 = vmatpush1.bf16.msra.mxu1 %v893_v0  ;;  %v913_v0 = vunpack.c.l.s8.bf16 %v237_v62 }
 0x16f   :  { %3464 = vmatpush1.bf16.msra.mxu0 %v1501_v1  ;;  %2648 = vmatprep.subr.bf16.mxu1 %v896_v2  ;;  %v1521_v1 = vunpack.c.l.s8.bf16 %v541_v63  ;;  %v916_v2 = vunpack.c.h.s8.bf16 %v238_v54  ;;  %v931_v54 = vunpack.c.h.s8.bf16 %v245_v46 }
 0x170   :  { %3465 = vmatprep.subr.bf16.mxu0 %v1504_v3  ;;  %v1524_v3 = vunpack.c.h.s8.bf16 %v542_v55  ;;  %v1539_v55 = vunpack.c.h.s8.bf16 %v549_v47 }
 0x172   :  { %2649 = vmatpush1.bf16.msra.mxu1 %v895_v6  ;;  %v915_v6 = vunpack.c.h.s8.bf16 %v237_v62 }
 0x173   :  { %3466 = vmatpush1.bf16.msra.mxu0 %v1503_v7  ;;  %2650 = vmatprep.subr.bf16.mxu1 %v898_v8  ;;  %v1523_v7 = vunpack.c.h.s8.bf16 %v541_v63  ;;  %v918_v8 = vunpack.c.l.s8.bf16 %v240_v4 }
 0x174   :  { %3467 = vmatprep.subr.bf16.mxu0 %v1506_v9  ;;  %v1526_v9 = vunpack.c.l.s8.bf16 %v544_v5 }
 0x176   :  { %2651 = vmatpush1.bf16.msra.mxu1 %v897_v12  ;;  %v917_v12 = vunpack.c.l.s8.bf16 %v239_v10 }
 0x177   :  { %3468 = vmatpush1.bf16.msra.mxu0 %v1505_v13  ;;  %2652 = vmatprep.subr.bf16.mxu1 %v900_v14  ;;  %v1525_v13 = vunpack.c.l.s8.bf16 %v543_v11  ;;  %v920_v14 = vunpack.c.h.s8.bf16 %v240_v4 }
 0x178   :  { %3469 = vmatprep.subr.bf16.mxu0 %v1508_v15  ;;  %v1528_v15 = vunpack.c.h.s8.bf16 %v544_v5 }
 0x17a   :  { %2653 = vmatpush1.bf16.msra.mxu1 %v899_v18  ;;  %v919_v18 = vunpack.c.h.s8.bf16 %v239_v10 }
 0x17b   :  { %3470 = vmatpush1.bf16.msra.mxu0 %v1507_v19  ;;  %2654 = vmatprep.subr.bf16.mxu1 %v902_v20  ;;  %v1527_v19 = vunpack.c.h.s8.bf16 %v543_v11  ;;  %v922_v20 = vunpack.c.l.s8.bf16 %v242_v16 }
 0x17c   :  { %3471 = vmatprep.subr.bf16.mxu0 %v1510_v21  ;;  %v1530_v21 = vunpack.c.l.s8.bf16 %v546_v17 }
 0x17e   :  { %2655 = vmatpush1.bf16.msra.mxu1 %v901_v24  ;;  %v921_v24 = vunpack.c.l.s8.bf16 %v241_v22 }
 0x17f   :  { %3472 = vmatpush1.bf16.msra.mxu0 %v1509_v25  ;;  %2656 = vmatprep.subr.bf16.mxu1 %v904_v26  ;;  %v1529_v25 = vunpack.c.l.s8.bf16 %v545_v23  ;;  %v924_v26 = vunpack.c.h.s8.bf16 %v242_v16 }
 0x180   :  { %3473 = vmatprep.subr.bf16.mxu0 %v1512_v27  ;;  %v1532_v27 = vunpack.c.h.s8.bf16 %v546_v17 }
 0x182   :  { %2657 = vmatpush1.bf16.msra.mxu1 %v903_v30  ;;  %v923_v30 = vunpack.c.h.s8.bf16 %v241_v22 }
 0x183   :  { %3474 = vmatpush1.bf16.msra.mxu0 %v1511_v31  ;;  %2658 = vmatprep.subr.bf16.mxu1 %v906_v32  ;;  %v1531_v31 = vunpack.c.h.s8.bf16 %v545_v23  ;;  %v926_v32 = vunpack.c.l.s8.bf16 %v244_v28 }
 0x184   :  { %3475 = vmatprep.subr.bf16.mxu0 %v1514_v33  ;;  %v1534_v33 = vunpack.c.l.s8.bf16 %v548_v29 }
 0x186   :  { %2659 = vmatpush1.bf16.msra.mxu1 %v905_v36  ;;  %v925_v36 = vunpack.c.l.s8.bf16 %v243_v34 }
 0x187   :  { %3476 = vmatpush1.bf16.msra.mxu0 %v1513_v37  ;;  %2660 = vmatprep.subr.bf16.mxu1 %v908_v38  ;;  %v1533_v37 = vunpack.c.l.s8.bf16 %v547_v35  ;;  %v928_v38 = vunpack.c.h.s8.bf16 %v244_v28  ;;  %v5396_v28 = vld [vmem:[%s6447_s5 + $0x24] ss:$316 sps:$4 sm:$0xff]  }
 0x188   :  { %3477 = vmatprep.subr.bf16.mxu0 %v1516_v39  ;;  %v1536_v39 = vunpack.c.h.s8.bf16 %v548_v29  ;;  %v5399_v29 = vld [vmem:[%s6447_s5 + $0xbc] ss:$316 sps:$4 sm:$0xff]  }
 0x18a   :  { %2661 = vmatpush1.bf16.msra.mxu1 %v907_v42  ;;  %v927_v42 = vunpack.c.h.s8.bf16 %v243_v34  ;;  %v253_v34 = vld [vmem:[#allocation2 + $0x210] sm:$0xff] }
 0x18b   :  { %3478 = vmatpush1.bf16.msra.mxu0 %v1515_v43  ;;  %2673 = vmatprep.subr.bf16.mxu1 %v910_v44  ;;  %v1535_v43 = vunpack.c.h.s8.bf16 %v547_v35  ;;  %v930_v44 = vunpack.c.l.s8.bf16 %v246_v40  ;;  %v557_v35 = vld [vmem:[#allocation2 + $0xb90] sm:$0xff] }
 0x18c   :  { %3490 = vmatprep.subr.bf16.mxu0 %v1518_v45  ;;  %v1538_v45 = vunpack.c.l.s8.bf16 %v550_v41 }
 0x18d   :  { %2663 = vmatmul.mubr.bf16.vlgmr.msra.gmra.mrb[0].mxu1 %v5382_v48  ;;  %v929_v48 = vunpack.c.l.s8.bf16 %v245_v46  ;;  %v255_v46 = vld [vmem:[#allocation2 + $0x220] sm:$0xff] }
 0x18e   :  { %3480 = vmatmul.mubr.bf16.vlgmr.msra.gmra.mrb[0].mxu0 %v5385_v49  ;;  %2674 = vmatpush1.bf16.msra.mxu1 %v909_v50  ;;  %v1537_v49 = vunpack.c.l.s8.bf16 %v549_v47  ;;  %v932_v50 = vunpack.c.h.s8.bf16 %v246_v40  ;;  %v256_v40 = vld [vmem:[#allocation2 + $0x228] sm:$0xff]  ;;  %v559_v47 = vld [vmem:[#allocation2 + $0xba0] sm:$0xff] }
 0x18f   :  { %3491 = vmatpush1.bf16.msra.mxu0 %v1517_v51  ;;  %2675 = vmatprep.subr.bf16.mxu1 %v912_v52  ;;  %v1540_v51 = vunpack.c.h.s8.bf16 %v550_v41  ;;  %v248_v52 = vld [vmem:[#allocation2 + $0x1e8] sm:$0xff] }
 0x190   :  { %3492 = vmatprep.subr.bf16.mxu0 %v1520_v53  ;;  %2705 = vmatprep.mubr.bf16.mxu1 %v5390_v56  ;;  %v552_v53 = vld [vmem:[#allocation2 + $0xb68] sm:$0xff]  ;;  %v934_v56 = vunpack.c.l.s8.bf16 %v248_v52  ;;  %v936_v62 = vunpack.c.h.s8.bf16 %v248_v52  ;;  %v258_v52 = vld [vmem:[#allocation2 + $0x238] sm:$0xff] }
 0x191   :  { %3522 = vmatprep.mubr.bf16.mxu0 %v5393_v57  ;;  %v1542_v57 = vunpack.c.l.s8.bf16 %v552_v53  ;;  %v1544_v63 = vunpack.c.h.s8.bf16 %v552_v53  ;;  %v560_v41 = vld [vmem:[#allocation2 + $0xba8] sm:$0xff]  ;;  %v562_v53 = vld [vmem:[#allocation2 + $0xbb8] sm:$0xff] }
 0x192   :  { %2676 = vmatpush1.bf16.msra.mxu1 %v911_v58  ;;  %v247_v58 = vld [vmem:[#allocation2 + $0x1e0] sm:$0xff] }
 0x193   :  { %3493 = vmatpush1.bf16.msra.mxu0 %v1519_v59  ;;  %2677 = vmatprep.subr.bf16.mxu1 %v914_v60  ;;  %v551_v59 = vld [vmem:[#allocation2 + $0xb60] sm:$0xff]  ;;  %v933_v60 = vunpack.c.l.s8.bf16 %v247_v58 }
 0x194   :  { %3494 = vmatprep.subr.bf16.mxu0 %v1522_v61  ;;  %v1541_v61 = vunpack.c.l.s8.bf16 %v551_v59 }
 0x196   :  { %2678 = vmatpush1.bf16.msra.mxu1 %v913_v0  ;;  %v250_v0 = vld [vmem:[#allocation2 + $0x1f8] sm:$0xff] }
 0x197   :  { %3495 = vmatpush1.bf16.msra.mxu0 %v1521_v1  ;;  %2679 = vmatprep.subr.bf16.mxu1 %v916_v2  ;;  %v554_v1 = vld [vmem:[#allocation2 + $0xb78] sm:$0xff]  ;;  %v935_v2 = vunpack.c.h.s8.bf16 %v247_v58  ;;  %v938_v4 = vunpack.c.l.s8.bf16 %v250_v0  ;;  %v940_v10 = vunpack.c.h.s8.bf16 %v250_v0  ;;  %v257_v58 = vld [vmem:[#allocation2 + $0x230] sm:$0xff]  ;;  %v260_v0 = vld [vmem:[#allocation2 + $0x248] sm:$0xff] }
 0x198   :  { %3496 = vmatprep.subr.bf16.mxu0 %v1524_v3  ;;  %v1543_v3 = vunpack.c.h.s8.bf16 %v551_v59  ;;  %v1546_v5 = vunpack.c.l.s8.bf16 %v554_v1  ;;  %v1548_v11 = vunpack.c.h.s8.bf16 %v554_v1  ;;  %v561_v59 = vld [vmem:[#allocation2 + $0xbb0] sm:$0xff]  ;;  %v564_v1 = vld [vmem:[#allocation2 + $0xbc8] sm:$0xff] }
 0x19a   :  { %2680 = vmatpush1.bf16.msra.mxu1 %v915_v6  ;;  %v249_v6 = vld [vmem:[#allocation2 + $0x1f0] sm:$0xff] }
 0x19b   :  { %3497 = vmatpush1.bf16.msra.mxu0 %v1523_v7  ;;  %2681 = vmatprep.subr.bf16.mxu1 %v918_v8  ;;  %v553_v7 = vld [vmem:[#allocation2 + $0xb70] sm:$0xff]  ;;  %v937_v8 = vunpack.c.l.s8.bf16 %v249_v6 }
 0x19c   :  { %3498 = vmatprep.subr.bf16.mxu0 %v1526_v9  ;;  %v1545_v9 = vunpack.c.l.s8.bf16 %v553_v7 }
 0x19e   :  { %2682 = vmatpush1.bf16.msra.mxu1 %v917_v12  ;;  %v252_v12 = vld [vmem:[#allocation2 + $0x208] sm:$0xff] }
 0x19f   :  { %3499 = vmatpush1.bf16.msra.mxu0 %v1525_v13  ;;  %2683 = vmatprep.subr.bf16.mxu1 %v920_v14  ;;  %v556_v13 = vld [vmem:[#allocation2 + $0xb88] sm:$0xff]  ;;  %v939_v14 = vunpack.c.h.s8.bf16 %v249_v6  ;;  %v942_v16 = vunpack.c.l.s8.bf16 %v252_v12  ;;  %v259_v6 = vld [vmem:[#allocation2 + $0x240] sm:$0xff] }
 0x1a0   :  { %3500 = vmatprep.subr.bf16.mxu0 %v1528_v15  ;;  %v1547_v15 = vunpack.c.h.s8.bf16 %v553_v7  ;;  %v1550_v17 = vunpack.c.l.s8.bf16 %v556_v13  ;;  %v563_v7 = vld [vmem:[#allocation2 + $0xbc0] sm:$0xff] }
 0x1a2   :  { %2684 = vmatpush1.bf16.msra.mxu1 %v919_v18  ;;  %v251_v18 = vld [vmem:[#allocation2 + $0x200] sm:$0xff] }
 0x1a3   :  { %3501 = vmatpush1.bf16.msra.mxu0 %v1527_v19  ;;  %2685 = vmatprep.subr.bf16.mxu1 %v922_v20  ;;  %v555_v19 = vld [vmem:[#allocation2 + $0xb80] sm:$0xff]  ;;  %v5388_v20 = vld [vmem:[%s6447_s5 + $0x18] ss:$316 sps:$4 sm:$0xff]   ;;  %v941_v22 = vunpack.c.l.s8.bf16 %v251_v18 }
 0x1a4   :  { %3502 = vmatprep.subr.bf16.mxu0 %v1530_v21  ;;  %v5391_v21 = vld [vmem:[%s6447_s5 + $0xb0] ss:$316 sps:$4 sm:$0xff]   ;;  %v1549_v23 = vunpack.c.l.s8.bf16 %v555_v19 }
 0x1a6   :  { %2686 = vmatpush1.bf16.msra.mxu1 %v921_v24  ;;  %v944_v24 = vunpack.c.h.s8.bf16 %v252_v12  ;;  %v262_v12 = vld [vmem:[#allocation2 + $0x258] sm:$0xff] }
 0x1a7   :  { %3503 = vmatpush1.bf16.msra.mxu0 %v1529_v25  ;;  %2687 = vmatprep.subr.bf16.mxu1 %v924_v26  ;;  %v1552_v25 = vunpack.c.h.s8.bf16 %v556_v13  ;;  %v254_v26 = vld [vmem:[#allocation2 + $0x218] sm:$0xff] }
 0x1a8   :  { %3504 = vmatprep.subr.bf16.mxu0 %v1532_v27  ;;  %v558_v27 = vld [vmem:[#allocation2 + $0xb98] sm:$0xff] }
 0x1a9   :  { %v566_v13 = vld [vmem:[#allocation2 + $0xbd8] sm:$0xff] }
 0x1aa   :  { %2688 = vmatpush1.bf16.msra.mxu1 %v923_v30  ;;  %v943_v30 = vunpack.c.h.s8.bf16 %v251_v18  ;;  %v261_v18 = vld [vmem:[#allocation2 + $0x250] sm:$0xff] }
 0x1ab   :  { %3505 = vmatpush1.bf16.msra.mxu0 %v1531_v31  ;;  %2689 = vmatprep.subr.bf16.mxu1 %v926_v32  ;;  %v1551_v31 = vunpack.c.h.s8.bf16 %v555_v19  ;;  %v946_v32 = vunpack.c.l.s8.bf16 %v254_v26  ;;  %v565_v19 = vld [vmem:[#allocation2 + $0xbd0] sm:$0xff] }
 0x1ac   :  { %3506 = vmatprep.subr.bf16.mxu0 %v1534_v33  ;;  %v1554_v33 = vunpack.c.l.s8.bf16 %v558_v27 }
 0x1ae   :  { %2690 = vmatpush1.bf16.msra.mxu1 %v925_v36  ;;  %v945_v36 = vunpack.c.l.s8.bf16 %v253_v34 }
 0x1af   :  { %3507 = vmatpush1.bf16.msra.mxu0 %v1533_v37  ;;  %2691 = vmatprep.subr.bf16.mxu1 %v928_v38  ;;  %v1553_v37 = vunpack.c.l.s8.bf16 %v557_v35  ;;  %v948_v38 = vunpack.c.h.s8.bf16 %v254_v26  ;;  %v963_v26 = vunpack.c.h.s8.bf16 %v261_v18 }
 0x1b0   :  { %3508 = vmatprep.subr.bf16.mxu0 %v1536_v39  ;;  %v1556_v39 = vunpack.c.h.s8.bf16 %v558_v27  ;;  %v1571_v27 = vunpack.c.h.s8.bf16 %v565_v19 }
 0x1b2   :  { %2692 = vmatpush1.bf16.msra.mxu1 %v927_v42  ;;  %v947_v42 = vunpack.c.h.s8.bf16 %v253_v34 }
 0x1b3   :  { %3509 = vmatpush1.bf16.msra.mxu0 %v1535_v43  ;;  %2693 = vmatprep.subr.bf16.mxu1 %v930_v44  ;;  %v1555_v43 = vunpack.c.h.s8.bf16 %v557_v35  ;;  %v950_v44 = vunpack.c.l.s8.bf16 %v256_v40 }
 0x1b4   :  { %3510 = vmatprep.subr.bf16.mxu0 %v1538_v45  ;;  %v1558_v45 = vunpack.c.l.s8.bf16 %v560_v41 }
 0x1b6   :  { %2694 = vmatpush1.bf16.msra.mxu1 %v929_v48  ;;  %v949_v48 = vunpack.c.l.s8.bf16 %v255_v46 }
 0x1b7   :  { %3511 = vmatpush1.bf16.msra.mxu0 %v1537_v49  ;;  %2695 = vmatprep.subr.bf16.mxu1 %v932_v50  ;;  %v1557_v49 = vunpack.c.l.s8.bf16 %v559_v47  ;;  %v952_v50 = vunpack.c.h.s8.bf16 %v256_v40 }
 0x1b8   :  { %3512 = vmatprep.subr.bf16.mxu0 %v1540_v51  ;;  %v1560_v51 = vunpack.c.h.s8.bf16 %v560_v41 }
 0x1ba   :  { %2696 = vmatpush1.bf16.msra.mxu1 %v931_v54  ;;  %v951_v54 = vunpack.c.h.s8.bf16 %v255_v46 }
 0x1bb   :  { %3513 = vmatpush1.bf16.msra.mxu0 %v1539_v55  ;;  %2697 = vmatprep.subr.bf16.mxu1 %v934_v56  ;;  %v1559_v55 = vunpack.c.h.s8.bf16 %v559_v47  ;;  %v954_v56 = vunpack.c.l.s8.bf16 %v258_v52 }
 0x1bc   :  { %3514 = vmatprep.subr.bf16.mxu0 %v1542_v57  ;;  %v1562_v57 = vunpack.c.l.s8.bf16 %v562_v53 }
 0x1be   :  { %2698 = vmatpush1.bf16.msra.mxu1 %v933_v60  ;;  %v953_v60 = vunpack.c.l.s8.bf16 %v257_v58 }
 0x1bf   :  { %3515 = vmatpush1.bf16.msra.mxu0 %v1541_v61  ;;  %2699 = vmatprep.subr.bf16.mxu1 %v936_v62  ;;  %v1561_v61 = vunpack.c.l.s8.bf16 %v561_v59  ;;  %v956_v62 = vunpack.c.h.s8.bf16 %v258_v52 }
 0x1c0   :  { %3516 = vmatprep.subr.bf16.mxu0 %v1544_v63  ;;  %v1564_v63 = vunpack.c.h.s8.bf16 %v562_v53 }
 0x1c2   :  { %2700 = vmatpush1.bf16.msra.mxu1 %v935_v2  ;;  %v955_v2 = vunpack.c.h.s8.bf16 %v257_v58 }
 0x1c3   :  { %3517 = vmatpush1.bf16.msra.mxu0 %v1543_v3  ;;  %2701 = vmatprep.subr.bf16.mxu1 %v938_v4  ;;  %v1563_v3 = vunpack.c.h.s8.bf16 %v561_v59  ;;  %v958_v4 = vunpack.c.l.s8.bf16 %v260_v0 }
 0x1c4   :  { %3518 = vmatprep.subr.bf16.mxu0 %v1546_v5  ;;  %v1566_v5 = vunpack.c.l.s8.bf16 %v564_v1 }
 0x1c6   :  { %2702 = vmatpush1.bf16.msra.mxu1 %v937_v8  ;;  %v957_v8 = vunpack.c.l.s8.bf16 %v259_v6 }
 0x1c7   :  { %3519 = vmatpush1.bf16.msra.mxu0 %v1545_v9  ;;  %2703 = vmatprep.subr.bf16.mxu1 %v940_v10  ;;  %v1565_v9 = vunpack.c.l.s8.bf16 %v563_v7  ;;  %v960_v10 = vunpack.c.h.s8.bf16 %v260_v0  ;;  %v5402_v0 = vld [vmem:[%s6447_s5 + $0x2c] ss:$316 sps:$4 sm:$0xff]  }
 0x1c8   :  { %3520 = vmatprep.subr.bf16.mxu0 %v1548_v11  ;;  %v1568_v11 = vunpack.c.h.s8.bf16 %v564_v1  ;;  %v5405_v1 = vld [vmem:[%s6447_s5 + $0xc4] ss:$316 sps:$4 sm:$0xff]  }
 0x1ca   :  { %2704 = vmatpush1.bf16.msra.mxu1 %v939_v14  ;;  %v959_v14 = vunpack.c.h.s8.bf16 %v259_v6  ;;  %v269_v6 = vld [vmem:[#allocation2 + $0x290] sm:$0xff] }
 0x1cb   :  { %3521 = vmatpush1.bf16.msra.mxu0 %v1547_v15  ;;  %2716 = vmatprep.subr.bf16.mxu1 %v942_v16  ;;  %v1567_v15 = vunpack.c.h.s8.bf16 %v563_v7  ;;  %v962_v16 = vunpack.c.l.s8.bf16 %v262_v12  ;;  %v573_v7 = vld [vmem:[#allocation2 + $0xc10] sm:$0xff] }
 0x1cc   :  { %3533 = vmatprep.subr.bf16.mxu0 %v1550_v17  ;;  %v1570_v17 = vunpack.c.l.s8.bf16 %v566_v13 }
 0x1cd   :  { %2706 = vmatmul.mubr.bf16.vlgmr.msra.gmra.mrb[0].mxu1 %v5388_v20  ;;  %v961_v20 = vunpack.c.l.s8.bf16 %v261_v18  ;;  %v271_v18 = vld [vmem:[#allocation2 + $0x2a0] sm:$0xff] }
 0x1ce   :  { %3523 = vmatmul.mubr.bf16.vlgmr.msra.gmra.mrb[0].mxu0 %v5391_v21  ;;  %2717 = vmatpush1.bf16.msra.mxu1 %v941_v22  ;;  %v1569_v21 = vunpack.c.l.s8.bf16 %v565_v19  ;;  %v964_v22 = vunpack.c.h.s8.bf16 %v262_v12  ;;  %v272_v12 = vld [vmem:[#allocation2 + $0x2a8] sm:$0xff]  ;;  %v575_v19 = vld [vmem:[#allocation2 + $0xc20] sm:$0xff] }
 0x1cf   :  { %3534 = vmatpush1.bf16.msra.mxu0 %v1549_v23  ;;  %2718 = vmatprep.subr.bf16.mxu1 %v944_v24  ;;  %v1572_v23 = vunpack.c.h.s8.bf16 %v566_v13  ;;  %v264_v24 = vld [vmem:[#allocation2 + $0x268] sm:$0xff] }
 0x1d0   :  { %3535 = vmatprep.subr.bf16.mxu0 %v1552_v25  ;;  %2748 = vmatprep.mubr.bf16.mxu1 %v5396_v28  ;;  %v568_v25 = vld [vmem:[#allocation2 + $0xbe8] sm:$0xff]  ;;  %v966_v28 = vunpack.c.l.s8.bf16 %v264_v24  ;;  %v968_v34 = vunpack.c.h.s8.bf16 %v264_v24  ;;  %v274_v24 = vld [vmem:[#allocation2 + $0x2b8] sm:$0xff] }
 0x1d1   :  { %3565 = vmatprep.mubr.bf16.mxu0 %v5399_v29  ;;  %v1574_v29 = vunpack.c.l.s8.bf16 %v568_v25  ;;  %v1576_v35 = vunpack.c.h.s8.bf16 %v568_v25  ;;  %v576_v13 = vld [vmem:[#allocation2 + $0xc28] sm:$0xff]  ;;  %v578_v25 = vld [vmem:[#allocation2 + $0xc38] sm:$0xff] }
 0x1d2   :  { %2719 = vmatpush1.bf16.msra.mxu1 %v943_v30  ;;  %v263_v30 = vld [vmem:[#allocation2 + $0x260] sm:$0xff] }
 0x1d3   :  { %3536 = vmatpush1.bf16.msra.mxu0 %v1551_v31  ;;  %2720 = vmatprep.subr.bf16.mxu1 %v946_v32  ;;  %v567_v31 = vld [vmem:[#allocation2 + $0xbe0] sm:$0xff]  ;;  %v965_v32 = vunpack.c.l.s8.bf16 %v263_v30 }
 0x1d4   :  { %3537 = vmatprep.subr.bf16.mxu0 %v1554_v33  ;;  %v1573_v33 = vunpack.c.l.s8.bf16 %v567_v31 }
 0x1d6   :  { %2721 = vmatpush1.bf16.msra.mxu1 %v945_v36  ;;  %v266_v36 = vld [vmem:[#allocation2 + $0x278] sm:$0xff] }
 0x1d7   :  { %3538 = vmatpush1.bf16.msra.mxu0 %v1553_v37  ;;  %2722 = vmatprep.subr.bf16.mxu1 %v948_v38  ;;  %v570_v37 = vld [vmem:[#allocation2 + $0xbf8] sm:$0xff]  ;;  %v967_v38 = vunpack.c.h.s8.bf16 %v263_v30  ;;  %v970_v40 = vunpack.c.l.s8.bf16 %v266_v36  ;;  %v972_v46 = vunpack.c.h.s8.bf16 %v266_v36  ;;  %v273_v30 = vld [vmem:[#allocation2 + $0x2b0] sm:$0xff]  ;;  %v276_v36 = vld [vmem:[#allocation2 + $0x2c8] sm:$0xff] }
 0x1d8   :  { %3539 = vmatprep.subr.bf16.mxu0 %v1556_v39  ;;  %v1575_v39 = vunpack.c.h.s8.bf16 %v567_v31  ;;  %v1578_v41 = vunpack.c.l.s8.bf16 %v570_v37  ;;  %v1580_v47 = vunpack.c.h.s8.bf16 %v570_v37  ;;  %v577_v31 = vld [vmem:[#allocation2 + $0xc30] sm:$0xff]  ;;  %v580_v37 = vld [vmem:[#allocation2 + $0xc48] sm:$0xff] }
 0x1da   :  { %2723 = vmatpush1.bf16.msra.mxu1 %v947_v42  ;;  %v265_v42 = vld [vmem:[#allocation2 + $0x270] sm:$0xff] }
 0x1db   :  { %3540 = vmatpush1.bf16.msra.mxu0 %v1555_v43  ;;  %2724 = vmatprep.subr.bf16.mxu1 %v950_v44  ;;  %v569_v43 = vld [vmem:[#allocation2 + $0xbf0] sm:$0xff]  ;;  %v969_v44 = vunpack.c.l.s8.bf16 %v265_v42 }
 0x1dc   :  { %3541 = vmatprep.subr.bf16.mxu0 %v1558_v45  ;;  %v1577_v45 = vunpack.c.l.s8.bf16 %v569_v43 }
 0x1de   :  { %2725 = vmatpush1.bf16.msra.mxu1 %v949_v48  ;;  %v268_v48 = vld [vmem:[#allocation2 + $0x288] sm:$0xff] }
 0x1df   :  { %3542 = vmatpush1.bf16.msra.mxu0 %v1557_v49  ;;  %2726 = vmatprep.subr.bf16.mxu1 %v952_v50  ;;  %v572_v49 = vld [vmem:[#allocation2 + $0xc08] sm:$0xff]  ;;  %v971_v50 = vunpack.c.h.s8.bf16 %v265_v42  ;;  %v974_v52 = vunpack.c.l.s8.bf16 %v268_v48  ;;  %v275_v42 = vld [vmem:[#allocation2 + $0x2c0] sm:$0xff] }
 0x1e0   :  { %3543 = vmatprep.subr.bf16.mxu0 %v1560_v51  ;;  %v1579_v51 = vunpack.c.h.s8.bf16 %v569_v43  ;;  %v1582_v53 = vunpack.c.l.s8.bf16 %v572_v49  ;;  %v579_v43 = vld [vmem:[#allocation2 + $0xc40] sm:$0xff] }
 0x1e2   :  { %2727 = vmatpush1.bf16.msra.mxu1 %v951_v54  ;;  %v267_v54 = vld [vmem:[#allocation2 + $0x280] sm:$0xff] }
 0x1e3   :  { %3544 = vmatpush1.bf16.msra.mxu0 %v1559_v55  ;;  %2728 = vmatprep.subr.bf16.mxu1 %v954_v56  ;;  %v571_v55 = vld [vmem:[#allocation2 + $0xc00] sm:$0xff]  ;;  %v973_v58 = vunpack.c.l.s8.bf16 %v267_v54 }
 0x1e4   :  { %3545 = vmatprep.subr.bf16.mxu0 %v1562_v57  ;;  %v5394_v56 = vld [vmem:[%s6447_s5 + $0x20] ss:$316 sps:$4 sm:$0xff]   ;;  %v5397_v57 = vld [vmem:[%s6447_s5 + $0xb8] ss:$316 sps:$4 sm:$0xff]   ;;  %v1581_v59 = vunpack.c.l.s8.bf16 %v571_v55 }
 0x1e6   :  { %2729 = vmatpush1.bf16.msra.mxu1 %v953_v60  ;;  %v976_v60 = vunpack.c.h.s8.bf16 %v268_v48  ;;  %v278_v48 = vld [vmem:[#allocation2 + $0x2d8] sm:$0xff] }
 0x1e7   :  { %3546 = vmatpush1.bf16.msra.mxu0 %v1561_v61  ;;  %2730 = vmatprep.subr.bf16.mxu1 %v956_v62  ;;  %v1584_v61 = vunpack.c.h.s8.bf16 %v572_v49  ;;  %v270_v62 = vld [vmem:[#allocation2 + $0x298] sm:$0xff] }
 0x1e8   :  { %3547 = vmatprep.subr.bf16.mxu0 %v1564_v63  ;;  %v574_v63 = vld [vmem:[#allocation2 + $0xc18] sm:$0xff] }
 0x1e9   :  { %v582_v49 = vld [vmem:[#allocation2 + $0xc58] sm:$0xff] }
 0x1ea   :  { %2731 = vmatpush1.bf16.msra.mxu1 %v955_v2  ;;  %v975_v2 = vunpack.c.h.s8.bf16 %v267_v54  ;;  %v277_v54 = vld [vmem:[#allocation2 + $0x2d0] sm:$0xff] }
 0x1eb   :  { %3548 = vmatpush1.bf16.msra.mxu0 %v1563_v3  ;;  %2732 = vmatprep.subr.bf16.mxu1 %v958_v4  ;;  %v1583_v3 = vunpack.c.h.s8.bf16 %v571_v55  ;;  %v978_v4 = vunpack.c.l.s8.bf16 %v270_v62  ;;  %v581_v55 = vld [vmem:[#allocation2 + $0xc50] sm:$0xff] }
 0x1ec   :  { %3549 = vmatprep.subr.bf16.mxu0 %v1566_v5  ;;  %v1586_v5 = vunpack.c.l.s8.bf16 %v574_v63 }
 0x1ee   :  { %2733 = vmatpush1.bf16.msra.mxu1 %v957_v8  ;;  %v977_v8 = vunpack.c.l.s8.bf16 %v269_v6 }
 0x1ef   :  { %3550 = vmatpush1.bf16.msra.mxu0 %v1565_v9  ;;  %2734 = vmatprep.subr.bf16.mxu1 %v960_v10  ;;  %v1585_v9 = vunpack.c.l.s8.bf16 %v573_v7  ;;  %v980_v10 = vunpack.c.h.s8.bf16 %v270_v62  ;;  %v995_v62 = vunpack.c.h.s8.bf16 %v277_v54 }
 0x1f0   :  { %3551 = vmatprep.subr.bf16.mxu0 %v1568_v11  ;;  %v1588_v11 = vunpack.c.h.s8.bf16 %v574_v63  ;;  %v1603_v63 = vunpack.c.h.s8.bf16 %v581_v55 }
 0x1f2   :  { %2735 = vmatpush1.bf16.msra.mxu1 %v959_v14  ;;  %v979_v14 = vunpack.c.h.s8.bf16 %v269_v6 }
 0x1f3   :  { %3552 = vmatpush1.bf16.msra.mxu0 %v1567_v15  ;;  %2736 = vmatprep.subr.bf16.mxu1 %v962_v16  ;;  %v1587_v15 = vunpack.c.h.s8.bf16 %v573_v7  ;;  %v982_v16 = vunpack.c.l.s8.bf16 %v272_v12 }
 0x1f4   :  { %3553 = vmatprep.subr.bf16.mxu0 %v1570_v17  ;;  %v1590_v17 = vunpack.c.l.s8.bf16 %v576_v13 }
 0x1f6   :  { %2737 = vmatpush1.bf16.msra.mxu1 %v961_v20  ;;  %v981_v20 = vunpack.c.l.s8.bf16 %v271_v18 }
 0x1f7   :  { %3554 = vmatpush1.bf16.msra.mxu0 %v1569_v21  ;;  %2738 = vmatprep.subr.bf16.mxu1 %v964_v22  ;;  %v1589_v21 = vunpack.c.l.s8.bf16 %v575_v19  ;;  %v984_v22 = vunpack.c.h.s8.bf16 %v272_v12 }
 0x1f8   :  { %3555 = vmatprep.subr.bf16.mxu0 %v1572_v23  ;;  %v1592_v23 = vunpack.c.h.s8.bf16 %v576_v13 }
 0x1fa   :  { %2739 = vmatpush1.bf16.msra.mxu1 %v963_v26  ;;  %v983_v26 = vunpack.c.h.s8.bf16 %v271_v18 }
 0x1fb   :  { %3556 = vmatpush1.bf16.msra.mxu0 %v1571_v27  ;;  %2740 = vmatprep.subr.bf16.mxu1 %v966_v28  ;;  %v1591_v27 = vunpack.c.h.s8.bf16 %v575_v19  ;;  %v986_v28 = vunpack.c.l.s8.bf16 %v274_v24 }
 0x1fc   :  { %3557 = vmatprep.subr.bf16.mxu0 %v1574_v29  ;;  %v1594_v29 = vunpack.c.l.s8.bf16 %v578_v25 }
 0x1fe   :  { %2741 = vmatpush1.bf16.msra.mxu1 %v965_v32  ;;  %v985_v32 = vunpack.c.l.s8.bf16 %v273_v30 }
 0x1ff   :  { %3558 = vmatpush1.bf16.msra.mxu0 %v1573_v33  ;;  %2742 = vmatprep.subr.bf16.mxu1 %v968_v34  ;;  %v1593_v33 = vunpack.c.l.s8.bf16 %v577_v31  ;;  %v988_v34 = vunpack.c.h.s8.bf16 %v274_v24 }
 0x200   :  { %3559 = vmatprep.subr.bf16.mxu0 %v1576_v35  ;;  %v1596_v35 = vunpack.c.h.s8.bf16 %v578_v25 }
 0x202   :  { %2743 = vmatpush1.bf16.msra.mxu1 %v967_v38  ;;  %v987_v38 = vunpack.c.h.s8.bf16 %v273_v30 }
 0x203   :  { %3560 = vmatpush1.bf16.msra.mxu0 %v1575_v39  ;;  %2744 = vmatprep.subr.bf16.mxu1 %v970_v40  ;;  %v1595_v39 = vunpack.c.h.s8.bf16 %v577_v31  ;;  %v990_v40 = vunpack.c.l.s8.bf16 %v276_v36 }
 0x204   :  { %3561 = vmatprep.subr.bf16.mxu0 %v1578_v41  ;;  %v1598_v41 = vunpack.c.l.s8.bf16 %v580_v37 }
 0x206   :  { %2745 = vmatpush1.bf16.msra.mxu1 %v969_v44  ;;  %v989_v44 = vunpack.c.l.s8.bf16 %v275_v42 }
 0x207   :  { %3562 = vmatpush1.bf16.msra.mxu0 %v1577_v45  ;;  %2746 = vmatprep.subr.bf16.mxu1 %v972_v46  ;;  %v1597_v45 = vunpack.c.l.s8.bf16 %v579_v43  ;;  %v992_v46 = vunpack.c.h.s8.bf16 %v276_v36  ;;  %v5408_v36 = vld [vmem:[%s6447_s5 + $0x34] ss:$316 sps:$4 sm:$0xff]  }
 0x208   :  { %3563 = vmatprep.subr.bf16.mxu0 %v1580_v47  ;;  %v1600_v47 = vunpack.c.h.s8.bf16 %v580_v37  ;;  %v5411_v37 = vld [vmem:[%s6447_s5 + $0xcc] ss:$316 sps:$4 sm:$0xff]  }
 0x20a   :  { %2747 = vmatpush1.bf16.msra.mxu1 %v971_v50  ;;  %v991_v50 = vunpack.c.h.s8.bf16 %v275_v42  ;;  %v285_v42 = vld [vmem:[#allocation2 + $0x310] sm:$0xff] }
 0x20b   :  { %3564 = vmatpush1.bf16.msra.mxu0 %v1579_v51  ;;  %2759 = vmatprep.subr.bf16.mxu1 %v974_v52  ;;  %v1599_v51 = vunpack.c.h.s8.bf16 %v579_v43  ;;  %v994_v52 = vunpack.c.l.s8.bf16 %v278_v48  ;;  %v589_v43 = vld [vmem:[#allocation2 + $0xc90] sm:$0xff] }
 0x20c   :  { %3576 = vmatprep.subr.bf16.mxu0 %v1582_v53  ;;  %v1602_v53 = vunpack.c.l.s8.bf16 %v582_v49 }
 0x20d   :  { %2749 = vmatmul.mubr.bf16.vlgmr.msra.gmra.mrb[0].mxu1 %v5394_v56  ;;  %v993_v56 = vunpack.c.l.s8.bf16 %v277_v54  ;;  %v287_v54 = vld [vmem:[#allocation2 + $0x320] sm:$0xff] }
 0x20e   :  { %3566 = vmatmul.mubr.bf16.vlgmr.msra.gmra.mrb[0].mxu0 %v5397_v57  ;;  %2760 = vmatpush1.bf16.msra.mxu1 %v973_v58  ;;  %v1601_v57 = vunpack.c.l.s8.bf16 %v581_v55  ;;  %v996_v58 = vunpack.c.h.s8.bf16 %v278_v48  ;;  %v288_v48 = vld [vmem:[#allocation2 + $0x328] sm:$0xff]  ;;  %v591_v55 = vld [vmem:[#allocation2 + $0xca0] sm:$0xff] }
 0x20f   :  { %3577 = vmatpush1.bf16.msra.mxu0 %v1581_v59  ;;  %2761 = vmatprep.subr.bf16.mxu1 %v976_v60  ;;  %v1604_v59 = vunpack.c.h.s8.bf16 %v582_v49  ;;  %v280_v60 = vld [vmem:[#allocation2 + $0x2e8] sm:$0xff] }
 0x210   :  { %3578 = vmatprep.subr.bf16.mxu0 %v1584_v61  ;;  %2791 = vmatprep.mubr.bf16.mxu1 %v5402_v0  ;;  %v584_v61 = vld [vmem:[#allocation2 + $0xc68] sm:$0xff]  ;;  %v998_v0 = vunpack.c.l.s8.bf16 %v280_v60  ;;  %v1000_v6 = vunpack.c.h.s8.bf16 %v280_v60  ;;  %v290_v60 = vld [vmem:[#allocation2 + $0x338] sm:$0xff] }
 0x211   :  { %3608 = vmatprep.mubr.bf16.mxu0 %v5405_v1  ;;  %v1606_v1 = vunpack.c.l.s8.bf16 %v584_v61  ;;  %v1608_v7 = vunpack.c.h.s8.bf16 %v584_v61  ;;  %v592_v49 = vld [vmem:[#allocation2 + $0xca8] sm:$0xff]  ;;  %v594_v61 = vld [vmem:[#allocation2 + $0xcb8] sm:$0xff] }
 0x212   :  { %2762 = vmatpush1.bf16.msra.mxu1 %v975_v2  ;;  %v279_v2 = vld [vmem:[#allocation2 + $0x2e0] sm:$0xff] }
 0x213   :  { %3579 = vmatpush1.bf16.msra.mxu0 %v1583_v3  ;;  %2763 = vmatprep.subr.bf16.mxu1 %v978_v4  ;;  %v583_v3 = vld [vmem:[#allocation2 + $0xc60] sm:$0xff]  ;;  %v997_v4 = vunpack.c.l.s8.bf16 %v279_v2 }
 0x214   :  { %3580 = vmatprep.subr.bf16.mxu0 %v1586_v5  ;;  %v1605_v5 = vunpack.c.l.s8.bf16 %v583_v3 }
 0x216   :  { %2764 = vmatpush1.bf16.msra.mxu1 %v977_v8  ;;  %v282_v8 = vld [vmem:[#allocation2 + $0x2f8] sm:$0xff] }
 0x217   :  { %3581 = vmatpush1.bf16.msra.mxu0 %v1585_v9  ;;  %2765 = vmatprep.subr.bf16.mxu1 %v980_v10  ;;  %v586_v9 = vld [vmem:[#allocation2 + $0xc78] sm:$0xff]  ;;  %v999_v10 = vunpack.c.h.s8.bf16 %v279_v2  ;;  %v1002_v12 = vunpack.c.l.s8.bf16 %v282_v8  ;;  %v1004_v18 = vunpack.c.h.s8.bf16 %v282_v8  ;;  %v289_v2 = vld [vmem:[#allocation2 + $0x330] sm:$0xff]  ;;  %v292_v8 = vld [vmem:[#allocation2 + $0x348] sm:$0xff] }
 0x218   :  { %3582 = vmatprep.subr.bf16.mxu0 %v1588_v11  ;;  %v1607_v11 = vunpack.c.h.s8.bf16 %v583_v3  ;;  %v1610_v13 = vunpack.c.l.s8.bf16 %v586_v9  ;;  %v1612_v19 = vunpack.c.h.s8.bf16 %v586_v9  ;;  %v593_v3 = vld [vmem:[#allocation2 + $0xcb0] sm:$0xff]  ;;  %v596_v9 = vld [vmem:[#allocation2 + $0xcc8] sm:$0xff] }
 0x21a   :  { %2766 = vmatpush1.bf16.msra.mxu1 %v979_v14  ;;  %v281_v14 = vld [vmem:[#allocation2 + $0x2f0] sm:$0xff] }
 0x21b   :  { %3583 = vmatpush1.bf16.msra.mxu0 %v1587_v15  ;;  %2767 = vmatprep.subr.bf16.mxu1 %v982_v16  ;;  %v585_v15 = vld [vmem:[#allocation2 + $0xc70] sm:$0xff]  ;;  %v1001_v16 = vunpack.c.l.s8.bf16 %v281_v14 }
 0x21c   :  { %3584 = vmatprep.subr.bf16.mxu0 %v1590_v17  ;;  %v1609_v17 = vunpack.c.l.s8.bf16 %v585_v15 }
 0x21e   :  { %2768 = vmatpush1.bf16.msra.mxu1 %v981_v20  ;;  %v284_v20 = vld [vmem:[#allocation2 + $0x308] sm:$0xff] }
 0x21f   :  { %3585 = vmatpush1.bf16.msra.mxu0 %v1589_v21  ;;  %2769 = vmatprep.subr.bf16.mxu1 %v984_v22  ;;  %v588_v21 = vld [vmem:[#allocation2 + $0xc88] sm:$0xff]  ;;  %v1003_v22 = vunpack.c.h.s8.bf16 %v281_v14  ;;  %v1006_v24 = vunpack.c.l.s8.bf16 %v284_v20  ;;  %v291_v14 = vld [vmem:[#allocation2 + $0x340] sm:$0xff] }
 0x220   :  { %3586 = vmatprep.subr.bf16.mxu0 %v1592_v23  ;;  %v1611_v23 = vunpack.c.h.s8.bf16 %v585_v15  ;;  %v1614_v25 = vunpack.c.l.s8.bf16 %v588_v21  ;;  %v595_v15 = vld [vmem:[#allocation2 + $0xcc0] sm:$0xff] }
 0x222   :  { %2770 = vmatpush1.bf16.msra.mxu1 %v983_v26  ;;  %v283_v26 = vld [vmem:[#allocation2 + $0x300] sm:$0xff] }
 0x223   :  { %3587 = vmatpush1.bf16.msra.mxu0 %v1591_v27  ;;  %2771 = vmatprep.subr.bf16.mxu1 %v986_v28  ;;  %v587_v27 = vld [vmem:[#allocation2 + $0xc80] sm:$0xff]  ;;  %v1005_v30 = vunpack.c.l.s8.bf16 %v283_v26 }
 0x224   :  { %3588 = vmatprep.subr.bf16.mxu0 %v1594_v29  ;;  %v5400_v28 = vld [vmem:[%s6447_s5 + $0x28] ss:$316 sps:$4 sm:$0xff]   ;;  %v5403_v29 = vld [vmem:[%s6447_s5 + $0xc0] ss:$316 sps:$4 sm:$0xff]   ;;  %v1613_v31 = vunpack.c.l.s8.bf16 %v587_v27 }
 0x226   :  { %2772 = vmatpush1.bf16.msra.mxu1 %v985_v32  ;;  %v1008_v32 = vunpack.c.h.s8.bf16 %v284_v20  ;;  %v294_v20 = vld [vmem:[#allocation2 + $0x358] sm:$0xff] }
 0x227   :  { %3589 = vmatpush1.bf16.msra.mxu0 %v1593_v33  ;;  %2773 = vmatprep.subr.bf16.mxu1 %v988_v34  ;;  %v1616_v33 = vunpack.c.h.s8.bf16 %v588_v21  ;;  %v286_v34 = vld [vmem:[#allocation2 + $0x318] sm:$0xff] }
 0x228   :  { %3590 = vmatprep.subr.bf16.mxu0 %v1596_v35  ;;  %v590_v35 = vld [vmem:[#allocation2 + $0xc98] sm:$0xff] }
 0x229   :  { %v598_v21 = vld [vmem:[#allocation2 + $0xcd8] sm:$0xff] }
 0x22a   :  { %2774 = vmatpush1.bf16.msra.mxu1 %v987_v38  ;;  %v1007_v38 = vunpack.c.h.s8.bf16 %v283_v26  ;;  %v293_v26 = vld [vmem:[#allocation2 + $0x350] sm:$0xff] }
 0x22b   :  { %3591 = vmatpush1.bf16.msra.mxu0 %v1595_v39  ;;  %2775 = vmatprep.subr.bf16.mxu1 %v990_v40  ;;  %v1615_v39 = vunpack.c.h.s8.bf16 %v587_v27  ;;  %v1010_v40 = vunpack.c.l.s8.bf16 %v286_v34  ;;  %v597_v27 = vld [vmem:[#allocation2 + $0xcd0] sm:$0xff] }
 0x22c   :  { %3592 = vmatprep.subr.bf16.mxu0 %v1598_v41  ;;  %v1618_v41 = vunpack.c.l.s8.bf16 %v590_v35 }
 0x22e   :  { %2776 = vmatpush1.bf16.msra.mxu1 %v989_v44  ;;  %v1009_v44 = vunpack.c.l.s8.bf16 %v285_v42 }
 0x22f   :  { %3593 = vmatpush1.bf16.msra.mxu0 %v1597_v45  ;;  %2777 = vmatprep.subr.bf16.mxu1 %v992_v46  ;;  %v1617_v45 = vunpack.c.l.s8.bf16 %v589_v43  ;;  %v1012_v46 = vunpack.c.h.s8.bf16 %v286_v34  ;;  %v1027_v34 = vunpack.c.h.s8.bf16 %v293_v26 }
 0x230   :  { %3594 = vmatprep.subr.bf16.mxu0 %v1600_v47  ;;  %v1620_v47 = vunpack.c.h.s8.bf16 %v590_v35  ;;  %v1635_v35 = vunpack.c.h.s8.bf16 %v597_v27 }
 0x232   :  { %2778 = vmatpush1.bf16.msra.mxu1 %v991_v50  ;;  %v1011_v50 = vunpack.c.h.s8.bf16 %v285_v42 }
 0x233   :  { %3595 = vmatpush1.bf16.msra.mxu0 %v1599_v51  ;;  %2779 = vmatprep.subr.bf16.mxu1 %v994_v52  ;;  %v1619_v51 = vunpack.c.h.s8.bf16 %v589_v43  ;;  %v1014_v52 = vunpack.c.l.s8.bf16 %v288_v48 }
 0x234   :  { %3596 = vmatprep.subr.bf16.mxu0 %v1602_v53  ;;  %v1622_v53 = vunpack.c.l.s8.bf16 %v592_v49 }
 0x236   :  { %2780 = vmatpush1.bf16.msra.mxu1 %v993_v56  ;;  %v1013_v56 = vunpack.c.l.s8.bf16 %v287_v54 }
 0x237   :  { %3597 = vmatpush1.bf16.msra.mxu0 %v1601_v57  ;;  %2781 = vmatprep.subr.bf16.mxu1 %v996_v58  ;;  %v1621_v57 = vunpack.c.l.s8.bf16 %v591_v55  ;;  %v1016_v58 = vunpack.c.h.s8.bf16 %v288_v48 }
 0x238   :  { %3598 = vmatprep.subr.bf16.mxu0 %v1604_v59  ;;  %v1624_v59 = vunpack.c.h.s8.bf16 %v592_v49 }
 0x23a   :  { %2782 = vmatpush1.bf16.msra.mxu1 %v995_v62  ;;  %v1015_v62 = vunpack.c.h.s8.bf16 %v287_v54 }
 0x23b   :  { %3599 = vmatpush1.bf16.msra.mxu0 %v1603_v63  ;;  %2783 = vmatprep.subr.bf16.mxu1 %v998_v0  ;;  %v1623_v63 = vunpack.c.h.s8.bf16 %v591_v55  ;;  %v1018_v0 = vunpack.c.l.s8.bf16 %v290_v60 }
 0x23c   :  { %3600 = vmatprep.subr.bf16.mxu0 %v1606_v1  ;;  %v1626_v1 = vunpack.c.l.s8.bf16 %v594_v61 }
 0x23e   :  { %2784 = vmatpush1.bf16.msra.mxu1 %v997_v4  ;;  %v1017_v4 = vunpack.c.l.s8.bf16 %v289_v2 }
 0x23f   :  { %3601 = vmatpush1.bf16.msra.mxu0 %v1605_v5  ;;  %2785 = vmatprep.subr.bf16.mxu1 %v1000_v6  ;;  %v1625_v5 = vunpack.c.l.s8.bf16 %v593_v3  ;;  %v1020_v6 = vunpack.c.h.s8.bf16 %v290_v60 }
 0x240   :  { %3602 = vmatprep.subr.bf16.mxu0 %v1608_v7  ;;  %v1628_v7 = vunpack.c.h.s8.bf16 %v594_v61 }
 0x242   :  { %2786 = vmatpush1.bf16.msra.mxu1 %v999_v10  ;;  %v1019_v10 = vunpack.c.h.s8.bf16 %v289_v2 }
 0x243   :  { %3603 = vmatpush1.bf16.msra.mxu0 %v1607_v11  ;;  %2787 = vmatprep.subr.bf16.mxu1 %v1002_v12  ;;  %v1627_v11 = vunpack.c.h.s8.bf16 %v593_v3  ;;  %v1022_v12 = vunpack.c.l.s8.bf16 %v292_v8 }
 0x244   :  { %3604 = vmatprep.subr.bf16.mxu0 %v1610_v13  ;;  %v1630_v13 = vunpack.c.l.s8.bf16 %v596_v9 }
 0x246   :  { %2788 = vmatpush1.bf16.msra.mxu1 %v1001_v16  ;;  %v1021_v16 = vunpack.c.l.s8.bf16 %v291_v14 }
 0x247   :  { %3605 = vmatpush1.bf16.msra.mxu0 %v1609_v17  ;;  %2789 = vmatprep.subr.bf16.mxu1 %v1004_v18  ;;  %v1629_v17 = vunpack.c.l.s8.bf16 %v595_v15  ;;  %v1024_v18 = vunpack.c.h.s8.bf16 %v292_v8  ;;  %v5414_v8 = vld [vmem:[%s6447_s5 + $0x3c] ss:$316 sps:$4 sm:$0xff]  }
 0x248   :  { %3606 = vmatprep.subr.bf16.mxu0 %v1612_v19  ;;  %v1632_v19 = vunpack.c.h.s8.bf16 %v596_v9  ;;  %v5417_v9 = vld [vmem:[%s6447_s5 + $0xd4] ss:$316 sps:$4 sm:$0xff]  }
 0x24a   :  { %2790 = vmatpush1.bf16.msra.mxu1 %v1003_v22  ;;  %v1023_v22 = vunpack.c.h.s8.bf16 %v291_v14  ;;  %v301_v14 = vld [vmem:[#allocation2 + $0x390] sm:$0xff] }
 0x24b   :  { %3607 = vmatpush1.bf16.msra.mxu0 %v1611_v23  ;;  %2802 = vmatprep.subr.bf16.mxu1 %v1006_v24  ;;  %v1631_v23 = vunpack.c.h.s8.bf16 %v595_v15  ;;  %v1026_v24 = vunpack.c.l.s8.bf16 %v294_v20  ;;  %v605_v15 = vld [vmem:[#allocation2 + $0xd10] sm:$0xff] }
 0x24c   :  { %3619 = vmatprep.subr.bf16.mxu0 %v1614_v25  ;;  %v1634_v25 = vunpack.c.l.s8.bf16 %v598_v21 }
 0x24d   :  { %2792 = vmatmul.mubr.bf16.vlgmr.msra.gmra.mrb[0].mxu1 %v5400_v28  ;;  %v1025_v28 = vunpack.c.l.s8.bf16 %v293_v26  ;;  %v303_v26 = vld [vmem:[#allocation2 + $0x3a0] sm:$0xff] }
 0x24e   :  { %3609 = vmatmul.mubr.bf16.vlgmr.msra.gmra.mrb[0].mxu0 %v5403_v29  ;;  %2803 = vmatpush1.bf16.msra.mxu1 %v1005_v30  ;;  %v1633_v29 = vunpack.c.l.s8.bf16 %v597_v27  ;;  %v1028_v30 = vunpack.c.h.s8.bf16 %v294_v20  ;;  %v304_v20 = vld [vmem:[#allocation2 + $0x3a8] sm:$0xff]  ;;  %v607_v27 = vld [vmem:[#allocation2 + $0xd20] sm:$0xff] }
 0x24f   :  { %3620 = vmatpush1.bf16.msra.mxu0 %v1613_v31  ;;  %2804 = vmatprep.subr.bf16.mxu1 %v1008_v32  ;;  %v1636_v31 = vunpack.c.h.s8.bf16 %v598_v21  ;;  %v296_v32 = vld [vmem:[#allocation2 + $0x368] sm:$0xff] }
 0x250   :  { %3621 = vmatprep.subr.bf16.mxu0 %v1616_v33  ;;  %2834 = vmatprep.mubr.bf16.mxu1 %v5408_v36  ;;  %v600_v33 = vld [vmem:[#allocation2 + $0xce8] sm:$0xff]  ;;  %v1030_v36 = vunpack.c.l.s8.bf16 %v296_v32  ;;  %v1032_v42 = vunpack.c.h.s8.bf16 %v296_v32  ;;  %v306_v32 = vld [vmem:[#allocation2 + $0x3b8] sm:$0xff] }
 0x251   :  { %3651 = vmatprep.mubr.bf16.mxu0 %v5411_v37  ;;  %v1638_v37 = vunpack.c.l.s8.bf16 %v600_v33  ;;  %v1640_v43 = vunpack.c.h.s8.bf16 %v600_v33  ;;  %v608_v21 = vld [vmem:[#allocation2 + $0xd28] sm:$0xff]  ;;  %v610_v33 = vld [vmem:[#allocation2 + $0xd38] sm:$0xff] }
 0x252   :  { %2805 = vmatpush1.bf16.msra.mxu1 %v1007_v38  ;;  %v295_v38 = vld [vmem:[#allocation2 + $0x360] sm:$0xff] }
 0x253   :  { %3622 = vmatpush1.bf16.msra.mxu0 %v1615_v39  ;;  %2806 = vmatprep.subr.bf16.mxu1 %v1010_v40  ;;  %v599_v39 = vld [vmem:[#allocation2 + $0xce0] sm:$0xff]  ;;  %v1029_v40 = vunpack.c.l.s8.bf16 %v295_v38 }
 0x254   :  { %3623 = vmatprep.subr.bf16.mxu0 %v1618_v41  ;;  %v1637_v41 = vunpack.c.l.s8.bf16 %v599_v39 }
 0x256   :  { %2807 = vmatpush1.bf16.msra.mxu1 %v1009_v44  ;;  %v298_v44 = vld [vmem:[#allocation2 + $0x378] sm:$0xff] }
 0x257   :  { %3624 = vmatpush1.bf16.msra.mxu0 %v1617_v45  ;;  %2808 = vmatprep.subr.bf16.mxu1 %v1012_v46  ;;  %v602_v45 = vld [vmem:[#allocation2 + $0xcf8] sm:$0xff]  ;;  %v1031_v46 = vunpack.c.h.s8.bf16 %v295_v38  ;;  %v1034_v48 = vunpack.c.l.s8.bf16 %v298_v44  ;;  %v1036_v54 = vunpack.c.h.s8.bf16 %v298_v44  ;;  %v305_v38 = vld [vmem:[#allocation2 + $0x3b0] sm:$0xff]  ;;  %v308_v44 = vld [vmem:[#allocation2 + $0x3c8] sm:$0xff] }
 0x258   :  { %3625 = vmatprep.subr.bf16.mxu0 %v1620_v47  ;;  %v1639_v47 = vunpack.c.h.s8.bf16 %v599_v39  ;;  %v1642_v49 = vunpack.c.l.s8.bf16 %v602_v45  ;;  %v1644_v55 = vunpack.c.h.s8.bf16 %v602_v45  ;;  %v609_v39 = vld [vmem:[#allocation2 + $0xd30] sm:$0xff]  ;;  %v612_v45 = vld [vmem:[#allocation2 + $0xd48] sm:$0xff] }
 0x25a   :  { %2809 = vmatpush1.bf16.msra.mxu1 %v1011_v50  ;;  %v297_v50 = vld [vmem:[#allocation2 + $0x370] sm:$0xff] }
 0x25b   :  { %3626 = vmatpush1.bf16.msra.mxu0 %v1619_v51  ;;  %2810 = vmatprep.subr.bf16.mxu1 %v1014_v52  ;;  %v601_v51 = vld [vmem:[#allocation2 + $0xcf0] sm:$0xff]  ;;  %v1033_v52 = vunpack.c.l.s8.bf16 %v297_v50 }
 0x25c   :  { %3627 = vmatprep.subr.bf16.mxu0 %v1622_v53  ;;  %v1641_v53 = vunpack.c.l.s8.bf16 %v601_v51 }
 0x25e   :  { %2811 = vmatpush1.bf16.msra.mxu1 %v1013_v56  ;;  %v300_v56 = vld [vmem:[#allocation2 + $0x388] sm:$0xff] }
 0x25f   :  { %3628 = vmatpush1.bf16.msra.mxu0 %v1621_v57  ;;  %2812 = vmatprep.subr.bf16.mxu1 %v1016_v58  ;;  %v604_v57 = vld [vmem:[#allocation2 + $0xd08] sm:$0xff]  ;;  %v1035_v58 = vunpack.c.h.s8.bf16 %v297_v50  ;;  %v1038_v60 = vunpack.c.l.s8.bf16 %v300_v56  ;;  %v307_v50 = vld [vmem:[#allocation2 + $0x3c0] sm:$0xff] }
 0x260   :  { %3629 = vmatprep.subr.bf16.mxu0 %v1624_v59  ;;  %v1643_v59 = vunpack.c.h.s8.bf16 %v601_v51  ;;  %v1646_v61 = vunpack.c.l.s8.bf16 %v604_v57  ;;  %v611_v51 = vld [vmem:[#allocation2 + $0xd40] sm:$0xff] }
 0x262   :  { %2813 = vmatpush1.bf16.msra.mxu1 %v1015_v62  ;;  %v299_v62 = vld [vmem:[#allocation2 + $0x380] sm:$0xff] }
 0x263   :  { %3630 = vmatpush1.bf16.msra.mxu0 %v1623_v63  ;;  %2814 = vmatprep.subr.bf16.mxu1 %v1018_v0  ;;  %v603_v63 = vld [vmem:[#allocation2 + $0xd00] sm:$0xff]  ;;  %v5406_v0 = vld [vmem:[%s6447_s5 + $0x30] ss:$316 sps:$4 sm:$0xff]   ;;  %v1037_v2 = vunpack.c.l.s8.bf16 %v299_v62 }
 0x264   :  { %3631 = vmatprep.subr.bf16.mxu0 %v1626_v1  ;;  %v5409_v1 = vld [vmem:[%s6447_s5 + $0xc8] ss:$316 sps:$4 sm:$0xff]   ;;  %v1645_v3 = vunpack.c.l.s8.bf16 %v603_v63 }
 0x266   :  { %2815 = vmatpush1.bf16.msra.mxu1 %v1017_v4  ;;  %v1040_v4 = vunpack.c.h.s8.bf16 %v300_v56  ;;  %v310_v56 = vld [vmem:[#allocation2 + $0x3d8] sm:$0xff] }
 0x267   :  { %3632 = vmatpush1.bf16.msra.mxu0 %v1625_v5  ;;  %2816 = vmatprep.subr.bf16.mxu1 %v1020_v6  ;;  %v1648_v5 = vunpack.c.h.s8.bf16 %v604_v57  ;;  %v302_v6 = vld [vmem:[#allocation2 + $0x398] sm:$0xff] }
 0x268   :  { %3633 = vmatprep.subr.bf16.mxu0 %v1628_v7  ;;  %v606_v7 = vld [vmem:[#allocation2 + $0xd18] sm:$0xff] }
 0x269   :  { %v614_v57 = vld [vmem:[#allocation2 + $0xd58] sm:$0xff] }
 0x26a   :  { %2817 = vmatpush1.bf16.msra.mxu1 %v1019_v10  ;;  %v1039_v10 = vunpack.c.h.s8.bf16 %v299_v62  ;;  %v309_v62 = vld [vmem:[#allocation2 + $0x3d0] sm:$0xff] }
 0x26b   :  { %3634 = vmatpush1.bf16.msra.mxu0 %v1627_v11  ;;  %2818 = vmatprep.subr.bf16.mxu1 %v1022_v12  ;;  %v1647_v11 = vunpack.c.h.s8.bf16 %v603_v63  ;;  %v1042_v12 = vunpack.c.l.s8.bf16 %v302_v6  ;;  %v613_v63 = vld [vmem:[#allocation2 + $0xd50] sm:$0xff] }
 0x26c   :  { %3635 = vmatprep.subr.bf16.mxu0 %v1630_v13  ;;  %v1650_v13 = vunpack.c.l.s8.bf16 %v606_v7 }
 0x26e   :  { %2819 = vmatpush1.bf16.msra.mxu1 %v1021_v16  ;;  %v1041_v16 = vunpack.c.l.s8.bf16 %v301_v14 }
 0x26f   :  { %3636 = vmatpush1.bf16.msra.mxu0 %v1629_v17  ;;  %2820 = vmatprep.subr.bf16.mxu1 %v1024_v18  ;;  %v1649_v17 = vunpack.c.l.s8.bf16 %v605_v15  ;;  %v1044_v18 = vunpack.c.h.s8.bf16 %v302_v6  ;;  %v1059_v6 = vunpack.c.h.s8.bf16 %v309_v62 }
 0x270   :  { %3637 = vmatprep.subr.bf16.mxu0 %v1632_v19  ;;  %v1652_v19 = vunpack.c.h.s8.bf16 %v606_v7  ;;  %v1667_v7 = vunpack.c.h.s8.bf16 %v613_v63 }
 0x272   :  { %2821 = vmatpush1.bf16.msra.mxu1 %v1023_v22  ;;  %v1043_v22 = vunpack.c.h.s8.bf16 %v301_v14 }
 0x273   :  { %3638 = vmatpush1.bf16.msra.mxu0 %v1631_v23  ;;  %2822 = vmatprep.subr.bf16.mxu1 %v1026_v24  ;;  %v1651_v23 = vunpack.c.h.s8.bf16 %v605_v15  ;;  %v1046_v24 = vunpack.c.l.s8.bf16 %v304_v20 }
 0x274   :  { %3639 = vmatprep.subr.bf16.mxu0 %v1634_v25  ;;  %v1654_v25 = vunpack.c.l.s8.bf16 %v608_v21 }
 0x276   :  { %2823 = vmatpush1.bf16.msra.mxu1 %v1025_v28  ;;  %v1045_v28 = vunpack.c.l.s8.bf16 %v303_v26 }
 0x277   :  { %3640 = vmatpush1.bf16.msra.mxu0 %v1633_v29  ;;  %2824 = vmatprep.subr.bf16.mxu1 %v1028_v30  ;;  %v1653_v29 = vunpack.c.l.s8.bf16 %v607_v27  ;;  %v1048_v30 = vunpack.c.h.s8.bf16 %v304_v20 }
 0x278   :  { %3641 = vmatprep.subr.bf16.mxu0 %v1636_v31  ;;  %v1656_v31 = vunpack.c.h.s8.bf16 %v608_v21 }
 0x27a   :  { %2825 = vmatpush1.bf16.msra.mxu1 %v1027_v34  ;;  %v1047_v34 = vunpack.c.h.s8.bf16 %v303_v26 }
 0x27b   :  { %3642 = vmatpush1.bf16.msra.mxu0 %v1635_v35  ;;  %2826 = vmatprep.subr.bf16.mxu1 %v1030_v36  ;;  %v1655_v35 = vunpack.c.h.s8.bf16 %v607_v27  ;;  %v1050_v36 = vunpack.c.l.s8.bf16 %v306_v32 }
 0x27c   :  { %3643 = vmatprep.subr.bf16.mxu0 %v1638_v37  ;;  %v1658_v37 = vunpack.c.l.s8.bf16 %v610_v33 }
 0x27e   :  { %2827 = vmatpush1.bf16.msra.mxu1 %v1029_v40  ;;  %v1049_v40 = vunpack.c.l.s8.bf16 %v305_v38 }
 0x27f   :  { %3644 = vmatpush1.bf16.msra.mxu0 %v1637_v41  ;;  %2828 = vmatprep.subr.bf16.mxu1 %v1032_v42  ;;  %v1657_v41 = vunpack.c.l.s8.bf16 %v609_v39  ;;  %v1052_v42 = vunpack.c.h.s8.bf16 %v306_v32 }
 0x280   :  { %3645 = vmatprep.subr.bf16.mxu0 %v1640_v43  ;;  %v1660_v43 = vunpack.c.h.s8.bf16 %v610_v33 }
 0x282   :  { %2829 = vmatpush1.bf16.msra.mxu1 %v1031_v46  ;;  %v1051_v46 = vunpack.c.h.s8.bf16 %v305_v38 }
 0x283   :  { %3646 = vmatpush1.bf16.msra.mxu0 %v1639_v47  ;;  %2830 = vmatprep.subr.bf16.mxu1 %v1034_v48  ;;  %v1659_v47 = vunpack.c.h.s8.bf16 %v609_v39  ;;  %v1054_v48 = vunpack.c.l.s8.bf16 %v308_v44 }
 0x284   :  { %3647 = vmatprep.subr.bf16.mxu0 %v1642_v49  ;;  %v1662_v49 = vunpack.c.l.s8.bf16 %v612_v45 }
 0x286   :  { %2831 = vmatpush1.bf16.msra.mxu1 %v1033_v52  ;;  %v1053_v52 = vunpack.c.l.s8.bf16 %v307_v50 }
 0x287   :  { %3648 = vmatpush1.bf16.msra.mxu0 %v1641_v53  ;;  %2832 = vmatprep.subr.bf16.mxu1 %v1036_v54  ;;  %v1661_v53 = vunpack.c.l.s8.bf16 %v611_v51  ;;  %v1056_v54 = vunpack.c.h.s8.bf16 %v308_v44  ;;  %v5420_v44 = vld [vmem:[%s6447_s5 + $0x44] ss:$316 sps:$4 sm:$0xff]  }
 0x288   :  { %3649 = vmatprep.subr.bf16.mxu0 %v1644_v55  ;;  %v1664_v55 = vunpack.c.h.s8.bf16 %v612_v45  ;;  %v5423_v45 = vld [vmem:[%s6447_s5 + $0xdc] ss:$316 sps:$4 sm:$0xff]  }
 0x28a   :  { %2833 = vmatpush1.bf16.msra.mxu1 %v1035_v58  ;;  %v1055_v58 = vunpack.c.h.s8.bf16 %v307_v50  ;;  %v317_v50 = vld [vmem:[#allocation2 + $0x410] sm:$0xff] }
 0x28b   :  { %3650 = vmatpush1.bf16.msra.mxu0 %v1643_v59  ;;  %2845 = vmatprep.subr.bf16.mxu1 %v1038_v60  ;;  %v1663_v59 = vunpack.c.h.s8.bf16 %v611_v51  ;;  %v1058_v60 = vunpack.c.l.s8.bf16 %v310_v56  ;;  %v621_v51 = vld [vmem:[#allocation2 + $0xd90] sm:$0xff] }
 0x28c   :  { %3662 = vmatprep.subr.bf16.mxu0 %v1646_v61  ;;  %v1666_v61 = vunpack.c.l.s8.bf16 %v614_v57 }
 0x28d   :  { %2835 = vmatmul.mubr.bf16.vlgmr.msra.gmra.mrb[0].mxu1 %v5406_v0  ;;  %v1057_v0 = vunpack.c.l.s8.bf16 %v309_v62  ;;  %v319_v62 = vld [vmem:[#allocation2 + $0x420] sm:$0xff] }
 0x28e   :  { %3652 = vmatmul.mubr.bf16.vlgmr.msra.gmra.mrb[0].mxu0 %v5409_v1  ;;  %2846 = vmatpush1.bf16.msra.mxu1 %v1037_v2  ;;  %v1665_v1 = vunpack.c.l.s8.bf16 %v613_v63  ;;  %v1060_v2 = vunpack.c.h.s8.bf16 %v310_v56  ;;  %v320_v56 = vld [vmem:[#allocation2 + $0x428] sm:$0xff]  ;;  %v623_v63 = vld [vmem:[#allocation2 + $0xda0] sm:$0xff] }
 0x28f   :  { %3663 = vmatpush1.bf16.msra.mxu0 %v1645_v3  ;;  %2847 = vmatprep.subr.bf16.mxu1 %v1040_v4  ;;  %v1668_v3 = vunpack.c.h.s8.bf16 %v614_v57  ;;  %v312_v4 = vld [vmem:[#allocation2 + $0x3e8] sm:$0xff] }
 0x290   :  { %3664 = vmatprep.subr.bf16.mxu0 %v1648_v5  ;;  %2877 = vmatprep.mubr.bf16.mxu1 %v5414_v8  ;;  %v616_v5 = vld [vmem:[#allocation2 + $0xd68] sm:$0xff]  ;;  %v1062_v8 = vunpack.c.l.s8.bf16 %v312_v4  ;;  %v1064_v14 = vunpack.c.h.s8.bf16 %v312_v4  ;;  %v322_v4 = vld [vmem:[#allocation2 + $0x438] sm:$0xff] }
 0x291   :  { %3694 = vmatprep.mubr.bf16.mxu0 %v5417_v9  ;;  %v1670_v9 = vunpack.c.l.s8.bf16 %v616_v5  ;;  %v1672_v15 = vunpack.c.h.s8.bf16 %v616_v5  ;;  %v624_v57 = vld [vmem:[#allocation2 + $0xda8] sm:$0xff]  ;;  %v626_v5 = vld [vmem:[#allocation2 + $0xdb8] sm:$0xff] }
 0x292   :  { %2848 = vmatpush1.bf16.msra.mxu1 %v1039_v10  ;;  %v311_v10 = vld [vmem:[#allocation2 + $0x3e0] sm:$0xff] }
 0x293   :  { %3665 = vmatpush1.bf16.msra.mxu0 %v1647_v11  ;;  %2849 = vmatprep.subr.bf16.mxu1 %v1042_v12  ;;  %v615_v11 = vld [vmem:[#allocation2 + $0xd60] sm:$0xff]  ;;  %v1061_v12 = vunpack.c.l.s8.bf16 %v311_v10 }
 0x294   :  { %3666 = vmatprep.subr.bf16.mxu0 %v1650_v13  ;;  %v1669_v13 = vunpack.c.l.s8.bf16 %v615_v11 }
 0x296   :  { %2850 = vmatpush1.bf16.msra.mxu1 %v1041_v16  ;;  %v314_v16 = vld [vmem:[#allocation2 + $0x3f8] sm:$0xff] }
 0x297   :  { %3667 = vmatpush1.bf16.msra.mxu0 %v1649_v17  ;;  %2851 = vmatprep.subr.bf16.mxu1 %v1044_v18  ;;  %v618_v17 = vld [vmem:[#allocation2 + $0xd78] sm:$0xff]  ;;  %v1063_v18 = vunpack.c.h.s8.bf16 %v311_v10  ;;  %v1066_v20 = vunpack.c.l.s8.bf16 %v314_v16  ;;  %v1068_v26 = vunpack.c.h.s8.bf16 %v314_v16  ;;  %v321_v10 = vld [vmem:[#allocation2 + $0x430] sm:$0xff]  ;;  %v324_v16 = vld [vmem:[#allocation2 + $0x448] sm:$0xff] }
 0x298   :  { %3668 = vmatprep.subr.bf16.mxu0 %v1652_v19  ;;  %v1671_v19 = vunpack.c.h.s8.bf16 %v615_v11  ;;  %v1674_v21 = vunpack.c.l.s8.bf16 %v618_v17  ;;  %v1676_v27 = vunpack.c.h.s8.bf16 %v618_v17  ;;  %v625_v11 = vld [vmem:[#allocation2 + $0xdb0] sm:$0xff]  ;;  %v628_v17 = vld [vmem:[#allocation2 + $0xdc8] sm:$0xff] }
 0x29a   :  { %2852 = vmatpush1.bf16.msra.mxu1 %v1043_v22  ;;  %v313_v22 = vld [vmem:[#allocation2 + $0x3f0] sm:$0xff] }
 0x29b   :  { %3669 = vmatpush1.bf16.msra.mxu0 %v1651_v23  ;;  %2853 = vmatprep.subr.bf16.mxu1 %v1046_v24  ;;  %v617_v23 = vld [vmem:[#allocation2 + $0xd70] sm:$0xff]  ;;  %v1065_v24 = vunpack.c.l.s8.bf16 %v313_v22 }
 0x29c   :  { %3670 = vmatprep.subr.bf16.mxu0 %v1654_v25  ;;  %v1673_v25 = vunpack.c.l.s8.bf16 %v617_v23 }
 0x29e   :  { %2854 = vmatpush1.bf16.msra.mxu1 %v1045_v28  ;;  %v316_v28 = vld [vmem:[#allocation2 + $0x408] sm:$0xff] }
 0x29f   :  { %3671 = vmatpush1.bf16.msra.mxu0 %v1653_v29  ;;  %2855 = vmatprep.subr.bf16.mxu1 %v1048_v30  ;;  %v620_v29 = vld [vmem:[#allocation2 + $0xd88] sm:$0xff]  ;;  %v1067_v30 = vunpack.c.h.s8.bf16 %v313_v22  ;;  %v1070_v32 = vunpack.c.l.s8.bf16 %v316_v28  ;;  %v323_v22 = vld [vmem:[#allocation2 + $0x440] sm:$0xff] }
 0x2a0   :  { %3672 = vmatprep.subr.bf16.mxu0 %v1656_v31  ;;  %v1675_v31 = vunpack.c.h.s8.bf16 %v617_v23  ;;  %v1678_v33 = vunpack.c.l.s8.bf16 %v620_v29  ;;  %v627_v23 = vld [vmem:[#allocation2 + $0xdc0] sm:$0xff] }
 0x2a2   :  { %2856 = vmatpush1.bf16.msra.mxu1 %v1047_v34  ;;  %v315_v34 = vld [vmem:[#allocation2 + $0x400] sm:$0xff] }
 0x2a3   :  { %3673 = vmatpush1.bf16.msra.mxu0 %v1655_v35  ;;  %2857 = vmatprep.subr.bf16.mxu1 %v1050_v36  ;;  %v619_v35 = vld [vmem:[#allocation2 + $0xd80] sm:$0xff]  ;;  %v5412_v36 = vld [vmem:[%s6447_s5 + $0x38] ss:$316 sps:$4 sm:$0xff]   ;;  %v1069_v38 = vunpack.c.l.s8.bf16 %v315_v34 }
 0x2a4   :  { %3674 = vmatprep.subr.bf16.mxu0 %v1658_v37  ;;  %v5415_v37 = vld [vmem:[%s6447_s5 + $0xd0] ss:$316 sps:$4 sm:$0xff]   ;;  %v1677_v39 = vunpack.c.l.s8.bf16 %v619_v35 }
 0x2a6   :  { %2858 = vmatpush1.bf16.msra.mxu1 %v1049_v40  ;;  %v1072_v40 = vunpack.c.h.s8.bf16 %v316_v28  ;;  %v326_v28 = vld [vmem:[#allocation2 + $0x458] sm:$0xff] }
 0x2a7   :  { %3675 = vmatpush1.bf16.msra.mxu0 %v1657_v41  ;;  %2859 = vmatprep.subr.bf16.mxu1 %v1052_v42  ;;  %v1680_v41 = vunpack.c.h.s8.bf16 %v620_v29  ;;  %v318_v42 = vld [vmem:[#allocation2 + $0x418] sm:$0xff] }
 0x2a8   :  { %3676 = vmatprep.subr.bf16.mxu0 %v1660_v43  ;;  %v622_v43 = vld [vmem:[#allocation2 + $0xd98] sm:$0xff] }
 0x2a9   :  { %v630_v29 = vld [vmem:[#allocation2 + $0xdd8] sm:$0xff] }
 0x2aa   :  { %2860 = vmatpush1.bf16.msra.mxu1 %v1051_v46  ;;  %v1071_v46 = vunpack.c.h.s8.bf16 %v315_v34  ;;  %v325_v34 = vld [vmem:[#allocation2 + $0x450] sm:$0xff] }
 0x2ab   :  { %3677 = vmatpush1.bf16.msra.mxu0 %v1659_v47  ;;  %2861 = vmatprep.subr.bf16.mxu1 %v1054_v48  ;;  %v1679_v47 = vunpack.c.h.s8.bf16 %v619_v35  ;;  %v1074_v48 = vunpack.c.l.s8.bf16 %v318_v42  ;;  %v629_v35 = vld [vmem:[#allocation2 + $0xdd0] sm:$0xff] }
 0x2ac   :  { %3678 = vmatprep.subr.bf16.mxu0 %v1662_v49  ;;  %v1682_v49 = vunpack.c.l.s8.bf16 %v622_v43 }
 0x2ae   :  { %2862 = vmatpush1.bf16.msra.mxu1 %v1053_v52  ;;  %v1073_v52 = vunpack.c.l.s8.bf16 %v317_v50 }
 0x2af   :  { %3679 = vmatpush1.bf16.msra.mxu0 %v1661_v53  ;;  %2863 = vmatprep.subr.bf16.mxu1 %v1056_v54  ;;  %v1681_v53 = vunpack.c.l.s8.bf16 %v621_v51  ;;  %v1076_v54 = vunpack.c.h.s8.bf16 %v318_v42  ;;  %v1091_v42 = vunpack.c.h.s8.bf16 %v325_v34 }
 0x2b0   :  { %3680 = vmatprep.subr.bf16.mxu0 %v1664_v55  ;;  %v1684_v55 = vunpack.c.h.s8.bf16 %v622_v43  ;;  %v1699_v43 = vunpack.c.h.s8.bf16 %v629_v35 }
 0x2b2   :  { %2864 = vmatpush1.bf16.msra.mxu1 %v1055_v58  ;;  %v1075_v58 = vunpack.c.h.s8.bf16 %v317_v50 }
 0x2b3   :  { %3681 = vmatpush1.bf16.msra.mxu0 %v1663_v59  ;;  %2865 = vmatprep.subr.bf16.mxu1 %v1058_v60  ;;  %v1683_v59 = vunpack.c.h.s8.bf16 %v621_v51  ;;  %v1078_v60 = vunpack.c.l.s8.bf16 %v320_v56 }
 0x2b4   :  { %3682 = vmatprep.subr.bf16.mxu0 %v1666_v61  ;;  %v1686_v61 = vunpack.c.l.s8.bf16 %v624_v57 }
 0x2b6   :  { %2866 = vmatpush1.bf16.msra.mxu1 %v1057_v0  ;;  %v1077_v0 = vunpack.c.l.s8.bf16 %v319_v62 }
 0x2b7   :  { %3683 = vmatpush1.bf16.msra.mxu0 %v1665_v1  ;;  %2867 = vmatprep.subr.bf16.mxu1 %v1060_v2  ;;  %v1685_v1 = vunpack.c.l.s8.bf16 %v623_v63  ;;  %v1080_v2 = vunpack.c.h.s8.bf16 %v320_v56 }
 0x2b8   :  { %3684 = vmatprep.subr.bf16.mxu0 %v1668_v3  ;;  %v1688_v3 = vunpack.c.h.s8.bf16 %v624_v57 }
 0x2ba   :  { %2868 = vmatpush1.bf16.msra.mxu1 %v1059_v6  ;;  %v1079_v6 = vunpack.c.h.s8.bf16 %v319_v62 }
 0x2bb   :  { %3685 = vmatpush1.bf16.msra.mxu0 %v1667_v7  ;;  %2869 = vmatprep.subr.bf16.mxu1 %v1062_v8  ;;  %v1687_v7 = vunpack.c.h.s8.bf16 %v623_v63  ;;  %v1082_v8 = vunpack.c.l.s8.bf16 %v322_v4 }
 0x2bc   :  { %3686 = vmatprep.subr.bf16.mxu0 %v1670_v9  ;;  %v1690_v9 = vunpack.c.l.s8.bf16 %v626_v5 }
 0x2be   :  { %2870 = vmatpush1.bf16.msra.mxu1 %v1061_v12  ;;  %v1081_v12 = vunpack.c.l.s8.bf16 %v321_v10 }
 0x2bf   :  { %3687 = vmatpush1.bf16.msra.mxu0 %v1669_v13  ;;  %2871 = vmatprep.subr.bf16.mxu1 %v1064_v14  ;;  %v1689_v13 = vunpack.c.l.s8.bf16 %v625_v11  ;;  %v1084_v14 = vunpack.c.h.s8.bf16 %v322_v4 }
 0x2c0   :  { %3688 = vmatprep.subr.bf16.mxu0 %v1672_v15  ;;  %v1692_v15 = vunpack.c.h.s8.bf16 %v626_v5 }
 0x2c2   :  { %2872 = vmatpush1.bf16.msra.mxu1 %v1063_v18  ;;  %v1083_v18 = vunpack.c.h.s8.bf16 %v321_v10 }
 0x2c3   :  { %3689 = vmatpush1.bf16.msra.mxu0 %v1671_v19  ;;  %2873 = vmatprep.subr.bf16.mxu1 %v1066_v20  ;;  %v1691_v19 = vunpack.c.h.s8.bf16 %v625_v11  ;;  %v1086_v20 = vunpack.c.l.s8.bf16 %v324_v16 }
 0x2c4   :  { %3690 = vmatprep.subr.bf16.mxu0 %v1674_v21  ;;  %v1694_v21 = vunpack.c.l.s8.bf16 %v628_v17 }
 0x2c6   :  { %2874 = vmatpush1.bf16.msra.mxu1 %v1065_v24  ;;  %v1085_v24 = vunpack.c.l.s8.bf16 %v323_v22 }
 0x2c7   :  { %3691 = vmatpush1.bf16.msra.mxu0 %v1673_v25  ;;  %2875 = vmatprep.subr.bf16.mxu1 %v1068_v26  ;;  %v1693_v25 = vunpack.c.l.s8.bf16 %v627_v23  ;;  %v1088_v26 = vunpack.c.h.s8.bf16 %v324_v16  ;;  %v5426_v16 = vld [vmem:[%s6447_s5 + $0x4c] ss:$316 sps:$4 sm:$0xff]  }
 0x2c8   :  { %3692 = vmatprep.subr.bf16.mxu0 %v1676_v27  ;;  %v1696_v27 = vunpack.c.h.s8.bf16 %v628_v17  ;;  %v5429_v17 = vld [vmem:[%s6447_s5 + $0xe4] ss:$316 sps:$4 sm:$0xff]  }
 0x2ca   :  { %2876 = vmatpush1.bf16.msra.mxu1 %v1067_v30  ;;  %v1087_v30 = vunpack.c.h.s8.bf16 %v323_v22  ;;  %v333_v22 = vld [vmem:[#allocation2 + $0x490] sm:$0xff] }
 0x2cb   :  { %3693 = vmatpush1.bf16.msra.mxu0 %v1675_v31  ;;  %2888 = vmatprep.subr.bf16.mxu1 %v1070_v32  ;;  %v1695_v31 = vunpack.c.h.s8.bf16 %v627_v23  ;;  %v1090_v32 = vunpack.c.l.s8.bf16 %v326_v28  ;;  %v637_v23 = vld [vmem:[#allocation2 + $0xe10] sm:$0xff] }
 0x2cc   :  { %3705 = vmatprep.subr.bf16.mxu0 %v1678_v33  ;;  %v1698_v33 = vunpack.c.l.s8.bf16 %v630_v29 }
 0x2cd   :  { %2878 = vmatmul.mubr.bf16.vlgmr.msra.gmra.mrb[0].mxu1 %v5412_v36  ;;  %v1089_v36 = vunpack.c.l.s8.bf16 %v325_v34  ;;  %v335_v34 = vld [vmem:[#allocation2 + $0x4a0] sm:$0xff] }
 0x2ce   :  { %3695 = vmatmul.mubr.bf16.vlgmr.msra.gmra.mrb[0].mxu0 %v5415_v37  ;;  %2889 = vmatpush1.bf16.msra.mxu1 %v1069_v38  ;;  %v1697_v37 = vunpack.c.l.s8.bf16 %v629_v35  ;;  %v1092_v38 = vunpack.c.h.s8.bf16 %v326_v28  ;;  %v336_v28 = vld [vmem:[#allocation2 + $0x4a8] sm:$0xff]  ;;  %v639_v35 = vld [vmem:[#allocation2 + $0xe20] sm:$0xff] }
 0x2cf   :  { %3706 = vmatpush1.bf16.msra.mxu0 %v1677_v39  ;;  %2890 = vmatprep.subr.bf16.mxu1 %v1072_v40  ;;  %v1700_v39 = vunpack.c.h.s8.bf16 %v630_v29  ;;  %v328_v40 = vld [vmem:[#allocation2 + $0x468] sm:$0xff] }
 0x2d0   :  { %3707 = vmatprep.subr.bf16.mxu0 %v1680_v41  ;;  %2920 = vmatprep.mubr.bf16.mxu1 %v5420_v44  ;;  %v632_v41 = vld [vmem:[#allocation2 + $0xde8] sm:$0xff]  ;;  %v1094_v44 = vunpack.c.l.s8.bf16 %v328_v40  ;;  %v1096_v50 = vunpack.c.h.s8.bf16 %v328_v40  ;;  %v338_v40 = vld [vmem:[#allocation2 + $0x4b8] sm:$0xff] }
 0x2d1   :  { %3737 = vmatprep.mubr.bf16.mxu0 %v5423_v45  ;;  %v1702_v45 = vunpack.c.l.s8.bf16 %v632_v41  ;;  %v1704_v51 = vunpack.c.h.s8.bf16 %v632_v41  ;;  %v640_v29 = vld [vmem:[#allocation2 + $0xe28] sm:$0xff]  ;;  %v642_v41 = vld [vmem:[#allocation2 + $0xe38] sm:$0xff] }
 0x2d2   :  { %2891 = vmatpush1.bf16.msra.mxu1 %v1071_v46  ;;  %v327_v46 = vld [vmem:[#allocation2 + $0x460] sm:$0xff] }
 0x2d3   :  { %3708 = vmatpush1.bf16.msra.mxu0 %v1679_v47  ;;  %2892 = vmatprep.subr.bf16.mxu1 %v1074_v48  ;;  %v631_v47 = vld [vmem:[#allocation2 + $0xde0] sm:$0xff]  ;;  %v1093_v48 = vunpack.c.l.s8.bf16 %v327_v46 }
 0x2d4   :  { %3709 = vmatprep.subr.bf16.mxu0 %v1682_v49  ;;  %v1701_v49 = vunpack.c.l.s8.bf16 %v631_v47 }
 0x2d6   :  { %2893 = vmatpush1.bf16.msra.mxu1 %v1073_v52  ;;  %v330_v52 = vld [vmem:[#allocation2 + $0x478] sm:$0xff] }
 0x2d7   :  { %3710 = vmatpush1.bf16.msra.mxu0 %v1681_v53  ;;  %2894 = vmatprep.subr.bf16.mxu1 %v1076_v54  ;;  %v634_v53 = vld [vmem:[#allocation2 + $0xdf8] sm:$0xff]  ;;  %v1095_v54 = vunpack.c.h.s8.bf16 %v327_v46  ;;  %v1098_v56 = vunpack.c.l.s8.bf16 %v330_v52  ;;  %v1100_v62 = vunpack.c.h.s8.bf16 %v330_v52  ;;  %v337_v46 = vld [vmem:[#allocation2 + $0x4b0] sm:$0xff]  ;;  %v340_v52 = vld [vmem:[#allocation2 + $0x4c8] sm:$0xff] }
 0x2d8   :  { %3711 = vmatprep.subr.bf16.mxu0 %v1684_v55  ;;  %v1703_v55 = vunpack.c.h.s8.bf16 %v631_v47  ;;  %v1706_v57 = vunpack.c.l.s8.bf16 %v634_v53  ;;  %v1708_v63 = vunpack.c.h.s8.bf16 %v634_v53  ;;  %v641_v47 = vld [vmem:[#allocation2 + $0xe30] sm:$0xff]  ;;  %v644_v53 = vld [vmem:[#allocation2 + $0xe48] sm:$0xff] }
 0x2da   :  { %2895 = vmatpush1.bf16.msra.mxu1 %v1075_v58  ;;  %v329_v58 = vld [vmem:[#allocation2 + $0x470] sm:$0xff] }
 0x2db   :  { %3712 = vmatpush1.bf16.msra.mxu0 %v1683_v59  ;;  %2896 = vmatprep.subr.bf16.mxu1 %v1078_v60  ;;  %v633_v59 = vld [vmem:[#allocation2 + $0xdf0] sm:$0xff]  ;;  %v1097_v60 = vunpack.c.l.s8.bf16 %v329_v58 }
 0x2dc   :  { %3713 = vmatprep.subr.bf16.mxu0 %v1686_v61  ;;  %v1705_v61 = vunpack.c.l.s8.bf16 %v633_v59 }
 0x2de   :  { %2897 = vmatpush1.bf16.msra.mxu1 %v1077_v0  ;;  %v332_v0 = vld [vmem:[#allocation2 + $0x488] sm:$0xff] }
 0x2df   :  { %3714 = vmatpush1.bf16.msra.mxu0 %v1685_v1  ;;  %2898 = vmatprep.subr.bf16.mxu1 %v1080_v2  ;;  %v636_v1 = vld [vmem:[#allocation2 + $0xe08] sm:$0xff]  ;;  %v1099_v2 = vunpack.c.h.s8.bf16 %v329_v58  ;;  %v1102_v4 = vunpack.c.l.s8.bf16 %v332_v0  ;;  %v339_v58 = vld [vmem:[#allocation2 + $0x4c0] sm:$0xff] }
 0x2e0   :  { %3715 = vmatprep.subr.bf16.mxu0 %v1688_v3  ;;  %v1707_v3 = vunpack.c.h.s8.bf16 %v633_v59  ;;  %v1710_v5 = vunpack.c.l.s8.bf16 %v636_v1  ;;  %v643_v59 = vld [vmem:[#allocation2 + $0xe40] sm:$0xff] }
 0x2e2   :  { %2899 = vmatpush1.bf16.msra.mxu1 %v1079_v6  ;;  %v331_v6 = vld [vmem:[#allocation2 + $0x480] sm:$0xff] }
 0x2e3   :  { %3716 = vmatpush1.bf16.msra.mxu0 %v1687_v7  ;;  %2900 = vmatprep.subr.bf16.mxu1 %v1082_v8  ;;  %v635_v7 = vld [vmem:[#allocation2 + $0xe00] sm:$0xff]  ;;  %v1101_v10 = vunpack.c.l.s8.bf16 %v331_v6 }
 0x2e4   :  { %3717 = vmatprep.subr.bf16.mxu0 %v1690_v9  ;;  %v5418_v8 = vld [vmem:[%s6447_s5 + $0x40] ss:$316 sps:$4 sm:$0xff]   ;;  %v5421_v9 = vld [vmem:[%s6447_s5 + $0xd8] ss:$316 sps:$4 sm:$0xff]   ;;  %v1709_v11 = vunpack.c.l.s8.bf16 %v635_v7 }
 0x2e6   :  { %2901 = vmatpush1.bf16.msra.mxu1 %v1081_v12  ;;  %v1104_v12 = vunpack.c.h.s8.bf16 %v332_v0  ;;  %v342_v0 = vld [vmem:[#allocation2 + $0x4d8] sm:$0xff] }
 0x2e7   :  { %3718 = vmatpush1.bf16.msra.mxu0 %v1689_v13  ;;  %2902 = vmatprep.subr.bf16.mxu1 %v1084_v14  ;;  %v1712_v13 = vunpack.c.h.s8.bf16 %v636_v1  ;;  %v334_v14 = vld [vmem:[#allocation2 + $0x498] sm:$0xff] }
 0x2e8   :  { %3719 = vmatprep.subr.bf16.mxu0 %v1692_v15  ;;  %v638_v15 = vld [vmem:[#allocation2 + $0xe18] sm:$0xff] }
 0x2e9   :  { %v646_v1 = vld [vmem:[#allocation2 + $0xe58] sm:$0xff] }
 0x2ea   :  { %2903 = vmatpush1.bf16.msra.mxu1 %v1083_v18  ;;  %v1103_v18 = vunpack.c.h.s8.bf16 %v331_v6  ;;  %v341_v6 = vld [vmem:[#allocation2 + $0x4d0] sm:$0xff] }
 0x2eb   :  { %3720 = vmatpush1.bf16.msra.mxu0 %v1691_v19  ;;  %2904 = vmatprep.subr.bf16.mxu1 %v1086_v20  ;;  %v1711_v19 = vunpack.c.h.s8.bf16 %v635_v7  ;;  %v1106_v20 = vunpack.c.l.s8.bf16 %v334_v14  ;;  %v645_v7 = vld [vmem:[#allocation2 + $0xe50] sm:$0xff] }
 0x2ec   :  { %3721 = vmatprep.subr.bf16.mxu0 %v1694_v21  ;;  %v1714_v21 = vunpack.c.l.s8.bf16 %v638_v15 }
 0x2ee   :  { %2905 = vmatpush1.bf16.msra.mxu1 %v1085_v24  ;;  %v1105_v24 = vunpack.c.l.s8.bf16 %v333_v22 }
 0x2ef   :  { %3722 = vmatpush1.bf16.msra.mxu0 %v1693_v25  ;;  %2906 = vmatprep.subr.bf16.mxu1 %v1088_v26  ;;  %v1713_v25 = vunpack.c.l.s8.bf16 %v637_v23  ;;  %v1108_v26 = vunpack.c.h.s8.bf16 %v334_v14  ;;  %v1123_v14 = vunpack.c.h.s8.bf16 %v341_v6 }
 0x2f0   :  { %3723 = vmatprep.subr.bf16.mxu0 %v1696_v27  ;;  %v1716_v27 = vunpack.c.h.s8.bf16 %v638_v15  ;;  %v1731_v15 = vunpack.c.h.s8.bf16 %v645_v7 }
 0x2f2   :  { %2907 = vmatpush1.bf16.msra.mxu1 %v1087_v30  ;;  %v1107_v30 = vunpack.c.h.s8.bf16 %v333_v22 }
 0x2f3   :  { %3724 = vmatpush1.bf16.msra.mxu0 %v1695_v31  ;;  %2908 = vmatprep.subr.bf16.mxu1 %v1090_v32  ;;  %v1715_v31 = vunpack.c.h.s8.bf16 %v637_v23  ;;  %v1110_v32 = vunpack.c.l.s8.bf16 %v336_v28 }
 0x2f4   :  { %3725 = vmatprep.subr.bf16.mxu0 %v1698_v33  ;;  %v1718_v33 = vunpack.c.l.s8.bf16 %v640_v29 }
 0x2f6   :  { %2909 = vmatpush1.bf16.msra.mxu1 %v1089_v36  ;;  %v1109_v36 = vunpack.c.l.s8.bf16 %v335_v34 }
 0x2f7   :  { %3726 = vmatpush1.bf16.msra.mxu0 %v1697_v37  ;;  %2910 = vmatprep.subr.bf16.mxu1 %v1092_v38  ;;  %v1717_v37 = vunpack.c.l.s8.bf16 %v639_v35  ;;  %v1112_v38 = vunpack.c.h.s8.bf16 %v336_v28 }
 0x2f8   :  { %3727 = vmatprep.subr.bf16.mxu0 %v1700_v39  ;;  %v1720_v39 = vunpack.c.h.s8.bf16 %v640_v29 }
 0x2fa   :  { %2911 = vmatpush1.bf16.msra.mxu1 %v1091_v42  ;;  %v1111_v42 = vunpack.c.h.s8.bf16 %v335_v34 }
 0x2fb   :  { %3728 = vmatpush1.bf16.msra.mxu0 %v1699_v43  ;;  %2912 = vmatprep.subr.bf16.mxu1 %v1094_v44  ;;  %v1719_v43 = vunpack.c.h.s8.bf16 %v639_v35  ;;  %v1114_v44 = vunpack.c.l.s8.bf16 %v338_v40 }
 0x2fc   :  { %3729 = vmatprep.subr.bf16.mxu0 %v1702_v45  ;;  %v1722_v45 = vunpack.c.l.s8.bf16 %v642_v41 }
 0x2fe   :  { %2913 = vmatpush1.bf16.msra.mxu1 %v1093_v48  ;;  %v1113_v48 = vunpack.c.l.s8.bf16 %v337_v46 }
 0x2ff   :  { %3730 = vmatpush1.bf16.msra.mxu0 %v1701_v49  ;;  %2914 = vmatprep.subr.bf16.mxu1 %v1096_v50  ;;  %v1721_v49 = vunpack.c.l.s8.bf16 %v641_v47  ;;  %v1116_v50 = vunpack.c.h.s8.bf16 %v338_v40 }
 0x300   :  { %3731 = vmatprep.subr.bf16.mxu0 %v1704_v51  ;;  %v1724_v51 = vunpack.c.h.s8.bf16 %v642_v41 }
 0x302   :  { %2915 = vmatpush1.bf16.msra.mxu1 %v1095_v54  ;;  %v1115_v54 = vunpack.c.h.s8.bf16 %v337_v46 }
 0x303   :  { %3732 = vmatpush1.bf16.msra.mxu0 %v1703_v55  ;;  %2916 = vmatprep.subr.bf16.mxu1 %v1098_v56  ;;  %v1723_v55 = vunpack.c.h.s8.bf16 %v641_v47  ;;  %v1118_v56 = vunpack.c.l.s8.bf16 %v340_v52 }
 0x304   :  { %3733 = vmatprep.subr.bf16.mxu0 %v1706_v57  ;;  %v1726_v57 = vunpack.c.l.s8.bf16 %v644_v53 }
 0x306   :  { %2917 = vmatpush1.bf16.msra.mxu1 %v1097_v60  ;;  %v1117_v60 = vunpack.c.l.s8.bf16 %v339_v58 }
 0x307   :  { %3734 = vmatpush1.bf16.msra.mxu0 %v1705_v61  ;;  %2918 = vmatprep.subr.bf16.mxu1 %v1100_v62  ;;  %v1725_v61 = vunpack.c.l.s8.bf16 %v643_v59  ;;  %v1120_v62 = vunpack.c.h.s8.bf16 %v340_v52  ;;  %v5432_v52 = vld [vmem:[%s6447_s5 + $0x54] ss:$316 sps:$4 sm:$0xff]  }
 0x308   :  { %3735 = vmatprep.subr.bf16.mxu0 %v1708_v63  ;;  %v1728_v63 = vunpack.c.h.s8.bf16 %v644_v53  ;;  %v5435_v53 = vld [vmem:[%s6447_s5 + $0xec] ss:$316 sps:$4 sm:$0xff]  }
 0x30a   :  { %2919 = vmatpush1.bf16.msra.mxu1 %v1099_v2  ;;  %v1119_v2 = vunpack.c.h.s8.bf16 %v339_v58  ;;  %v349_v58 = vld [vmem:[#allocation2 + $0x510] sm:$0xff] }
 0x30b   :  { %3736 = vmatpush1.bf16.msra.mxu0 %v1707_v3  ;;  %2931 = vmatprep.subr.bf16.mxu1 %v1102_v4  ;;  %v1727_v3 = vunpack.c.h.s8.bf16 %v643_v59  ;;  %v1122_v4 = vunpack.c.l.s8.bf16 %v342_v0  ;;  %v653_v59 = vld [vmem:[#allocation2 + $0xe90] sm:$0xff] }
 0x30c   :  { %3748 = vmatprep.subr.bf16.mxu0 %v1710_v5  ;;  %v1730_v5 = vunpack.c.l.s8.bf16 %v646_v1 }
 0x30d   :  { %2921 = vmatmul.mubr.bf16.vlgmr.msra.gmra.mrb[0].mxu1 %v5418_v8  ;;  %v1121_v8 = vunpack.c.l.s8.bf16 %v341_v6  ;;  %v351_v6 = vld [vmem:[#allocation2 + $0x520] sm:$0xff] }
 0x30e   :  { %3738 = vmatmul.mubr.bf16.vlgmr.msra.gmra.mrb[0].mxu0 %v5421_v9  ;;  %2932 = vmatpush1.bf16.msra.mxu1 %v1101_v10  ;;  %v1729_v9 = vunpack.c.l.s8.bf16 %v645_v7  ;;  %v1124_v10 = vunpack.c.h.s8.bf16 %v342_v0  ;;  %v352_v0 = vld [vmem:[#allocation2 + $0x528] sm:$0xff]  ;;  %v655_v7 = vld [vmem:[#allocation2 + $0xea0] sm:$0xff] }
 0x30f   :  { %3749 = vmatpush1.bf16.msra.mxu0 %v1709_v11  ;;  %2933 = vmatprep.subr.bf16.mxu1 %v1104_v12  ;;  %v1732_v11 = vunpack.c.h.s8.bf16 %v646_v1  ;;  %v344_v12 = vld [vmem:[#allocation2 + $0x4e8] sm:$0xff] }
 0x310   :  { %3750 = vmatprep.subr.bf16.mxu0 %v1712_v13  ;;  %2963 = vmatprep.mubr.bf16.mxu1 %v5426_v16  ;;  %v648_v13 = vld [vmem:[#allocation2 + $0xe68] sm:$0xff]  ;;  %v1126_v16 = vunpack.c.l.s8.bf16 %v344_v12  ;;  %v1128_v22 = vunpack.c.h.s8.bf16 %v344_v12  ;;  %v354_v12 = vld [vmem:[#allocation2 + $0x538] sm:$0xff] }
 0x311   :  { %3780 = vmatprep.mubr.bf16.mxu0 %v5429_v17  ;;  %v1734_v17 = vunpack.c.l.s8.bf16 %v648_v13  ;;  %v1736_v23 = vunpack.c.h.s8.bf16 %v648_v13  ;;  %v656_v1 = vld [vmem:[#allocation2 + $0xea8] sm:$0xff]  ;;  %v658_v13 = vld [vmem:[#allocation2 + $0xeb8] sm:$0xff] }
 0x312   :  { %2934 = vmatpush1.bf16.msra.mxu1 %v1103_v18  ;;  %v343_v18 = vld [vmem:[#allocation2 + $0x4e0] sm:$0xff] }
 0x313   :  { %3751 = vmatpush1.bf16.msra.mxu0 %v1711_v19  ;;  %2935 = vmatprep.subr.bf16.mxu1 %v1106_v20  ;;  %v647_v19 = vld [vmem:[#allocation2 + $0xe60] sm:$0xff]  ;;  %v1125_v20 = vunpack.c.l.s8.bf16 %v343_v18 }
 0x314   :  { %3752 = vmatprep.subr.bf16.mxu0 %v1714_v21  ;;  %v1733_v21 = vunpack.c.l.s8.bf16 %v647_v19 }
 0x316   :  { %2936 = vmatpush1.bf16.msra.mxu1 %v1105_v24  ;;  %v346_v24 = vld [vmem:[#allocation2 + $0x4f8] sm:$0xff] }
 0x317   :  { %3753 = vmatpush1.bf16.msra.mxu0 %v1713_v25  ;;  %2937 = vmatprep.subr.bf16.mxu1 %v1108_v26  ;;  %v650_v25 = vld [vmem:[#allocation2 + $0xe78] sm:$0xff]  ;;  %v1127_v26 = vunpack.c.h.s8.bf16 %v343_v18  ;;  %v1130_v28 = vunpack.c.l.s8.bf16 %v346_v24  ;;  %v1132_v34 = vunpack.c.h.s8.bf16 %v346_v24  ;;  %v353_v18 = vld [vmem:[#allocation2 + $0x530] sm:$0xff]  ;;  %v356_v24 = vld [vmem:[#allocation2 + $0x548] sm:$0xff] }
 0x318   :  { %3754 = vmatprep.subr.bf16.mxu0 %v1716_v27  ;;  %v1735_v27 = vunpack.c.h.s8.bf16 %v647_v19  ;;  %v1738_v29 = vunpack.c.l.s8.bf16 %v650_v25  ;;  %v1740_v35 = vunpack.c.h.s8.bf16 %v650_v25  ;;  %v657_v19 = vld [vmem:[#allocation2 + $0xeb0] sm:$0xff]  ;;  %v660_v25 = vld [vmem:[#allocation2 + $0xec8] sm:$0xff] }
 0x31a   :  { %2938 = vmatpush1.bf16.msra.mxu1 %v1107_v30  ;;  %v345_v30 = vld [vmem:[#allocation2 + $0x4f0] sm:$0xff] }
 0x31b   :  { %3755 = vmatpush1.bf16.msra.mxu0 %v1715_v31  ;;  %2939 = vmatprep.subr.bf16.mxu1 %v1110_v32  ;;  %v649_v31 = vld [vmem:[#allocation2 + $0xe70] sm:$0xff]  ;;  %v1129_v32 = vunpack.c.l.s8.bf16 %v345_v30 }
 0x31c   :  { %3756 = vmatprep.subr.bf16.mxu0 %v1718_v33  ;;  %v1737_v33 = vunpack.c.l.s8.bf16 %v649_v31 }
 0x31e   :  { %2940 = vmatpush1.bf16.msra.mxu1 %v1109_v36  ;;  %v348_v36 = vld [vmem:[#allocation2 + $0x508] sm:$0xff] }
 0x31f   :  { %3757 = vmatpush1.bf16.msra.mxu0 %v1717_v37  ;;  %2941 = vmatprep.subr.bf16.mxu1 %v1112_v38  ;;  %v652_v37 = vld [vmem:[#allocation2 + $0xe88] sm:$0xff]  ;;  %v1131_v38 = vunpack.c.h.s8.bf16 %v345_v30  ;;  %v1134_v40 = vunpack.c.l.s8.bf16 %v348_v36  ;;  %v355_v30 = vld [vmem:[#allocation2 + $0x540] sm:$0xff] }
 0x320   :  { %3758 = vmatprep.subr.bf16.mxu0 %v1720_v39  ;;  %v1739_v39 = vunpack.c.h.s8.bf16 %v649_v31  ;;  %v1742_v41 = vunpack.c.l.s8.bf16 %v652_v37  ;;  %v659_v31 = vld [vmem:[#allocation2 + $0xec0] sm:$0xff] }
 0x322   :  { %2942 = vmatpush1.bf16.msra.mxu1 %v1111_v42  ;;  %v347_v42 = vld [vmem:[#allocation2 + $0x500] sm:$0xff] }
 0x323   :  { %3759 = vmatpush1.bf16.msra.mxu0 %v1719_v43  ;;  %2943 = vmatprep.subr.bf16.mxu1 %v1114_v44  ;;  %v651_v43 = vld [vmem:[#allocation2 + $0xe80] sm:$0xff]  ;;  %v1133_v46 = vunpack.c.l.s8.bf16 %v347_v42 }
 0x324   :  { %3760 = vmatprep.subr.bf16.mxu0 %v1722_v45  ;;  %v5424_v44 = vld [vmem:[%s6447_s5 + $0x48] ss:$316 sps:$4 sm:$0xff]   ;;  %v5427_v45 = vld [vmem:[%s6447_s5 + $0xe0] ss:$316 sps:$4 sm:$0xff]   ;;  %v1741_v47 = vunpack.c.l.s8.bf16 %v651_v43 }
 0x326   :  { %2944 = vmatpush1.bf16.msra.mxu1 %v1113_v48  ;;  %v1136_v48 = vunpack.c.h.s8.bf16 %v348_v36  ;;  %v358_v36 = vld [vmem:[#allocation2 + $0x558] sm:$0xff] }
 0x327   :  { %3761 = vmatpush1.bf16.msra.mxu0 %v1721_v49  ;;  %2945 = vmatprep.subr.bf16.mxu1 %v1116_v50  ;;  %v1744_v49 = vunpack.c.h.s8.bf16 %v652_v37  ;;  %v350_v50 = vld [vmem:[#allocation2 + $0x518] sm:$0xff] }
 0x328   :  { %3762 = vmatprep.subr.bf16.mxu0 %v1724_v51  ;;  %v654_v51 = vld [vmem:[#allocation2 + $0xe98] sm:$0xff] }
 0x329   :  { %v662_v37 = vld [vmem:[#allocation2 + $0xed8] sm:$0xff] }
 0x32a   :  { %2946 = vmatpush1.bf16.msra.mxu1 %v1115_v54  ;;  %v1135_v54 = vunpack.c.h.s8.bf16 %v347_v42  ;;  %v357_v42 = vld [vmem:[#allocation2 + $0x550] sm:$0xff] }
 0x32b   :  { %3763 = vmatpush1.bf16.msra.mxu0 %v1723_v55  ;;  %2947 = vmatprep.subr.bf16.mxu1 %v1118_v56  ;;  %v1743_v55 = vunpack.c.h.s8.bf16 %v651_v43  ;;  %v1138_v56 = vunpack.c.l.s8.bf16 %v350_v50  ;;  %v661_v43 = vld [vmem:[#allocation2 + $0xed0] sm:$0xff] }
 0x32c   :  { %3764 = vmatprep.subr.bf16.mxu0 %v1726_v57  ;;  %v1746_v57 = vunpack.c.l.s8.bf16 %v654_v51 }
 0x32e   :  { %2948 = vmatpush1.bf16.msra.mxu1 %v1117_v60  ;;  %v1137_v60 = vunpack.c.l.s8.bf16 %v349_v58 }
 0x32f   :  { %3765 = vmatpush1.bf16.msra.mxu0 %v1725_v61  ;;  %2949 = vmatprep.subr.bf16.mxu1 %v1120_v62  ;;  %v1745_v61 = vunpack.c.l.s8.bf16 %v653_v59  ;;  %v1140_v62 = vunpack.c.h.s8.bf16 %v350_v50  ;;  %v1155_v50 = vunpack.c.h.s8.bf16 %v357_v42 }
 0x330   :  { %3766 = vmatprep.subr.bf16.mxu0 %v1728_v63  ;;  %v1748_v63 = vunpack.c.h.s8.bf16 %v654_v51  ;;  %v1763_v51 = vunpack.c.h.s8.bf16 %v661_v43 }
 0x332   :  { %2950 = vmatpush1.bf16.msra.mxu1 %v1119_v2  ;;  %v1139_v2 = vunpack.c.h.s8.bf16 %v349_v58 }
 0x333   :  { %3767 = vmatpush1.bf16.msra.mxu0 %v1727_v3  ;;  %2951 = vmatprep.subr.bf16.mxu1 %v1122_v4  ;;  %v1747_v3 = vunpack.c.h.s8.bf16 %v653_v59  ;;  %v1142_v4 = vunpack.c.l.s8.bf16 %v352_v0 }
 0x334   :  { %3768 = vmatprep.subr.bf16.mxu0 %v1730_v5  ;;  %v1750_v5 = vunpack.c.l.s8.bf16 %v656_v1 }
 0x336   :  { %2952 = vmatpush1.bf16.msra.mxu1 %v1121_v8  ;;  %v1141_v8 = vunpack.c.l.s8.bf16 %v351_v6 }
 0x337   :  { %3769 = vmatpush1.bf16.msra.mxu0 %v1729_v9  ;;  %2953 = vmatprep.subr.bf16.mxu1 %v1124_v10  ;;  %v1749_v9 = vunpack.c.l.s8.bf16 %v655_v7  ;;  %v1144_v10 = vunpack.c.h.s8.bf16 %v352_v0 }
 0x338   :  { %3770 = vmatprep.subr.bf16.mxu0 %v1732_v11  ;;  %v1752_v11 = vunpack.c.h.s8.bf16 %v656_v1 }
 0x33a   :  { %2954 = vmatpush1.bf16.msra.mxu1 %v1123_v14  ;;  %v1143_v14 = vunpack.c.h.s8.bf16 %v351_v6 }
 0x33b   :  { %3771 = vmatpush1.bf16.msra.mxu0 %v1731_v15  ;;  %2955 = vmatprep.subr.bf16.mxu1 %v1126_v16  ;;  %v1751_v15 = vunpack.c.h.s8.bf16 %v655_v7  ;;  %v1146_v16 = vunpack.c.l.s8.bf16 %v354_v12 }
 0x33c   :  { %3772 = vmatprep.subr.bf16.mxu0 %v1734_v17  ;;  %v1754_v17 = vunpack.c.l.s8.bf16 %v658_v13 }
 0x33e   :  { %2956 = vmatpush1.bf16.msra.mxu1 %v1125_v20  ;;  %v1145_v20 = vunpack.c.l.s8.bf16 %v353_v18 }
 0x33f   :  { %3773 = vmatpush1.bf16.msra.mxu0 %v1733_v21  ;;  %2957 = vmatprep.subr.bf16.mxu1 %v1128_v22  ;;  %v1753_v21 = vunpack.c.l.s8.bf16 %v657_v19  ;;  %v1148_v22 = vunpack.c.h.s8.bf16 %v354_v12 }
 0x340   :  { %3774 = vmatprep.subr.bf16.mxu0 %v1736_v23  ;;  %v1756_v23 = vunpack.c.h.s8.bf16 %v658_v13 }
 0x342   :  { %2958 = vmatpush1.bf16.msra.mxu1 %v1127_v26  ;;  %v1147_v26 = vunpack.c.h.s8.bf16 %v353_v18 }
 0x343   :  { %3775 = vmatpush1.bf16.msra.mxu0 %v1735_v27  ;;  %2959 = vmatprep.subr.bf16.mxu1 %v1130_v28  ;;  %v1755_v27 = vunpack.c.h.s8.bf16 %v657_v19  ;;  %v1150_v28 = vunpack.c.l.s8.bf16 %v356_v24 }
 0x344   :  { %3776 = vmatprep.subr.bf16.mxu0 %v1738_v29  ;;  %v1758_v29 = vunpack.c.l.s8.bf16 %v660_v25 }
 0x346   :  { %2960 = vmatpush1.bf16.msra.mxu1 %v1129_v32  ;;  %v1149_v32 = vunpack.c.l.s8.bf16 %v355_v30 }
 0x347   :  { %3777 = vmatpush1.bf16.msra.mxu0 %v1737_v33  ;;  %2961 = vmatprep.subr.bf16.mxu1 %v1132_v34  ;;  %v1757_v33 = vunpack.c.l.s8.bf16 %v659_v31  ;;  %v1152_v34 = vunpack.c.h.s8.bf16 %v356_v24  ;;  %v5438_v24 = vld [vmem:[%s6447_s5 + $0x5c] ss:$316 sps:$4 sm:$0xff]  }
 0x348   :  { %3778 = vmatprep.subr.bf16.mxu0 %v1740_v35  ;;  %v1760_v35 = vunpack.c.h.s8.bf16 %v660_v25  ;;  %v5441_v25 = vld [vmem:[%s6447_s5 + $0xf4] ss:$316 sps:$4 sm:$0xff]  }
 0x34a   :  { %2962 = vmatpush1.bf16.msra.mxu1 %v1131_v38  ;;  %v1151_v38 = vunpack.c.h.s8.bf16 %v355_v30  ;;  %v365_v30 = vld [vmem:[#allocation2 + $0x590] sm:$0xff] }
 0x34b   :  { %3779 = vmatpush1.bf16.msra.mxu0 %v1739_v39  ;;  %2974 = vmatprep.subr.bf16.mxu1 %v1134_v40  ;;  %v1759_v39 = vunpack.c.h.s8.bf16 %v659_v31  ;;  %v1154_v40 = vunpack.c.l.s8.bf16 %v358_v36  ;;  %v669_v31 = vld [vmem:[#allocation2 + $0xf10] sm:$0xff] }
 0x34c   :  { %3791 = vmatprep.subr.bf16.mxu0 %v1742_v41  ;;  %v1762_v41 = vunpack.c.l.s8.bf16 %v662_v37 }
 0x34d   :  { %2964 = vmatmul.mubr.bf16.vlgmr.msra.gmra.mrb[0].mxu1 %v5424_v44  ;;  %v1153_v44 = vunpack.c.l.s8.bf16 %v357_v42  ;;  %v367_v42 = vld [vmem:[#allocation2 + $0x5a0] sm:$0xff] }
 0x34e   :  { %3781 = vmatmul.mubr.bf16.vlgmr.msra.gmra.mrb[0].mxu0 %v5427_v45  ;;  %2975 = vmatpush1.bf16.msra.mxu1 %v1133_v46  ;;  %v1761_v45 = vunpack.c.l.s8.bf16 %v661_v43  ;;  %v1156_v46 = vunpack.c.h.s8.bf16 %v358_v36  ;;  %v368_v36 = vld [vmem:[#allocation2 + $0x5a8] sm:$0xff]  ;;  %v671_v43 = vld [vmem:[#allocation2 + $0xf20] sm:$0xff] }
 0x34f   :  { %3792 = vmatpush1.bf16.msra.mxu0 %v1741_v47  ;;  %2976 = vmatprep.subr.bf16.mxu1 %v1136_v48  ;;  %v1764_v47 = vunpack.c.h.s8.bf16 %v662_v37  ;;  %v360_v48 = vld [vmem:[#allocation2 + $0x568] sm:$0xff] }
 0x350   :  { %3793 = vmatprep.subr.bf16.mxu0 %v1744_v49  ;;  %3006 = vmatprep.mubr.bf16.mxu1 %v5432_v52  ;;  %v664_v49 = vld [vmem:[#allocation2 + $0xee8] sm:$0xff]  ;;  %v1158_v52 = vunpack.c.l.s8.bf16 %v360_v48  ;;  %v1160_v58 = vunpack.c.h.s8.bf16 %v360_v48  ;;  %v370_v48 = vld [vmem:[#allocation2 + $0x5b8] sm:$0xff] }
 0x351   :  { %3823 = vmatprep.mubr.bf16.mxu0 %v5435_v53  ;;  %v1766_v53 = vunpack.c.l.s8.bf16 %v664_v49  ;;  %v1768_v59 = vunpack.c.h.s8.bf16 %v664_v49  ;;  %v672_v37 = vld [vmem:[#allocation2 + $0xf28] sm:$0xff]  ;;  %v674_v49 = vld [vmem:[#allocation2 + $0xf38] sm:$0xff] }
 0x352   :  { %2977 = vmatpush1.bf16.msra.mxu1 %v1135_v54  ;;  %v359_v54 = vld [vmem:[#allocation2 + $0x560] sm:$0xff] }
 0x353   :  { %3794 = vmatpush1.bf16.msra.mxu0 %v1743_v55  ;;  %2978 = vmatprep.subr.bf16.mxu1 %v1138_v56  ;;  %v663_v55 = vld [vmem:[#allocation2 + $0xee0] sm:$0xff]  ;;  %v1157_v56 = vunpack.c.l.s8.bf16 %v359_v54 }
 0x354   :  { %3795 = vmatprep.subr.bf16.mxu0 %v1746_v57  ;;  %v1765_v57 = vunpack.c.l.s8.bf16 %v663_v55 }
 0x356   :  { %2979 = vmatpush1.bf16.msra.mxu1 %v1137_v60  ;;  %v362_v60 = vld [vmem:[#allocation2 + $0x578] sm:$0xff] }
 0x357   :  { %3796 = vmatpush1.bf16.msra.mxu0 %v1745_v61  ;;  %2980 = vmatprep.subr.bf16.mxu1 %v1140_v62  ;;  %v666_v61 = vld [vmem:[#allocation2 + $0xef8] sm:$0xff]  ;;  %v1159_v62 = vunpack.c.h.s8.bf16 %v359_v54  ;;  %v1162_v0 = vunpack.c.l.s8.bf16 %v362_v60  ;;  %v1164_v6 = vunpack.c.h.s8.bf16 %v362_v60  ;;  %v369_v54 = vld [vmem:[#allocation2 + $0x5b0] sm:$0xff]  ;;  %v372_v60 = vld [vmem:[#allocation2 + $0x5c8] sm:$0xff] }
 0x358   :  { %3797 = vmatprep.subr.bf16.mxu0 %v1748_v63  ;;  %v1767_v63 = vunpack.c.h.s8.bf16 %v663_v55  ;;  %v1770_v1 = vunpack.c.l.s8.bf16 %v666_v61  ;;  %v1772_v7 = vunpack.c.h.s8.bf16 %v666_v61  ;;  %v673_v55 = vld [vmem:[#allocation2 + $0xf30] sm:$0xff]  ;;  %v676_v61 = vld [vmem:[#allocation2 + $0xf48] sm:$0xff] }
 0x35a   :  { %2981 = vmatpush1.bf16.msra.mxu1 %v1139_v2  ;;  %v361_v2 = vld [vmem:[#allocation2 + $0x570] sm:$0xff] }
 0x35b   :  { %3798 = vmatpush1.bf16.msra.mxu0 %v1747_v3  ;;  %2982 = vmatprep.subr.bf16.mxu1 %v1142_v4  ;;  %v665_v3 = vld [vmem:[#allocation2 + $0xef0] sm:$0xff]  ;;  %v1161_v4 = vunpack.c.l.s8.bf16 %v361_v2 }
 0x35c   :  { %3799 = vmatprep.subr.bf16.mxu0 %v1750_v5  ;;  %v1769_v5 = vunpack.c.l.s8.bf16 %v665_v3 }
 0x35e   :  { %2983 = vmatpush1.bf16.msra.mxu1 %v1141_v8  ;;  %v364_v8 = vld [vmem:[#allocation2 + $0x588] sm:$0xff] }
 0x35f   :  { %3800 = vmatpush1.bf16.msra.mxu0 %v1749_v9  ;;  %2984 = vmatprep.subr.bf16.mxu1 %v1144_v10  ;;  %v668_v9 = vld [vmem:[#allocation2 + $0xf08] sm:$0xff]  ;;  %v1163_v10 = vunpack.c.h.s8.bf16 %v361_v2  ;;  %v1166_v12 = vunpack.c.l.s8.bf16 %v364_v8  ;;  %v371_v2 = vld [vmem:[#allocation2 + $0x5c0] sm:$0xff] }
 0x360   :  { %3801 = vmatprep.subr.bf16.mxu0 %v1752_v11  ;;  %v1771_v11 = vunpack.c.h.s8.bf16 %v665_v3  ;;  %v1774_v13 = vunpack.c.l.s8.bf16 %v668_v9  ;;  %v675_v3 = vld [vmem:[#allocation2 + $0xf40] sm:$0xff] }
 0x362   :  { %2985 = vmatpush1.bf16.msra.mxu1 %v1143_v14  ;;  %v363_v14 = vld [vmem:[#allocation2 + $0x580] sm:$0xff] }
 0x363   :  { %3802 = vmatpush1.bf16.msra.mxu0 %v1751_v15  ;;  %2986 = vmatprep.subr.bf16.mxu1 %v1146_v16  ;;  %v667_v15 = vld [vmem:[#allocation2 + $0xf00] sm:$0xff]  ;;  %v5430_v16 = vld [vmem:[%s6447_s5 + $0x50] ss:$316 sps:$4 sm:$0xff]   ;;  %v1165_v18 = vunpack.c.l.s8.bf16 %v363_v14 }
 0x364   :  { %3803 = vmatprep.subr.bf16.mxu0 %v1754_v17  ;;  %v5433_v17 = vld [vmem:[%s6447_s5 + $0xe8] ss:$316 sps:$4 sm:$0xff]   ;;  %v1773_v19 = vunpack.c.l.s8.bf16 %v667_v15 }
 0x366   :  { %2987 = vmatpush1.bf16.msra.mxu1 %v1145_v20  ;;  %v1168_v20 = vunpack.c.h.s8.bf16 %v364_v8  ;;  %v374_v8 = vld [vmem:[#allocation2 + $0x5d8] sm:$0xff] }
 0x367   :  { %3804 = vmatpush1.bf16.msra.mxu0 %v1753_v21  ;;  %2988 = vmatprep.subr.bf16.mxu1 %v1148_v22  ;;  %v1776_v21 = vunpack.c.h.s8.bf16 %v668_v9  ;;  %v366_v22 = vld [vmem:[#allocation2 + $0x598] sm:$0xff] }
 0x368   :  { %3805 = vmatprep.subr.bf16.mxu0 %v1756_v23  ;;  %v670_v23 = vld [vmem:[#allocation2 + $0xf18] sm:$0xff] }
 0x369   :  { %v678_v9 = vld [vmem:[#allocation2 + $0xf58] sm:$0xff] }
 0x36a   :  { %2989 = vmatpush1.bf16.msra.mxu1 %v1147_v26  ;;  %v1167_v26 = vunpack.c.h.s8.bf16 %v363_v14  ;;  %v373_v14 = vld [vmem:[#allocation2 + $0x5d0] sm:$0xff] }
 0x36b   :  { %3806 = vmatpush1.bf16.msra.mxu0 %v1755_v27  ;;  %2990 = vmatprep.subr.bf16.mxu1 %v1150_v28  ;;  %v1775_v27 = vunpack.c.h.s8.bf16 %v667_v15  ;;  %v1170_v28 = vunpack.c.l.s8.bf16 %v366_v22  ;;  %v677_v15 = vld [vmem:[#allocation2 + $0xf50] sm:$0xff] }
 0x36c   :  { %3807 = vmatprep.subr.bf16.mxu0 %v1758_v29  ;;  %v1778_v29 = vunpack.c.l.s8.bf16 %v670_v23 }
 0x36e   :  { %2991 = vmatpush1.bf16.msra.mxu1 %v1149_v32  ;;  %v1169_v32 = vunpack.c.l.s8.bf16 %v365_v30 }
 0x36f   :  { %3808 = vmatpush1.bf16.msra.mxu0 %v1757_v33  ;;  %2992 = vmatprep.subr.bf16.mxu1 %v1152_v34  ;;  %v1777_v33 = vunpack.c.l.s8.bf16 %v669_v31  ;;  %v1172_v34 = vunpack.c.h.s8.bf16 %v366_v22  ;;  %v1187_v22 = vunpack.c.h.s8.bf16 %v373_v14 }
 0x370   :  { %3809 = vmatprep.subr.bf16.mxu0 %v1760_v35  ;;  %v1780_v35 = vunpack.c.h.s8.bf16 %v670_v23  ;;  %v1795_v23 = vunpack.c.h.s8.bf16 %v677_v15 }
 0x372   :  { %2993 = vmatpush1.bf16.msra.mxu1 %v1151_v38  ;;  %v1171_v38 = vunpack.c.h.s8.bf16 %v365_v30 }
 0x373   :  { %3810 = vmatpush1.bf16.msra.mxu0 %v1759_v39  ;;  %2994 = vmatprep.subr.bf16.mxu1 %v1154_v40  ;;  %v1779_v39 = vunpack.c.h.s8.bf16 %v669_v31  ;;  %v1174_v40 = vunpack.c.l.s8.bf16 %v368_v36 }
 0x374   :  { %3811 = vmatprep.subr.bf16.mxu0 %v1762_v41  ;;  %v1782_v41 = vunpack.c.l.s8.bf16 %v672_v37 }
 0x376   :  { %2995 = vmatpush1.bf16.msra.mxu1 %v1153_v44  ;;  %v1173_v44 = vunpack.c.l.s8.bf16 %v367_v42 }
 0x377   :  { %3812 = vmatpush1.bf16.msra.mxu0 %v1761_v45  ;;  %2996 = vmatprep.subr.bf16.mxu1 %v1156_v46  ;;  %v1781_v45 = vunpack.c.l.s8.bf16 %v671_v43  ;;  %v1176_v46 = vunpack.c.h.s8.bf16 %v368_v36 }
 0x378   :  { %3813 = vmatprep.subr.bf16.mxu0 %v1764_v47  ;;  %v1784_v47 = vunpack.c.h.s8.bf16 %v672_v37 }
 0x37a   :  { %2997 = vmatpush1.bf16.msra.mxu1 %v1155_v50  ;;  %v1175_v50 = vunpack.c.h.s8.bf16 %v367_v42 }
 0x37b   :  { %3814 = vmatpush1.bf16.msra.mxu0 %v1763_v51  ;;  %2998 = vmatprep.subr.bf16.mxu1 %v1158_v52  ;;  %v1783_v51 = vunpack.c.h.s8.bf16 %v671_v43  ;;  %v1178_v52 = vunpack.c.l.s8.bf16 %v370_v48 }
 0x37c   :  { %3815 = vmatprep.subr.bf16.mxu0 %v1766_v53  ;;  %v1786_v53 = vunpack.c.l.s8.bf16 %v674_v49 }
 0x37e   :  { %2999 = vmatpush1.bf16.msra.mxu1 %v1157_v56  ;;  %v1177_v56 = vunpack.c.l.s8.bf16 %v369_v54 }
 0x37f   :  { %3816 = vmatpush1.bf16.msra.mxu0 %v1765_v57  ;;  %3000 = vmatprep.subr.bf16.mxu1 %v1160_v58  ;;  %v1785_v57 = vunpack.c.l.s8.bf16 %v673_v55  ;;  %v1180_v58 = vunpack.c.h.s8.bf16 %v370_v48 }
 0x380   :  { %3817 = vmatprep.subr.bf16.mxu0 %v1768_v59  ;;  %v1788_v59 = vunpack.c.h.s8.bf16 %v674_v49 }
 0x382   :  { %3001 = vmatpush1.bf16.msra.mxu1 %v1159_v62  ;;  %v1179_v62 = vunpack.c.h.s8.bf16 %v369_v54 }
 0x383   :  { %3818 = vmatpush1.bf16.msra.mxu0 %v1767_v63  ;;  %3002 = vmatprep.subr.bf16.mxu1 %v1162_v0  ;;  %v1787_v63 = vunpack.c.h.s8.bf16 %v673_v55  ;;  %v1182_v0 = vunpack.c.l.s8.bf16 %v372_v60 }
 0x384   :  { %3819 = vmatprep.subr.bf16.mxu0 %v1770_v1  ;;  %v1790_v1 = vunpack.c.l.s8.bf16 %v676_v61 }
 0x386   :  { %3003 = vmatpush1.bf16.msra.mxu1 %v1161_v4  ;;  %v1181_v4 = vunpack.c.l.s8.bf16 %v371_v2 }
 0x387   :  { %3820 = vmatpush1.bf16.msra.mxu0 %v1769_v5  ;;  %3004 = vmatprep.subr.bf16.mxu1 %v1164_v6  ;;  %v1789_v5 = vunpack.c.l.s8.bf16 %v675_v3  ;;  %v1184_v6 = vunpack.c.h.s8.bf16 %v372_v60  ;;  %v5444_v60 = vld [vmem:[%s6447_s5 + $0x64] ss:$316 sps:$4 sm:$0xff]  }
 0x388   :  { %3821 = vmatprep.subr.bf16.mxu0 %v1772_v7  ;;  %v1792_v7 = vunpack.c.h.s8.bf16 %v676_v61  ;;  %v5447_v61 = vld [vmem:[%s6447_s5 + $0xfc] ss:$316 sps:$4 sm:$0xff]  }
 0x38a   :  { %3005 = vmatpush1.bf16.msra.mxu1 %v1163_v10  ;;  %v1183_v10 = vunpack.c.h.s8.bf16 %v371_v2  ;;  %v381_v2 = vld [vmem:[#allocation2 + $0x610] sm:$0xff] }
 0x38b   :  { %3822 = vmatpush1.bf16.msra.mxu0 %v1771_v11  ;;  %3017 = vmatprep.subr.bf16.mxu1 %v1166_v12  ;;  %v1791_v11 = vunpack.c.h.s8.bf16 %v675_v3  ;;  %v1186_v12 = vunpack.c.l.s8.bf16 %v374_v8  ;;  %v685_v3 = vld [vmem:[#allocation2 + $0xf90] sm:$0xff] }
 0x38c   :  { %3834 = vmatprep.subr.bf16.mxu0 %v1774_v13  ;;  %v1794_v13 = vunpack.c.l.s8.bf16 %v678_v9 }
 0x38d   :  { %3007 = vmatmul.mubr.bf16.vlgmr.msra.gmra.mrb[0].mxu1 %v5430_v16  ;;  %v1185_v16 = vunpack.c.l.s8.bf16 %v373_v14  ;;  %v383_v14 = vld [vmem:[#allocation2 + $0x620] sm:$0xff] }
 0x38e   :  { %3824 = vmatmul.mubr.bf16.vlgmr.msra.gmra.mrb[0].mxu0 %v5433_v17  ;;  %3018 = vmatpush1.bf16.msra.mxu1 %v1165_v18  ;;  %v1793_v17 = vunpack.c.l.s8.bf16 %v677_v15  ;;  %v1188_v18 = vunpack.c.h.s8.bf16 %v374_v8  ;;  %v384_v8 = vld [vmem:[#allocation2 + $0x628] sm:$0xff]  ;;  %v687_v15 = vld [vmem:[#allocation2 + $0xfa0] sm:$0xff] }
 0x38f   :  { %3835 = vmatpush1.bf16.msra.mxu0 %v1773_v19  ;;  %3019 = vmatprep.subr.bf16.mxu1 %v1168_v20  ;;  %v1796_v19 = vunpack.c.h.s8.bf16 %v678_v9  ;;  %v376_v20 = vld [vmem:[#allocation2 + $0x5e8] sm:$0xff] }
 0x390   :  { %3836 = vmatprep.subr.bf16.mxu0 %v1776_v21  ;;  %3049 = vmatprep.mubr.bf16.mxu1 %v5438_v24  ;;  %v680_v21 = vld [vmem:[#allocation2 + $0xf68] sm:$0xff]  ;;  %v1190_v24 = vunpack.c.l.s8.bf16 %v376_v20  ;;  %v1192_v30 = vunpack.c.h.s8.bf16 %v376_v20  ;;  %v386_v20 = vld [vmem:[#allocation2 + $0x638] sm:$0xff] }
 0x391   :  { %3866 = vmatprep.mubr.bf16.mxu0 %v5441_v25  ;;  %v1798_v25 = vunpack.c.l.s8.bf16 %v680_v21  ;;  %v1800_v31 = vunpack.c.h.s8.bf16 %v680_v21  ;;  %v688_v9 = vld [vmem:[#allocation2 + $0xfa8] sm:$0xff]  ;;  %v690_v21 = vld [vmem:[#allocation2 + $0xfb8] sm:$0xff] }
 0x392   :  { %3020 = vmatpush1.bf16.msra.mxu1 %v1167_v26  ;;  %v375_v26 = vld [vmem:[#allocation2 + $0x5e0] sm:$0xff] }
 0x393   :  { %3837 = vmatpush1.bf16.msra.mxu0 %v1775_v27  ;;  %3021 = vmatprep.subr.bf16.mxu1 %v1170_v28  ;;  %v679_v27 = vld [vmem:[#allocation2 + $0xf60] sm:$0xff]  ;;  %v1189_v28 = vunpack.c.l.s8.bf16 %v375_v26 }
 0x394   :  { %3838 = vmatprep.subr.bf16.mxu0 %v1778_v29  ;;  %v1797_v29 = vunpack.c.l.s8.bf16 %v679_v27 }
 0x396   :  { %3022 = vmatpush1.bf16.msra.mxu1 %v1169_v32  ;;  %v378_v32 = vld [vmem:[#allocation2 + $0x5f8] sm:$0xff] }
 0x397   :  { %3839 = vmatpush1.bf16.msra.mxu0 %v1777_v33  ;;  %3023 = vmatprep.subr.bf16.mxu1 %v1172_v34  ;;  %v682_v33 = vld [vmem:[#allocation2 + $0xf78] sm:$0xff]  ;;  %v1191_v34 = vunpack.c.h.s8.bf16 %v375_v26  ;;  %v1194_v36 = vunpack.c.l.s8.bf16 %v378_v32  ;;  %v1196_v42 = vunpack.c.h.s8.bf16 %v378_v32  ;;  %v385_v26 = vld [vmem:[#allocation2 + $0x630] sm:$0xff]  ;;  %v388_v32 = vld [vmem:[#allocation2 + $0x648] sm:$0xff] }
 0x398   :  { %3840 = vmatprep.subr.bf16.mxu0 %v1780_v35  ;;  %v1799_v35 = vunpack.c.h.s8.bf16 %v679_v27  ;;  %v1802_v37 = vunpack.c.l.s8.bf16 %v682_v33  ;;  %v1804_v43 = vunpack.c.h.s8.bf16 %v682_v33  ;;  %v689_v27 = vld [vmem:[#allocation2 + $0xfb0] sm:$0xff]  ;;  %v692_v33 = vld [vmem:[#allocation2 + $0xfc8] sm:$0xff] }
 0x39a   :  { %3024 = vmatpush1.bf16.msra.mxu1 %v1171_v38  ;;  %v377_v38 = vld [vmem:[#allocation2 + $0x5f0] sm:$0xff] }
 0x39b   :  { %3841 = vmatpush1.bf16.msra.mxu0 %v1779_v39  ;;  %3025 = vmatprep.subr.bf16.mxu1 %v1174_v40  ;;  %v681_v39 = vld [vmem:[#allocation2 + $0xf70] sm:$0xff]  ;;  %v1193_v40 = vunpack.c.l.s8.bf16 %v377_v38 }
 0x39c   :  { %3842 = vmatprep.subr.bf16.mxu0 %v1782_v41  ;;  %v1801_v41 = vunpack.c.l.s8.bf16 %v681_v39 }
 0x39e   :  { %3026 = vmatpush1.bf16.msra.mxu1 %v1173_v44  ;;  %v380_v44 = vld [vmem:[#allocation2 + $0x608] sm:$0xff] }
 0x39f   :  { %3843 = vmatpush1.bf16.msra.mxu0 %v1781_v45  ;;  %3027 = vmatprep.subr.bf16.mxu1 %v1176_v46  ;;  %v684_v45 = vld [vmem:[#allocation2 + $0xf88] sm:$0xff]  ;;  %v1195_v46 = vunpack.c.h.s8.bf16 %v377_v38  ;;  %v1198_v48 = vunpack.c.l.s8.bf16 %v380_v44  ;;  %v387_v38 = vld [vmem:[#allocation2 + $0x640] sm:$0xff] }
 0x3a0   :  { %3844 = vmatprep.subr.bf16.mxu0 %v1784_v47  ;;  %v1803_v47 = vunpack.c.h.s8.bf16 %v681_v39  ;;  %v1806_v49 = vunpack.c.l.s8.bf16 %v684_v45  ;;  %v691_v39 = vld [vmem:[#allocation2 + $0xfc0] sm:$0xff] }
 0x3a2   :  { %3028 = vmatpush1.bf16.msra.mxu1 %v1175_v50  ;;  %v379_v50 = vld [vmem:[#allocation2 + $0x600] sm:$0xff] }
 0x3a3   :  { %3845 = vmatpush1.bf16.msra.mxu0 %v1783_v51  ;;  %3029 = vmatprep.subr.bf16.mxu1 %v1178_v52  ;;  %v683_v51 = vld [vmem:[#allocation2 + $0xf80] sm:$0xff]  ;;  %v5436_v52 = vld [vmem:[%s6447_s5 + $0x58] ss:$316 sps:$4 sm:$0xff]   ;;  %v1197_v54 = vunpack.c.l.s8.bf16 %v379_v50 }
 0x3a4   :  { %3846 = vmatprep.subr.bf16.mxu0 %v1786_v53  ;;  %v5439_v53 = vld [vmem:[%s6447_s5 + $0xf0] ss:$316 sps:$4 sm:$0xff]   ;;  %v1805_v55 = vunpack.c.l.s8.bf16 %v683_v51 }
 0x3a6   :  { %3030 = vmatpush1.bf16.msra.mxu1 %v1177_v56  ;;  %v1200_v56 = vunpack.c.h.s8.bf16 %v380_v44  ;;  %v390_v44 = vld [vmem:[#allocation2 + $0x658] sm:$0xff] }
 0x3a7   :  { %3847 = vmatpush1.bf16.msra.mxu0 %v1785_v57  ;;  %3031 = vmatprep.subr.bf16.mxu1 %v1180_v58  ;;  %v1808_v57 = vunpack.c.h.s8.bf16 %v684_v45  ;;  %v382_v58 = vld [vmem:[#allocation2 + $0x618] sm:$0xff] }
 0x3a8   :  { %3848 = vmatprep.subr.bf16.mxu0 %v1788_v59  ;;  %v686_v59 = vld [vmem:[#allocation2 + $0xf98] sm:$0xff] }
 0x3a9   :  { %v694_v45 = vld [vmem:[#allocation2 + $0xfd8] sm:$0xff] }
 0x3aa   :  { %3032 = vmatpush1.bf16.msra.mxu1 %v1179_v62  ;;  %v1199_v62 = vunpack.c.h.s8.bf16 %v379_v50  ;;  %v389_v50 = vld [vmem:[#allocation2 + $0x650] sm:$0xff] }
 0x3ab   :  { %3849 = vmatpush1.bf16.msra.mxu0 %v1787_v63  ;;  %3033 = vmatprep.subr.bf16.mxu1 %v1182_v0  ;;  %v1807_v63 = vunpack.c.h.s8.bf16 %v683_v51  ;;  %v1202_v0 = vunpack.c.l.s8.bf16 %v382_v58  ;;  %v693_v51 = vld [vmem:[#allocation2 + $0xfd0] sm:$0xff] }
 0x3ac   :  { %3850 = vmatprep.subr.bf16.mxu0 %v1790_v1  ;;  %v1810_v1 = vunpack.c.l.s8.bf16 %v686_v59 }
 0x3ae   :  { %3034 = vmatpush1.bf16.msra.mxu1 %v1181_v4  ;;  %v1201_v4 = vunpack.c.l.s8.bf16 %v381_v2 }
 0x3af   :  { %3851 = vmatpush1.bf16.msra.mxu0 %v1789_v5  ;;  %3035 = vmatprep.subr.bf16.mxu1 %v1184_v6  ;;  %v1809_v5 = vunpack.c.l.s8.bf16 %v685_v3  ;;  %v1204_v6 = vunpack.c.h.s8.bf16 %v382_v58  ;;  %v1219_v58 = vunpack.c.h.s8.bf16 %v389_v50 }
 0x3b0   :  { %3852 = vmatprep.subr.bf16.mxu0 %v1792_v7  ;;  %v1812_v7 = vunpack.c.h.s8.bf16 %v686_v59  ;;  %v1827_v59 = vunpack.c.h.s8.bf16 %v693_v51 }
 0x3b2   :  { %3036 = vmatpush1.bf16.msra.mxu1 %v1183_v10  ;;  %v1203_v10 = vunpack.c.h.s8.bf16 %v381_v2 }
 0x3b3   :  { %3853 = vmatpush1.bf16.msra.mxu0 %v1791_v11  ;;  %3037 = vmatprep.subr.bf16.mxu1 %v1186_v12  ;;  %v1811_v11 = vunpack.c.h.s8.bf16 %v685_v3  ;;  %v1206_v12 = vunpack.c.l.s8.bf16 %v384_v8 }
 0x3b4   :  { %3854 = vmatprep.subr.bf16.mxu0 %v1794_v13  ;;  %v1814_v13 = vunpack.c.l.s8.bf16 %v688_v9 }
 0x3b6   :  { %3038 = vmatpush1.bf16.msra.mxu1 %v1185_v16  ;;  %v1205_v16 = vunpack.c.l.s8.bf16 %v383_v14 }
 0x3b7   :  { %3855 = vmatpush1.bf16.msra.mxu0 %v1793_v17  ;;  %3039 = vmatprep.subr.bf16.mxu1 %v1188_v18  ;;  %v1813_v17 = vunpack.c.l.s8.bf16 %v687_v15  ;;  %v1208_v18 = vunpack.c.h.s8.bf16 %v384_v8 }
 0x3b8   :  { %3856 = vmatprep.subr.bf16.mxu0 %v1796_v19  ;;  %v1816_v19 = vunpack.c.h.s8.bf16 %v688_v9 }
 0x3ba   :  { %3040 = vmatpush1.bf16.msra.mxu1 %v1187_v22  ;;  %v1207_v22 = vunpack.c.h.s8.bf16 %v383_v14 }
 0x3bb   :  { %3857 = vmatpush1.bf16.msra.mxu0 %v1795_v23  ;;  %3041 = vmatprep.subr.bf16.mxu1 %v1190_v24  ;;  %v1815_v23 = vunpack.c.h.s8.bf16 %v687_v15  ;;  %v1210_v24 = vunpack.c.l.s8.bf16 %v386_v20 }
 0x3bc   :  { %3858 = vmatprep.subr.bf16.mxu0 %v1798_v25  ;;  %v1818_v25 = vunpack.c.l.s8.bf16 %v690_v21 }
 0x3be   :  { %3042 = vmatpush1.bf16.msra.mxu1 %v1189_v28  ;;  %v1209_v28 = vunpack.c.l.s8.bf16 %v385_v26 }
 0x3bf   :  { %3859 = vmatpush1.bf16.msra.mxu0 %v1797_v29  ;;  %3043 = vmatprep.subr.bf16.mxu1 %v1192_v30  ;;  %v1817_v29 = vunpack.c.l.s8.bf16 %v689_v27  ;;  %v1212_v30 = vunpack.c.h.s8.bf16 %v386_v20 }
 0x3c0   :  { %3860 = vmatprep.subr.bf16.mxu0 %v1800_v31  ;;  %v1820_v31 = vunpack.c.h.s8.bf16 %v690_v21 }
 0x3c2   :  { %3044 = vmatpush1.bf16.msra.mxu1 %v1191_v34  ;;  %v1211_v34 = vunpack.c.h.s8.bf16 %v385_v26 }
 0x3c3   :  { %3861 = vmatpush1.bf16.msra.mxu0 %v1799_v35  ;;  %3045 = vmatprep.subr.bf16.mxu1 %v1194_v36  ;;  %v1819_v35 = vunpack.c.h.s8.bf16 %v689_v27  ;;  %v1214_v36 = vunpack.c.l.s8.bf16 %v388_v32 }
 0x3c4   :  { %3862 = vmatprep.subr.bf16.mxu0 %v1802_v37  ;;  %v1822_v37 = vunpack.c.l.s8.bf16 %v692_v33 }
 0x3c6   :  { %3046 = vmatpush1.bf16.msra.mxu1 %v1193_v40  ;;  %v1213_v40 = vunpack.c.l.s8.bf16 %v387_v38 }
 0x3c7   :  { %3863 = vmatpush1.bf16.msra.mxu0 %v1801_v41  ;;  %3047 = vmatprep.subr.bf16.mxu1 %v1196_v42  ;;  %v1821_v41 = vunpack.c.l.s8.bf16 %v691_v39  ;;  %v1216_v42 = vunpack.c.h.s8.bf16 %v388_v32  ;;  %v5450_v32 = vld [vmem:[%s6447_s5 + $0x6c] ss:$316 sps:$4 sm:$0xff]  }
 0x3c8   :  { %3864 = vmatprep.subr.bf16.mxu0 %v1804_v43  ;;  %v1824_v43 = vunpack.c.h.s8.bf16 %v692_v33  ;;  %v5453_v33 = vld [vmem:[%s6447_s5 + $0x104] ss:$316 sps:$4 sm:$0xff]  }
 0x3ca   :  { %3048 = vmatpush1.bf16.msra.mxu1 %v1195_v46  ;;  %v1215_v46 = vunpack.c.h.s8.bf16 %v387_v38  ;;  %v397_v38 = vld [vmem:[#allocation2 + $0x690] sm:$0xff] }
 0x3cb   :  { %3865 = vmatpush1.bf16.msra.mxu0 %v1803_v47  ;;  %3060 = vmatprep.subr.bf16.mxu1 %v1198_v48  ;;  %v1823_v47 = vunpack.c.h.s8.bf16 %v691_v39  ;;  %v1218_v48 = vunpack.c.l.s8.bf16 %v390_v44  ;;  %v701_v39 = vld [vmem:[#allocation2 + $0x1010] sm:$0xff] }
 0x3cc   :  { %3877 = vmatprep.subr.bf16.mxu0 %v1806_v49  ;;  %v1826_v49 = vunpack.c.l.s8.bf16 %v694_v45 }
 0x3cd   :  { %3050 = vmatmul.mubr.bf16.vlgmr.msra.gmra.mrb[0].mxu1 %v5436_v52  ;;  %v1217_v52 = vunpack.c.l.s8.bf16 %v389_v50  ;;  %v399_v50 = vld [vmem:[#allocation2 + $0x6a0] sm:$0xff] }
 0x3ce   :  { %3867 = vmatmul.mubr.bf16.vlgmr.msra.gmra.mrb[0].mxu0 %v5439_v53  ;;  %3061 = vmatpush1.bf16.msra.mxu1 %v1197_v54  ;;  %v1825_v53 = vunpack.c.l.s8.bf16 %v693_v51  ;;  %v1220_v54 = vunpack.c.h.s8.bf16 %v390_v44  ;;  %v400_v44 = vld [vmem:[#allocation2 + $0x6a8] sm:$0xff]  ;;  %v703_v51 = vld [vmem:[#allocation2 + $0x1020] sm:$0xff] }
 0x3cf   :  { %3878 = vmatpush1.bf16.msra.mxu0 %v1805_v55  ;;  %3062 = vmatprep.subr.bf16.mxu1 %v1200_v56  ;;  %v1828_v55 = vunpack.c.h.s8.bf16 %v694_v45  ;;  %v392_v56 = vld [vmem:[#allocation2 + $0x668] sm:$0xff] }
 0x3d0   :  { %3879 = vmatprep.subr.bf16.mxu0 %v1808_v57  ;;  %3092 = vmatprep.mubr.bf16.mxu1 %v5444_v60  ;;  %v696_v57 = vld [vmem:[#allocation2 + $0xfe8] sm:$0xff]  ;;  %v1222_v60 = vunpack.c.l.s8.bf16 %v392_v56  ;;  %v1224_v2 = vunpack.c.h.s8.bf16 %v392_v56  ;;  %v402_v56 = vld [vmem:[#allocation2 + $0x6b8] sm:$0xff] }
 0x3d1   :  { %3909 = vmatprep.mubr.bf16.mxu0 %v5447_v61  ;;  %v1830_v61 = vunpack.c.l.s8.bf16 %v696_v57  ;;  %v1832_v3 = vunpack.c.h.s8.bf16 %v696_v57  ;;  %v704_v45 = vld [vmem:[#allocation2 + $0x1028] sm:$0xff]  ;;  %v706_v57 = vld [vmem:[#allocation2 + $0x1038] sm:$0xff] }
 0x3d2   :  { %3063 = vmatpush1.bf16.msra.mxu1 %v1199_v62  ;;  %v391_v62 = vld [vmem:[#allocation2 + $0x660] sm:$0xff] }
 0x3d3   :  { %3880 = vmatpush1.bf16.msra.mxu0 %v1807_v63  ;;  %3064 = vmatprep.subr.bf16.mxu1 %v1202_v0  ;;  %v695_v63 = vld [vmem:[#allocation2 + $0xfe0] sm:$0xff]  ;;  %v1221_v0 = vunpack.c.l.s8.bf16 %v391_v62 }
 0x3d4   :  { %3881 = vmatprep.subr.bf16.mxu0 %v1810_v1  ;;  %v1829_v1 = vunpack.c.l.s8.bf16 %v695_v63 }
 0x3d6   :  { %3065 = vmatpush1.bf16.msra.mxu1 %v1201_v4  ;;  %v394_v4 = vld [vmem:[#allocation2 + $0x678] sm:$0xff] }
 0x3d7   :  { %3882 = vmatpush1.bf16.msra.mxu0 %v1809_v5  ;;  %3066 = vmatprep.subr.bf16.mxu1 %v1204_v6  ;;  %v698_v5 = vld [vmem:[#allocation2 + $0xff8] sm:$0xff]  ;;  %v1223_v6 = vunpack.c.h.s8.bf16 %v391_v62  ;;  %v1226_v8 = vunpack.c.l.s8.bf16 %v394_v4  ;;  %v1228_v14 = vunpack.c.h.s8.bf16 %v394_v4  ;;  %v401_v62 = vld [vmem:[#allocation2 + $0x6b0] sm:$0xff]  ;;  %v404_v4 = vld [vmem:[#allocation2 + $0x6c8] sm:$0xff] }
 0x3d8   :  { %3883 = vmatprep.subr.bf16.mxu0 %v1812_v7  ;;  %v1831_v7 = vunpack.c.h.s8.bf16 %v695_v63  ;;  %v1834_v9 = vunpack.c.l.s8.bf16 %v698_v5  ;;  %v1836_v15 = vunpack.c.h.s8.bf16 %v698_v5  ;;  %v705_v63 = vld [vmem:[#allocation2 + $0x1030] sm:$0xff]  ;;  %v708_v5 = vld [vmem:[#allocation2 + $0x1048] sm:$0xff] }
 0x3da   :  { %3067 = vmatpush1.bf16.msra.mxu1 %v1203_v10  ;;  %v393_v10 = vld [vmem:[#allocation2 + $0x670] sm:$0xff] }
 0x3db   :  { %3884 = vmatpush1.bf16.msra.mxu0 %v1811_v11  ;;  %3068 = vmatprep.subr.bf16.mxu1 %v1206_v12  ;;  %v697_v11 = vld [vmem:[#allocation2 + $0xff0] sm:$0xff]  ;;  %v1225_v12 = vunpack.c.l.s8.bf16 %v393_v10 }
 0x3dc   :  { %3885 = vmatprep.subr.bf16.mxu0 %v1814_v13  ;;  %v1833_v13 = vunpack.c.l.s8.bf16 %v697_v11 }
 0x3de   :  { %3069 = vmatpush1.bf16.msra.mxu1 %v1205_v16  ;;  %v396_v16 = vld [vmem:[#allocation2 + $0x688] sm:$0xff] }
 0x3df   :  { %3886 = vmatpush1.bf16.msra.mxu0 %v1813_v17  ;;  %3070 = vmatprep.subr.bf16.mxu1 %v1208_v18  ;;  %v700_v17 = vld [vmem:[#allocation2 + $0x1008] sm:$0xff]  ;;  %v1227_v18 = vunpack.c.h.s8.bf16 %v393_v10  ;;  %v1230_v20 = vunpack.c.l.s8.bf16 %v396_v16  ;;  %v403_v10 = vld [vmem:[#allocation2 + $0x6c0] sm:$0xff] }
 0x3e0   :  { %3887 = vmatprep.subr.bf16.mxu0 %v1816_v19  ;;  %v1835_v19 = vunpack.c.h.s8.bf16 %v697_v11  ;;  %v1838_v21 = vunpack.c.l.s8.bf16 %v700_v17  ;;  %v707_v11 = vld [vmem:[#allocation2 + $0x1040] sm:$0xff] }
 0x3e2   :  { %3071 = vmatpush1.bf16.msra.mxu1 %v1207_v22  ;;  %v395_v22 = vld [vmem:[#allocation2 + $0x680] sm:$0xff] }
 0x3e3   :  { %3888 = vmatpush1.bf16.msra.mxu0 %v1815_v23  ;;  %3072 = vmatprep.subr.bf16.mxu1 %v1210_v24  ;;  %v699_v23 = vld [vmem:[#allocation2 + $0x1000] sm:$0xff]  ;;  %v1229_v26 = vunpack.c.l.s8.bf16 %v395_v22 }
 0x3e4   :  { %3889 = vmatprep.subr.bf16.mxu0 %v1818_v25  ;;  %v5442_v24 = vld [vmem:[%s6447_s5 + $0x60] ss:$316 sps:$4 sm:$0xff]   ;;  %v5445_v25 = vld [vmem:[%s6447_s5 + $0xf8] ss:$316 sps:$4 sm:$0xff]   ;;  %v1837_v27 = vunpack.c.l.s8.bf16 %v699_v23 }
 0x3e6   :  { %3073 = vmatpush1.bf16.msra.mxu1 %v1209_v28  ;;  %v1232_v28 = vunpack.c.h.s8.bf16 %v396_v16  ;;  %v406_v16 = vld [vmem:[#allocation2 + $0x6d8] sm:$0xff] }
 0x3e7   :  { %3890 = vmatpush1.bf16.msra.mxu0 %v1817_v29  ;;  %3074 = vmatprep.subr.bf16.mxu1 %v1212_v30  ;;  %v1840_v29 = vunpack.c.h.s8.bf16 %v700_v17  ;;  %v398_v30 = vld [vmem:[#allocation2 + $0x698] sm:$0xff] }
 0x3e8   :  { %3891 = vmatprep.subr.bf16.mxu0 %v1820_v31  ;;  %v702_v31 = vld [vmem:[#allocation2 + $0x1018] sm:$0xff] }
 0x3e9   :  { %v710_v17 = vld [vmem:[#allocation2 + $0x1058] sm:$0xff] }
 0x3ea   :  { %3075 = vmatpush1.bf16.msra.mxu1 %v1211_v34  ;;  %v1231_v34 = vunpack.c.h.s8.bf16 %v395_v22  ;;  %v405_v22 = vld [vmem:[#allocation2 + $0x6d0] sm:$0xff] }
 0x3eb   :  { %3892 = vmatpush1.bf16.msra.mxu0 %v1819_v35  ;;  %3076 = vmatprep.subr.bf16.mxu1 %v1214_v36  ;;  %v1839_v35 = vunpack.c.h.s8.bf16 %v699_v23  ;;  %v1234_v36 = vunpack.c.l.s8.bf16 %v398_v30  ;;  %v709_v23 = vld [vmem:[#allocation2 + $0x1050] sm:$0xff] }
 0x3ec   :  { %3893 = vmatprep.subr.bf16.mxu0 %v1822_v37  ;;  %v1842_v37 = vunpack.c.l.s8.bf16 %v702_v31 }
 0x3ee   :  { %3077 = vmatpush1.bf16.msra.mxu1 %v1213_v40  ;;  %v1233_v40 = vunpack.c.l.s8.bf16 %v397_v38 }
 0x3ef   :  { %3894 = vmatpush1.bf16.msra.mxu0 %v1821_v41  ;;  %3078 = vmatprep.subr.bf16.mxu1 %v1216_v42  ;;  %v1841_v41 = vunpack.c.l.s8.bf16 %v701_v39  ;;  %v1236_v42 = vunpack.c.h.s8.bf16 %v398_v30  ;;  %v1251_v30 = vunpack.c.h.s8.bf16 %v405_v22 }
 0x3f0   :  { %3895 = vmatprep.subr.bf16.mxu0 %v1824_v43  ;;  %v1844_v43 = vunpack.c.h.s8.bf16 %v702_v31  ;;  %v1859_v31 = vunpack.c.h.s8.bf16 %v709_v23 }
 0x3f2   :  { %3079 = vmatpush1.bf16.msra.mxu1 %v1215_v46  ;;  %v1235_v46 = vunpack.c.h.s8.bf16 %v397_v38 }
 0x3f3   :  { %3896 = vmatpush1.bf16.msra.mxu0 %v1823_v47  ;;  %3080 = vmatprep.subr.bf16.mxu1 %v1218_v48  ;;  %v1843_v47 = vunpack.c.h.s8.bf16 %v701_v39  ;;  %v1238_v48 = vunpack.c.l.s8.bf16 %v400_v44 }
 0x3f4   :  { %3897 = vmatprep.subr.bf16.mxu0 %v1826_v49  ;;  %v1846_v49 = vunpack.c.l.s8.bf16 %v704_v45 }
 0x3f6   :  { %3081 = vmatpush1.bf16.msra.mxu1 %v1217_v52  ;;  %v1237_v52 = vunpack.c.l.s8.bf16 %v399_v50 }
 0x3f7   :  { %3898 = vmatpush1.bf16.msra.mxu0 %v1825_v53  ;;  %3082 = vmatprep.subr.bf16.mxu1 %v1220_v54  ;;  %v1845_v53 = vunpack.c.l.s8.bf16 %v703_v51  ;;  %v1240_v54 = vunpack.c.h.s8.bf16 %v400_v44 }
 0x3f8   :  { %3899 = vmatprep.subr.bf16.mxu0 %v1828_v55  ;;  %v1848_v55 = vunpack.c.h.s8.bf16 %v704_v45 }
 0x3fa   :  { %3083 = vmatpush1.bf16.msra.mxu1 %v1219_v58  ;;  %v1239_v58 = vunpack.c.h.s8.bf16 %v399_v50 }
 0x3fb   :  { %3900 = vmatpush1.bf16.msra.mxu0 %v1827_v59  ;;  %3084 = vmatprep.subr.bf16.mxu1 %v1222_v60  ;;  %v1847_v59 = vunpack.c.h.s8.bf16 %v703_v51  ;;  %v1242_v60 = vunpack.c.l.s8.bf16 %v402_v56 }
 0x3fc   :  { %3901 = vmatprep.subr.bf16.mxu0 %v1830_v61  ;;  %v1850_v61 = vunpack.c.l.s8.bf16 %v706_v57 }
 0x3fe   :  { %3085 = vmatpush1.bf16.msra.mxu1 %v1221_v0  ;;  %v1241_v0 = vunpack.c.l.s8.bf16 %v401_v62 }
 0x3ff   :  { %3902 = vmatpush1.bf16.msra.mxu0 %v1829_v1  ;;  %3086 = vmatprep.subr.bf16.mxu1 %v1224_v2  ;;  %v1849_v1 = vunpack.c.l.s8.bf16 %v705_v63  ;;  %v1244_v2 = vunpack.c.h.s8.bf16 %v402_v56 }
 0x400   :  { %3903 = vmatprep.subr.bf16.mxu0 %v1832_v3  ;;  %v1852_v3 = vunpack.c.h.s8.bf16 %v706_v57 }
 0x402   :  { %3087 = vmatpush1.bf16.msra.mxu1 %v1223_v6  ;;  %v1243_v6 = vunpack.c.h.s8.bf16 %v401_v62 }
 0x403   :  { %3904 = vmatpush1.bf16.msra.mxu0 %v1831_v7  ;;  %3088 = vmatprep.subr.bf16.mxu1 %v1226_v8  ;;  %v1851_v7 = vunpack.c.h.s8.bf16 %v705_v63  ;;  %v1246_v8 = vunpack.c.l.s8.bf16 %v404_v4 }
 0x404   :  { %3905 = vmatprep.subr.bf16.mxu0 %v1834_v9  ;;  %v1854_v9 = vunpack.c.l.s8.bf16 %v708_v5 }
 0x406   :  { %3089 = vmatpush1.bf16.msra.mxu1 %v1225_v12  ;;  %v1245_v12 = vunpack.c.l.s8.bf16 %v403_v10 }
 0x407   :  { %3906 = vmatpush1.bf16.msra.mxu0 %v1833_v13  ;;  %3090 = vmatprep.subr.bf16.mxu1 %v1228_v14  ;;  %v1853_v13 = vunpack.c.l.s8.bf16 %v707_v11  ;;  %v1248_v14 = vunpack.c.h.s8.bf16 %v404_v4  ;;  %v5456_v4 = vld [vmem:[%s6447_s5 + $0x74] ss:$316 sps:$4 sm:$0xff]  }
 0x408   :  { %3907 = vmatprep.subr.bf16.mxu0 %v1836_v15  ;;  %v1856_v15 = vunpack.c.h.s8.bf16 %v708_v5  ;;  %v5459_v5 = vld [vmem:[%s6447_s5 + $0x10c] ss:$316 sps:$4 sm:$0xff]  }
 0x40a   :  { %3091 = vmatpush1.bf16.msra.mxu1 %v1227_v18  ;;  %v1247_v18 = vunpack.c.h.s8.bf16 %v403_v10  ;;  %v413_v10 = vld [vmem:[#allocation2 + $0x710] sm:$0xff] }
 0x40b   :  { %3908 = vmatpush1.bf16.msra.mxu0 %v1835_v19  ;;  %3103 = vmatprep.subr.bf16.mxu1 %v1230_v20  ;;  %v1855_v19 = vunpack.c.h.s8.bf16 %v707_v11  ;;  %v1250_v20 = vunpack.c.l.s8.bf16 %v406_v16  ;;  %v717_v11 = vld [vmem:[#allocation2 + $0x1090] sm:$0xff] }
 0x40c   :  { %3920 = vmatprep.subr.bf16.mxu0 %v1838_v21  ;;  %v1858_v21 = vunpack.c.l.s8.bf16 %v710_v17 }
 0x40d   :  { %3093 = vmatmul.mubr.bf16.vlgmr.msra.gmra.mrb[0].mxu1 %v5442_v24  ;;  %v1249_v24 = vunpack.c.l.s8.bf16 %v405_v22  ;;  %v415_v22 = vld [vmem:[#allocation2 + $0x720] sm:$0xff] }
 0x40e   :  { %3910 = vmatmul.mubr.bf16.vlgmr.msra.gmra.mrb[0].mxu0 %v5445_v25  ;;  %3104 = vmatpush1.bf16.msra.mxu1 %v1229_v26  ;;  %v1857_v25 = vunpack.c.l.s8.bf16 %v709_v23  ;;  %v1252_v26 = vunpack.c.h.s8.bf16 %v406_v16  ;;  %v416_v16 = vld [vmem:[#allocation2 + $0x728] sm:$0xff]  ;;  %v719_v23 = vld [vmem:[#allocation2 + $0x10a0] sm:$0xff] }
 0x40f   :  { %3921 = vmatpush1.bf16.msra.mxu0 %v1837_v27  ;;  %3105 = vmatprep.subr.bf16.mxu1 %v1232_v28  ;;  %v1860_v27 = vunpack.c.h.s8.bf16 %v710_v17  ;;  %v408_v28 = vld [vmem:[#allocation2 + $0x6e8] sm:$0xff] }
 0x410   :  { %3922 = vmatprep.subr.bf16.mxu0 %v1840_v29  ;;  %3135 = vmatprep.mubr.bf16.mxu1 %v5450_v32  ;;  %v712_v29 = vld [vmem:[#allocation2 + $0x1068] sm:$0xff]  ;;  %v1254_v32 = vunpack.c.l.s8.bf16 %v408_v28  ;;  %v1256_v38 = vunpack.c.h.s8.bf16 %v408_v28  ;;  %v418_v28 = vld [vmem:[#allocation2 + $0x738] sm:$0xff] }
 0x411   :  { %3952 = vmatprep.mubr.bf16.mxu0 %v5453_v33  ;;  %v1862_v33 = vunpack.c.l.s8.bf16 %v712_v29  ;;  %v1864_v39 = vunpack.c.h.s8.bf16 %v712_v29  ;;  %v720_v17 = vld [vmem:[#allocation2 + $0x10a8] sm:$0xff]  ;;  %v722_v29 = vld [vmem:[#allocation2 + $0x10b8] sm:$0xff] }
 0x412   :  { %3106 = vmatpush1.bf16.msra.mxu1 %v1231_v34  ;;  %v407_v34 = vld [vmem:[#allocation2 + $0x6e0] sm:$0xff] }
 0x413   :  { %3923 = vmatpush1.bf16.msra.mxu0 %v1839_v35  ;;  %3107 = vmatprep.subr.bf16.mxu1 %v1234_v36  ;;  %v711_v35 = vld [vmem:[#allocation2 + $0x1060] sm:$0xff]  ;;  %v1253_v36 = vunpack.c.l.s8.bf16 %v407_v34 }
 0x414   :  { %3924 = vmatprep.subr.bf16.mxu0 %v1842_v37  ;;  %v1861_v37 = vunpack.c.l.s8.bf16 %v711_v35 }
 0x416   :  { %3108 = vmatpush1.bf16.msra.mxu1 %v1233_v40  ;;  %v410_v40 = vld [vmem:[#allocation2 + $0x6f8] sm:$0xff] }
 0x417   :  { %3925 = vmatpush1.bf16.msra.mxu0 %v1841_v41  ;;  %3109 = vmatprep.subr.bf16.mxu1 %v1236_v42  ;;  %v714_v41 = vld [vmem:[#allocation2 + $0x1078] sm:$0xff]  ;;  %v1255_v42 = vunpack.c.h.s8.bf16 %v407_v34  ;;  %v1258_v44 = vunpack.c.l.s8.bf16 %v410_v40  ;;  %v1260_v50 = vunpack.c.h.s8.bf16 %v410_v40  ;;  %v417_v34 = vld [vmem:[#allocation2 + $0x730] sm:$0xff]  ;;  %v420_v40 = vld [vmem:[#allocation2 + $0x748] sm:$0xff] }
 0x418   :  { %3926 = vmatprep.subr.bf16.mxu0 %v1844_v43  ;;  %v1863_v43 = vunpack.c.h.s8.bf16 %v711_v35  ;;  %v1866_v45 = vunpack.c.l.s8.bf16 %v714_v41  ;;  %v1868_v51 = vunpack.c.h.s8.bf16 %v714_v41  ;;  %v721_v35 = vld [vmem:[#allocation2 + $0x10b0] sm:$0xff]  ;;  %v724_v41 = vld [vmem:[#allocation2 + $0x10c8] sm:$0xff] }
 0x41a   :  { %3110 = vmatpush1.bf16.msra.mxu1 %v1235_v46  ;;  %v409_v46 = vld [vmem:[#allocation2 + $0x6f0] sm:$0xff] }
 0x41b   :  { %3927 = vmatpush1.bf16.msra.mxu0 %v1843_v47  ;;  %3111 = vmatprep.subr.bf16.mxu1 %v1238_v48  ;;  %v713_v47 = vld [vmem:[#allocation2 + $0x1070] sm:$0xff]  ;;  %v1257_v48 = vunpack.c.l.s8.bf16 %v409_v46 }
 0x41c   :  { %3928 = vmatprep.subr.bf16.mxu0 %v1846_v49  ;;  %v1865_v49 = vunpack.c.l.s8.bf16 %v713_v47 }
 0x41e   :  { %3112 = vmatpush1.bf16.msra.mxu1 %v1237_v52  ;;  %v412_v52 = vld [vmem:[#allocation2 + $0x708] sm:$0xff] }
 0x41f   :  { %3929 = vmatpush1.bf16.msra.mxu0 %v1845_v53  ;;  %3113 = vmatprep.subr.bf16.mxu1 %v1240_v54  ;;  %v716_v53 = vld [vmem:[#allocation2 + $0x1088] sm:$0xff]  ;;  %v1259_v54 = vunpack.c.h.s8.bf16 %v409_v46  ;;  %v1262_v56 = vunpack.c.l.s8.bf16 %v412_v52  ;;  %v419_v46 = vld [vmem:[#allocation2 + $0x740] sm:$0xff] }
 0x420   :  { %3930 = vmatprep.subr.bf16.mxu0 %v1848_v55  ;;  %v1867_v55 = vunpack.c.h.s8.bf16 %v713_v47  ;;  %v1870_v57 = vunpack.c.l.s8.bf16 %v716_v53  ;;  %v723_v47 = vld [vmem:[#allocation2 + $0x10c0] sm:$0xff] }
 0x422   :  { %3114 = vmatpush1.bf16.msra.mxu1 %v1239_v58  ;;  %v411_v58 = vld [vmem:[#allocation2 + $0x700] sm:$0xff] }
 0x423   :  { %3931 = vmatpush1.bf16.msra.mxu0 %v1847_v59  ;;  %3115 = vmatprep.subr.bf16.mxu1 %v1242_v60  ;;  %v715_v59 = vld [vmem:[#allocation2 + $0x1080] sm:$0xff]  ;;  %v1261_v62 = vunpack.c.l.s8.bf16 %v411_v58 }
 0x424   :  { %3932 = vmatprep.subr.bf16.mxu0 %v1850_v61  ;;  %v5448_v60 = vld [vmem:[%s6447_s5 + $0x68] ss:$316 sps:$4 sm:$0xff]   ;;  %v5451_v61 = vld [vmem:[%s6447_s5 + $0x100] ss:$316 sps:$4 sm:$0xff]   ;;  %v1869_v63 = vunpack.c.l.s8.bf16 %v715_v59 }
 0x426   :  { %3116 = vmatpush1.bf16.msra.mxu1 %v1241_v0  ;;  %v1264_v0 = vunpack.c.h.s8.bf16 %v412_v52  ;;  %v422_v52 = vld [vmem:[#allocation2 + $0x758] sm:$0xff] }
 0x427   :  { %3933 = vmatpush1.bf16.msra.mxu0 %v1849_v1  ;;  %3117 = vmatprep.subr.bf16.mxu1 %v1244_v2  ;;  %v1872_v1 = vunpack.c.h.s8.bf16 %v716_v53  ;;  %v414_v2 = vld [vmem:[#allocation2 + $0x718] sm:$0xff] }
 0x428   :  { %3934 = vmatprep.subr.bf16.mxu0 %v1852_v3  ;;  %v718_v3 = vld [vmem:[#allocation2 + $0x1098] sm:$0xff] }
 0x429   :  { %v726_v53 = vld [vmem:[#allocation2 + $0x10d8] sm:$0xff] }
 0x42a   :  { %3118 = vmatpush1.bf16.msra.mxu1 %v1243_v6  ;;  %v1263_v6 = vunpack.c.h.s8.bf16 %v411_v58  ;;  %v421_v58 = vld [vmem:[#allocation2 + $0x750] sm:$0xff] }
 0x42b   :  { %3935 = vmatpush1.bf16.msra.mxu0 %v1851_v7  ;;  %3119 = vmatprep.subr.bf16.mxu1 %v1246_v8  ;;  %v1871_v7 = vunpack.c.h.s8.bf16 %v715_v59  ;;  %v1266_v8 = vunpack.c.l.s8.bf16 %v414_v2  ;;  %v725_v59 = vld [vmem:[#allocation2 + $0x10d0] sm:$0xff] }
 0x42c   :  { %3936 = vmatprep.subr.bf16.mxu0 %v1854_v9  ;;  %v1874_v9 = vunpack.c.l.s8.bf16 %v718_v3 }
 0x42e   :  { %3120 = vmatpush1.bf16.msra.mxu1 %v1245_v12  ;;  %v1265_v12 = vunpack.c.l.s8.bf16 %v413_v10 }
 0x42f   :  { %3937 = vmatpush1.bf16.msra.mxu0 %v1853_v13  ;;  %3121 = vmatprep.subr.bf16.mxu1 %v1248_v14  ;;  %v1873_v13 = vunpack.c.l.s8.bf16 %v717_v11  ;;  %v1268_v14 = vunpack.c.h.s8.bf16 %v414_v2  ;;  %v1283_v2 = vunpack.c.h.s8.bf16 %v421_v58 }
 0x430   :  { %3938 = vmatprep.subr.bf16.mxu0 %v1856_v15  ;;  %v1876_v15 = vunpack.c.h.s8.bf16 %v718_v3  ;;  %v1891_v3 = vunpack.c.h.s8.bf16 %v725_v59 }
 0x432   :  { %3122 = vmatpush1.bf16.msra.mxu1 %v1247_v18  ;;  %v1267_v18 = vunpack.c.h.s8.bf16 %v413_v10 }
 0x433   :  { %3939 = vmatpush1.bf16.msra.mxu0 %v1855_v19  ;;  %3123 = vmatprep.subr.bf16.mxu1 %v1250_v20  ;;  %v1875_v19 = vunpack.c.h.s8.bf16 %v717_v11  ;;  %v1270_v20 = vunpack.c.l.s8.bf16 %v416_v16 }
 0x434   :  { %3940 = vmatprep.subr.bf16.mxu0 %v1858_v21  ;;  %v1878_v21 = vunpack.c.l.s8.bf16 %v720_v17 }
 0x436   :  { %3124 = vmatpush1.bf16.msra.mxu1 %v1249_v24  ;;  %v1269_v24 = vunpack.c.l.s8.bf16 %v415_v22 }
 0x437   :  { %3941 = vmatpush1.bf16.msra.mxu0 %v1857_v25  ;;  %3125 = vmatprep.subr.bf16.mxu1 %v1252_v26  ;;  %v1877_v25 = vunpack.c.l.s8.bf16 %v719_v23  ;;  %v1272_v26 = vunpack.c.h.s8.bf16 %v416_v16 }
 0x438   :  { %3942 = vmatprep.subr.bf16.mxu0 %v1860_v27  ;;  %v1880_v27 = vunpack.c.h.s8.bf16 %v720_v17 }
 0x43a   :  { %3126 = vmatpush1.bf16.msra.mxu1 %v1251_v30  ;;  %v1271_v30 = vunpack.c.h.s8.bf16 %v415_v22 }
 0x43b   :  { %3943 = vmatpush1.bf16.msra.mxu0 %v1859_v31  ;;  %3127 = vmatprep.subr.bf16.mxu1 %v1254_v32  ;;  %v1879_v31 = vunpack.c.h.s8.bf16 %v719_v23  ;;  %v1274_v32 = vunpack.c.l.s8.bf16 %v418_v28 }
 0x43c   :  { %3944 = vmatprep.subr.bf16.mxu0 %v1862_v33  ;;  %v1882_v33 = vunpack.c.l.s8.bf16 %v722_v29 }
 0x43e   :  { %3128 = vmatpush1.bf16.msra.mxu1 %v1253_v36  ;;  %v1273_v36 = vunpack.c.l.s8.bf16 %v417_v34 }
 0x43f   :  { %3945 = vmatpush1.bf16.msra.mxu0 %v1861_v37  ;;  %3129 = vmatprep.subr.bf16.mxu1 %v1256_v38  ;;  %v1881_v37 = vunpack.c.l.s8.bf16 %v721_v35  ;;  %v1276_v38 = vunpack.c.h.s8.bf16 %v418_v28 }
 0x440   :  { %3946 = vmatprep.subr.bf16.mxu0 %v1864_v39  ;;  %v1884_v39 = vunpack.c.h.s8.bf16 %v722_v29 }
 0x442   :  { %3130 = vmatpush1.bf16.msra.mxu1 %v1255_v42  ;;  %v1275_v42 = vunpack.c.h.s8.bf16 %v417_v34 }
 0x443   :  { %3947 = vmatpush1.bf16.msra.mxu0 %v1863_v43  ;;  %3131 = vmatprep.subr.bf16.mxu1 %v1258_v44  ;;  %v1883_v43 = vunpack.c.h.s8.bf16 %v721_v35  ;;  %v1278_v44 = vunpack.c.l.s8.bf16 %v420_v40 }
 0x444   :  { %3948 = vmatprep.subr.bf16.mxu0 %v1866_v45  ;;  %v1886_v45 = vunpack.c.l.s8.bf16 %v724_v41 }
 0x446   :  { %3132 = vmatpush1.bf16.msra.mxu1 %v1257_v48  ;;  %v1277_v48 = vunpack.c.l.s8.bf16 %v419_v46 }
 0x447   :  { %3949 = vmatpush1.bf16.msra.mxu0 %v1865_v49  ;;  %3133 = vmatprep.subr.bf16.mxu1 %v1260_v50  ;;  %v1885_v49 = vunpack.c.l.s8.bf16 %v723_v47  ;;  %v1280_v50 = vunpack.c.h.s8.bf16 %v420_v40  ;;  %v5462_v40 = vld [vmem:[%s6447_s5 + $0x7c] ss:$316 sps:$4 sm:$0xff]  }
 0x448   :  { %3950 = vmatprep.subr.bf16.mxu0 %v1868_v51  ;;  %v1888_v51 = vunpack.c.h.s8.bf16 %v724_v41  ;;  %v5465_v41 = vld [vmem:[%s6447_s5 + $0x114] ss:$316 sps:$4 sm:$0xff]  }
 0x44a   :  { %3134 = vmatpush1.bf16.msra.mxu1 %v1259_v54  ;;  %v1279_v54 = vunpack.c.h.s8.bf16 %v419_v46  ;;  %v429_v46 = vld [vmem:[#allocation2 + $0x790] sm:$0xff] }
 0x44b   :  { %3951 = vmatpush1.bf16.msra.mxu0 %v1867_v55  ;;  %3146 = vmatprep.subr.bf16.mxu1 %v1262_v56  ;;  %v1887_v55 = vunpack.c.h.s8.bf16 %v723_v47  ;;  %v1282_v56 = vunpack.c.l.s8.bf16 %v422_v52  ;;  %v733_v47 = vld [vmem:[#allocation2 + $0x1110] sm:$0xff] }
 0x44c   :  { %3963 = vmatprep.subr.bf16.mxu0 %v1870_v57  ;;  %v1890_v57 = vunpack.c.l.s8.bf16 %v726_v53 }
 0x44d   :  { %3136 = vmatmul.mubr.bf16.vlgmr.msra.gmra.mrb[0].mxu1 %v5448_v60  ;;  %v1281_v60 = vunpack.c.l.s8.bf16 %v421_v58  ;;  %v431_v58 = vld [vmem:[#allocation2 + $0x7a0] sm:$0xff] }
 0x44e   :  { %3953 = vmatmul.mubr.bf16.vlgmr.msra.gmra.mrb[0].mxu0 %v5451_v61  ;;  %3147 = vmatpush1.bf16.msra.mxu1 %v1261_v62  ;;  %v1889_v61 = vunpack.c.l.s8.bf16 %v725_v59  ;;  %v1284_v62 = vunpack.c.h.s8.bf16 %v422_v52  ;;  %v432_v52 = vld [vmem:[#allocation2 + $0x7a8] sm:$0xff]  ;;  %v735_v59 = vld [vmem:[#allocation2 + $0x1120] sm:$0xff] }
 0x44f   :  { %3964 = vmatpush1.bf16.msra.mxu0 %v1869_v63  ;;  %3148 = vmatprep.subr.bf16.mxu1 %v1264_v0  ;;  %v1892_v63 = vunpack.c.h.s8.bf16 %v726_v53  ;;  %v424_v0 = vld [vmem:[#allocation2 + $0x768] sm:$0xff] }
 0x450   :  { %3965 = vmatprep.subr.bf16.mxu0 %v1872_v1  ;;  %3178 = vmatprep.mubr.bf16.mxu1 %v5456_v4  ;;  %v728_v1 = vld [vmem:[#allocation2 + $0x10e8] sm:$0xff]  ;;  %v1286_v4 = vunpack.c.l.s8.bf16 %v424_v0  ;;  %v1288_v10 = vunpack.c.h.s8.bf16 %v424_v0  ;;  %v434_v0 = vld [vmem:[#allocation2 + $0x7b8] sm:$0xff] }
 0x451   :  { %3995 = vmatprep.mubr.bf16.mxu0 %v5459_v5  ;;  %v1894_v5 = vunpack.c.l.s8.bf16 %v728_v1  ;;  %v1896_v11 = vunpack.c.h.s8.bf16 %v728_v1  ;;  %v736_v53 = vld [vmem:[#allocation2 + $0x1128] sm:$0xff]  ;;  %v738_v1 = vld [vmem:[#allocation2 + $0x1138] sm:$0xff] }
 0x452   :  { %3149 = vmatpush1.bf16.msra.mxu1 %v1263_v6  ;;  %v423_v6 = vld [vmem:[#allocation2 + $0x760] sm:$0xff] }
 0x453   :  { %3966 = vmatpush1.bf16.msra.mxu0 %v1871_v7  ;;  %3150 = vmatprep.subr.bf16.mxu1 %v1266_v8  ;;  %v727_v7 = vld [vmem:[#allocation2 + $0x10e0] sm:$0xff]  ;;  %v1285_v8 = vunpack.c.l.s8.bf16 %v423_v6 }
 0x454   :  { %3967 = vmatprep.subr.bf16.mxu0 %v1874_v9  ;;  %v1893_v9 = vunpack.c.l.s8.bf16 %v727_v7 }
 0x456   :  { %3151 = vmatpush1.bf16.msra.mxu1 %v1265_v12  ;;  %v426_v12 = vld [vmem:[#allocation2 + $0x778] sm:$0xff] }
 0x457   :  { %3968 = vmatpush1.bf16.msra.mxu0 %v1873_v13  ;;  %3152 = vmatprep.subr.bf16.mxu1 %v1268_v14  ;;  %v730_v13 = vld [vmem:[#allocation2 + $0x10f8] sm:$0xff]  ;;  %v1287_v14 = vunpack.c.h.s8.bf16 %v423_v6  ;;  %v1290_v16 = vunpack.c.l.s8.bf16 %v426_v12  ;;  %v1292_v22 = vunpack.c.h.s8.bf16 %v426_v12  ;;  %v433_v6 = vld [vmem:[#allocation2 + $0x7b0] sm:$0xff]  ;;  %v436_v12 = vld [vmem:[#allocation2 + $0x7c8] sm:$0xff] }
 0x458   :  { %3969 = vmatprep.subr.bf16.mxu0 %v1876_v15  ;;  %v1895_v15 = vunpack.c.h.s8.bf16 %v727_v7  ;;  %v1898_v17 = vunpack.c.l.s8.bf16 %v730_v13  ;;  %v1900_v23 = vunpack.c.h.s8.bf16 %v730_v13  ;;  %v737_v7 = vld [vmem:[#allocation2 + $0x1130] sm:$0xff]  ;;  %v740_v13 = vld [vmem:[#allocation2 + $0x1148] sm:$0xff] }
 0x45a   :  { %3153 = vmatpush1.bf16.msra.mxu1 %v1267_v18  ;;  %v425_v18 = vld [vmem:[#allocation2 + $0x770] sm:$0xff] }
 0x45b   :  { %3970 = vmatpush1.bf16.msra.mxu0 %v1875_v19  ;;  %3154 = vmatprep.subr.bf16.mxu1 %v1270_v20  ;;  %v729_v19 = vld [vmem:[#allocation2 + $0x10f0] sm:$0xff]  ;;  %v1289_v20 = vunpack.c.l.s8.bf16 %v425_v18 }
 0x45c   :  { %3971 = vmatprep.subr.bf16.mxu0 %v1878_v21  ;;  %v1897_v21 = vunpack.c.l.s8.bf16 %v729_v19 }
 0x45e   :  { %3155 = vmatpush1.bf16.msra.mxu1 %v1269_v24  ;;  %v428_v24 = vld [vmem:[#allocation2 + $0x788] sm:$0xff] }
 0x45f   :  { %3972 = vmatpush1.bf16.msra.mxu0 %v1877_v25  ;;  %3156 = vmatprep.subr.bf16.mxu1 %v1272_v26  ;;  %v732_v25 = vld [vmem:[#allocation2 + $0x1108] sm:$0xff]  ;;  %v1291_v26 = vunpack.c.h.s8.bf16 %v425_v18  ;;  %v1294_v28 = vunpack.c.l.s8.bf16 %v428_v24  ;;  %v435_v18 = vld [vmem:[#allocation2 + $0x7c0] sm:$0xff] }
 0x460   :  { %3973 = vmatprep.subr.bf16.mxu0 %v1880_v27  ;;  %v1899_v27 = vunpack.c.h.s8.bf16 %v729_v19  ;;  %v1902_v29 = vunpack.c.l.s8.bf16 %v732_v25  ;;  %v739_v19 = vld [vmem:[#allocation2 + $0x1140] sm:$0xff] }
 0x462   :  { %3157 = vmatpush1.bf16.msra.mxu1 %v1271_v30  ;;  %v427_v30 = vld [vmem:[#allocation2 + $0x780] sm:$0xff] }
 0x463   :  { %3974 = vmatpush1.bf16.msra.mxu0 %v1879_v31  ;;  %3158 = vmatprep.subr.bf16.mxu1 %v1274_v32  ;;  %v731_v31 = vld [vmem:[#allocation2 + $0x1100] sm:$0xff]  ;;  %v5454_v32 = vld [vmem:[%s6447_s5 + $0x70] ss:$316 sps:$4 sm:$0xff]   ;;  %v1293_v34 = vunpack.c.l.s8.bf16 %v427_v30 }
 0x464   :  { %3975 = vmatprep.subr.bf16.mxu0 %v1882_v33  ;;  %v5457_v33 = vld [vmem:[%s6447_s5 + $0x108] ss:$316 sps:$4 sm:$0xff]   ;;  %v1901_v35 = vunpack.c.l.s8.bf16 %v731_v31 }
 0x466   :  { %3159 = vmatpush1.bf16.msra.mxu1 %v1273_v36  ;;  %v1296_v36 = vunpack.c.h.s8.bf16 %v428_v24  ;;  %v438_v24 = vld [vmem:[#allocation2 + $0x7d8] sm:$0xff] }
 0x467   :  { %3976 = vmatpush1.bf16.msra.mxu0 %v1881_v37  ;;  %3160 = vmatprep.subr.bf16.mxu1 %v1276_v38  ;;  %v1904_v37 = vunpack.c.h.s8.bf16 %v732_v25  ;;  %v430_v38 = vld [vmem:[#allocation2 + $0x798] sm:$0xff] }
 0x468   :  { %3977 = vmatprep.subr.bf16.mxu0 %v1884_v39  ;;  %v734_v39 = vld [vmem:[#allocation2 + $0x1118] sm:$0xff] }
 0x469   :  { %v742_v25 = vld [vmem:[#allocation2 + $0x1158] sm:$0xff] }
 0x46a   :  { %3161 = vmatpush1.bf16.msra.mxu1 %v1275_v42  ;;  %v1295_v42 = vunpack.c.h.s8.bf16 %v427_v30  ;;  %v437_v30 = vld [vmem:[#allocation2 + $0x7d0] sm:$0xff] }
 0x46b   :  { %3978 = vmatpush1.bf16.msra.mxu0 %v1883_v43  ;;  %3162 = vmatprep.subr.bf16.mxu1 %v1278_v44  ;;  %v1903_v43 = vunpack.c.h.s8.bf16 %v731_v31  ;;  %v1298_v44 = vunpack.c.l.s8.bf16 %v430_v38  ;;  %v741_v31 = vld [vmem:[#allocation2 + $0x1150] sm:$0xff] }
 0x46c   :  { %3979 = vmatprep.subr.bf16.mxu0 %v1886_v45  ;;  %v1906_v45 = vunpack.c.l.s8.bf16 %v734_v39 }
 0x46e   :  { %3163 = vmatpush1.bf16.msra.mxu1 %v1277_v48  ;;  %v1297_v48 = vunpack.c.l.s8.bf16 %v429_v46 }
 0x46f   :  { %3980 = vmatpush1.bf16.msra.mxu0 %v1885_v49  ;;  %3164 = vmatprep.subr.bf16.mxu1 %v1280_v50  ;;  %v1905_v49 = vunpack.c.l.s8.bf16 %v733_v47  ;;  %v1300_v50 = vunpack.c.h.s8.bf16 %v430_v38  ;;  %v1315_v38 = vunpack.c.h.s8.bf16 %v437_v30 }
 0x470   :  { %3981 = vmatprep.subr.bf16.mxu0 %v1888_v51  ;;  %v1908_v51 = vunpack.c.h.s8.bf16 %v734_v39  ;;  %v1923_v39 = vunpack.c.h.s8.bf16 %v741_v31 }
 0x472   :  { %3165 = vmatpush1.bf16.msra.mxu1 %v1279_v54  ;;  %v1299_v54 = vunpack.c.h.s8.bf16 %v429_v46 }
 0x473   :  { %3982 = vmatpush1.bf16.msra.mxu0 %v1887_v55  ;;  %3166 = vmatprep.subr.bf16.mxu1 %v1282_v56  ;;  %v1907_v55 = vunpack.c.h.s8.bf16 %v733_v47  ;;  %v1302_v56 = vunpack.c.l.s8.bf16 %v432_v52 }
 0x474   :  { %3983 = vmatprep.subr.bf16.mxu0 %v1890_v57  ;;  %v1910_v57 = vunpack.c.l.s8.bf16 %v736_v53 }
 0x476   :  { %3167 = vmatpush1.bf16.msra.mxu1 %v1281_v60  ;;  %v1301_v60 = vunpack.c.l.s8.bf16 %v431_v58 }
 0x477   :  { %3984 = vmatpush1.bf16.msra.mxu0 %v1889_v61  ;;  %3168 = vmatprep.subr.bf16.mxu1 %v1284_v62  ;;  %v1909_v61 = vunpack.c.l.s8.bf16 %v735_v59  ;;  %v1304_v62 = vunpack.c.h.s8.bf16 %v432_v52 }
 0x478   :  { %3985 = vmatprep.subr.bf16.mxu0 %v1892_v63  ;;  %v1912_v63 = vunpack.c.h.s8.bf16 %v736_v53 }
 0x47a   :  { %3169 = vmatpush1.bf16.msra.mxu1 %v1283_v2  ;;  %v1303_v2 = vunpack.c.h.s8.bf16 %v431_v58 }
 0x47b   :  { %3986 = vmatpush1.bf16.msra.mxu0 %v1891_v3  ;;  %3170 = vmatprep.subr.bf16.mxu1 %v1286_v4  ;;  %v1911_v3 = vunpack.c.h.s8.bf16 %v735_v59  ;;  %v1306_v4 = vunpack.c.l.s8.bf16 %v434_v0 }
 0x47c   :  { %3987 = vmatprep.subr.bf16.mxu0 %v1894_v5  ;;  %v1914_v5 = vunpack.c.l.s8.bf16 %v738_v1 }
 0x47e   :  { %3171 = vmatpush1.bf16.msra.mxu1 %v1285_v8  ;;  %v1305_v8 = vunpack.c.l.s8.bf16 %v433_v6 }
 0x47f   :  { %3988 = vmatpush1.bf16.msra.mxu0 %v1893_v9  ;;  %3172 = vmatprep.subr.bf16.mxu1 %v1288_v10  ;;  %v1913_v9 = vunpack.c.l.s8.bf16 %v737_v7  ;;  %v1308_v10 = vunpack.c.h.s8.bf16 %v434_v0 }
 0x480   :  { %3989 = vmatprep.subr.bf16.mxu0 %v1896_v11  ;;  %v1916_v11 = vunpack.c.h.s8.bf16 %v738_v1 }
 0x482   :  { %3173 = vmatpush1.bf16.msra.mxu1 %v1287_v14  ;;  %v1307_v14 = vunpack.c.h.s8.bf16 %v433_v6 }
 0x483   :  { %3990 = vmatpush1.bf16.msra.mxu0 %v1895_v15  ;;  %3174 = vmatprep.subr.bf16.mxu1 %v1290_v16  ;;  %v1915_v15 = vunpack.c.h.s8.bf16 %v737_v7  ;;  %v1310_v16 = vunpack.c.l.s8.bf16 %v436_v12 }
 0x484   :  { %3991 = vmatprep.subr.bf16.mxu0 %v1898_v17  ;;  %v1918_v17 = vunpack.c.l.s8.bf16 %v740_v13 }
 0x486   :  { %3175 = vmatpush1.bf16.msra.mxu1 %v1289_v20  ;;  %v1309_v20 = vunpack.c.l.s8.bf16 %v435_v18 }
 0x487   :  { %3992 = vmatpush1.bf16.msra.mxu0 %v1897_v21  ;;  %3176 = vmatprep.subr.bf16.mxu1 %v1292_v22  ;;  %v1917_v21 = vunpack.c.l.s8.bf16 %v739_v19  ;;  %v1312_v22 = vunpack.c.h.s8.bf16 %v436_v12  ;;  %v5468_v12 = vld [vmem:[%s6447_s5 + $0x84] ss:$316 sps:$4 sm:$0xff]  }
 0x488   :  { %3993 = vmatprep.subr.bf16.mxu0 %v1900_v23  ;;  %v1920_v23 = vunpack.c.h.s8.bf16 %v740_v13  ;;  %v5471_v13 = vld [vmem:[%s6447_s5 + $0x11c] ss:$316 sps:$4 sm:$0xff]  }
 0x48a   :  { %3177 = vmatpush1.bf16.msra.mxu1 %v1291_v26  ;;  %v1311_v26 = vunpack.c.h.s8.bf16 %v435_v18  ;;  %v445_v18 = vld [vmem:[#allocation2 + $0x810] sm:$0xff] }
 0x48b   :  { %3994 = vmatpush1.bf16.msra.mxu0 %v1899_v27  ;;  %3189 = vmatprep.subr.bf16.mxu1 %v1294_v28  ;;  %v1919_v27 = vunpack.c.h.s8.bf16 %v739_v19  ;;  %v1314_v28 = vunpack.c.l.s8.bf16 %v438_v24  ;;  %v749_v19 = vld [vmem:[#allocation2 + $0x1190] sm:$0xff] }
 0x48c   :  { %4006 = vmatprep.subr.bf16.mxu0 %v1902_v29  ;;  %v1922_v29 = vunpack.c.l.s8.bf16 %v742_v25 }
 0x48d   :  { %3179 = vmatmul.mubr.bf16.vlgmr.msra.gmra.mrb[0].mxu1 %v5454_v32  ;;  %v1313_v32 = vunpack.c.l.s8.bf16 %v437_v30  ;;  %v447_v30 = vld [vmem:[#allocation2 + $0x820] sm:$0xff] }
 0x48e   :  { %3996 = vmatmul.mubr.bf16.vlgmr.msra.gmra.mrb[0].mxu0 %v5457_v33  ;;  %3190 = vmatpush1.bf16.msra.mxu1 %v1293_v34  ;;  %v1921_v33 = vunpack.c.l.s8.bf16 %v741_v31  ;;  %v1316_v34 = vunpack.c.h.s8.bf16 %v438_v24  ;;  %v448_v24 = vld [vmem:[#allocation2 + $0x828] sm:$0xff]  ;;  %v751_v31 = vld [vmem:[#allocation2 + $0x11a0] sm:$0xff] }
 0x48f   :  { %4007 = vmatpush1.bf16.msra.mxu0 %v1901_v35  ;;  %3191 = vmatprep.subr.bf16.mxu1 %v1296_v36  ;;  %v1924_v35 = vunpack.c.h.s8.bf16 %v742_v25  ;;  %v440_v36 = vld [vmem:[#allocation2 + $0x7e8] sm:$0xff] }
 0x490   :  { %4008 = vmatprep.subr.bf16.mxu0 %v1904_v37  ;;  %3221 = vmatprep.mubr.bf16.mxu1 %v5462_v40  ;;  %v744_v37 = vld [vmem:[#allocation2 + $0x1168] sm:$0xff]  ;;  %v1318_v40 = vunpack.c.l.s8.bf16 %v440_v36  ;;  %v1320_v46 = vunpack.c.h.s8.bf16 %v440_v36  ;;  %v450_v36 = vld [vmem:[#allocation2 + $0x838] sm:$0xff] }
 0x491   :  { %4038 = vmatprep.mubr.bf16.mxu0 %v5465_v41  ;;  %v1926_v41 = vunpack.c.l.s8.bf16 %v744_v37  ;;  %v1928_v47 = vunpack.c.h.s8.bf16 %v744_v37  ;;  %v752_v25 = vld [vmem:[#allocation2 + $0x11a8] sm:$0xff]  ;;  %v754_v37 = vld [vmem:[#allocation2 + $0x11b8] sm:$0xff] }
 0x492   :  { %3192 = vmatpush1.bf16.msra.mxu1 %v1295_v42  ;;  %v439_v42 = vld [vmem:[#allocation2 + $0x7e0] sm:$0xff] }
 0x493   :  { %4009 = vmatpush1.bf16.msra.mxu0 %v1903_v43  ;;  %3193 = vmatprep.subr.bf16.mxu1 %v1298_v44  ;;  %v743_v43 = vld [vmem:[#allocation2 + $0x1160] sm:$0xff]  ;;  %v1317_v44 = vunpack.c.l.s8.bf16 %v439_v42 }
 0x494   :  { %4010 = vmatprep.subr.bf16.mxu0 %v1906_v45  ;;  %v1925_v45 = vunpack.c.l.s8.bf16 %v743_v43 }
 0x496   :  { %3194 = vmatpush1.bf16.msra.mxu1 %v1297_v48  ;;  %v442_v48 = vld [vmem:[#allocation2 + $0x7f8] sm:$0xff] }
 0x497   :  { %4011 = vmatpush1.bf16.msra.mxu0 %v1905_v49  ;;  %3195 = vmatprep.subr.bf16.mxu1 %v1300_v50  ;;  %v746_v49 = vld [vmem:[#allocation2 + $0x1178] sm:$0xff]  ;;  %v1319_v50 = vunpack.c.h.s8.bf16 %v439_v42  ;;  %v1322_v52 = vunpack.c.l.s8.bf16 %v442_v48  ;;  %v1324_v58 = vunpack.c.h.s8.bf16 %v442_v48  ;;  %v449_v42 = vld [vmem:[#allocation2 + $0x830] sm:$0xff]  ;;  %v452_v48 = vld [vmem:[#allocation2 + $0x848] sm:$0xff] }
 0x498   :  { %4012 = vmatprep.subr.bf16.mxu0 %v1908_v51  ;;  %v1927_v51 = vunpack.c.h.s8.bf16 %v743_v43  ;;  %v1930_v53 = vunpack.c.l.s8.bf16 %v746_v49  ;;  %v1932_v59 = vunpack.c.h.s8.bf16 %v746_v49  ;;  %v753_v43 = vld [vmem:[#allocation2 + $0x11b0] sm:$0xff]  ;;  %v756_v49 = vld [vmem:[#allocation2 + $0x11c8] sm:$0xff] }
 0x49a   :  { %3196 = vmatpush1.bf16.msra.mxu1 %v1299_v54  ;;  %v441_v54 = vld [vmem:[#allocation2 + $0x7f0] sm:$0xff] }
 0x49b   :  { %4013 = vmatpush1.bf16.msra.mxu0 %v1907_v55  ;;  %3197 = vmatprep.subr.bf16.mxu1 %v1302_v56  ;;  %v745_v55 = vld [vmem:[#allocation2 + $0x1170] sm:$0xff]  ;;  %v1321_v56 = vunpack.c.l.s8.bf16 %v441_v54 }
 0x49c   :  { %4014 = vmatprep.subr.bf16.mxu0 %v1910_v57  ;;  %v1929_v57 = vunpack.c.l.s8.bf16 %v745_v55 }
 0x49e   :  { %3198 = vmatpush1.bf16.msra.mxu1 %v1301_v60  ;;  %v444_v60 = vld [vmem:[#allocation2 + $0x808] sm:$0xff] }
 0x49f   :  { %4015 = vmatpush1.bf16.msra.mxu0 %v1909_v61  ;;  %3199 = vmatprep.subr.bf16.mxu1 %v1304_v62  ;;  %v748_v61 = vld [vmem:[#allocation2 + $0x1188] sm:$0xff]  ;;  %v1323_v62 = vunpack.c.h.s8.bf16 %v441_v54  ;;  %v1326_v0 = vunpack.c.l.s8.bf16 %v444_v60  ;;  %v451_v54 = vld [vmem:[#allocation2 + $0x840] sm:$0xff] }
 0x4a0   :  { %4016 = vmatprep.subr.bf16.mxu0 %v1912_v63  ;;  %v1931_v63 = vunpack.c.h.s8.bf16 %v745_v55  ;;  %v1934_v1 = vunpack.c.l.s8.bf16 %v748_v61  ;;  %v755_v55 = vld [vmem:[#allocation2 + $0x11c0] sm:$0xff] }
 0x4a2   :  { %3200 = vmatpush1.bf16.msra.mxu1 %v1303_v2  ;;  %v443_v2 = vld [vmem:[#allocation2 + $0x800] sm:$0xff] }
 0x4a3   :  { %4017 = vmatpush1.bf16.msra.mxu0 %v1911_v3  ;;  %3201 = vmatprep.subr.bf16.mxu1 %v1306_v4  ;;  %v747_v3 = vld [vmem:[#allocation2 + $0x1180] sm:$0xff]  ;;  %v5460_v4 = vld [vmem:[%s6447_s5 + $0x78] ss:$316 sps:$4 sm:$0xff]   ;;  %v1325_v6 = vunpack.c.l.s8.bf16 %v443_v2 }
 0x4a4   :  { %4018 = vmatprep.subr.bf16.mxu0 %v1914_v5  ;;  %v5463_v5 = vld [vmem:[%s6447_s5 + $0x110] ss:$316 sps:$4 sm:$0xff]   ;;  %v1933_v7 = vunpack.c.l.s8.bf16 %v747_v3 }
 0x4a6   :  { %3202 = vmatpush1.bf16.msra.mxu1 %v1305_v8  ;;  %v1328_v8 = vunpack.c.h.s8.bf16 %v444_v60  ;;  %v454_v60 = vld [vmem:[#allocation2 + $0x858] sm:$0xff] }
 0x4a7   :  { %4019 = vmatpush1.bf16.msra.mxu0 %v1913_v9  ;;  %3203 = vmatprep.subr.bf16.mxu1 %v1308_v10  ;;  %v1936_v9 = vunpack.c.h.s8.bf16 %v748_v61  ;;  %v446_v10 = vld [vmem:[#allocation2 + $0x818] sm:$0xff] }
 0x4a8   :  { %4020 = vmatprep.subr.bf16.mxu0 %v1916_v11  ;;  %v750_v11 = vld [vmem:[#allocation2 + $0x1198] sm:$0xff] }
 0x4a9   :  { %v758_v61 = vld [vmem:[#allocation2 + $0x11d8] sm:$0xff] }
 0x4aa   :  { %3204 = vmatpush1.bf16.msra.mxu1 %v1307_v14  ;;  %v1327_v14 = vunpack.c.h.s8.bf16 %v443_v2  ;;  %v453_v2 = vld [vmem:[#allocation2 + $0x850] sm:$0xff] }
 0x4ab   :  { %4021 = vmatpush1.bf16.msra.mxu0 %v1915_v15  ;;  %3205 = vmatprep.subr.bf16.mxu1 %v1310_v16  ;;  %v1935_v15 = vunpack.c.h.s8.bf16 %v747_v3  ;;  %v1330_v16 = vunpack.c.l.s8.bf16 %v446_v10  ;;  %v757_v3 = vld [vmem:[#allocation2 + $0x11d0] sm:$0xff] }
 0x4ac   :  { %4022 = vmatprep.subr.bf16.mxu0 %v1918_v17  ;;  %v1938_v17 = vunpack.c.l.s8.bf16 %v750_v11 }
 0x4ae   :  { %3206 = vmatpush1.bf16.msra.mxu1 %v1309_v20  ;;  %v1329_v20 = vunpack.c.l.s8.bf16 %v445_v18 }
 0x4af   :  { %4023 = vmatpush1.bf16.msra.mxu0 %v1917_v21  ;;  %3207 = vmatprep.subr.bf16.mxu1 %v1312_v22  ;;  %v1937_v21 = vunpack.c.l.s8.bf16 %v749_v19  ;;  %v1332_v22 = vunpack.c.h.s8.bf16 %v446_v10  ;;  %v1347_v10 = vunpack.c.h.s8.bf16 %v453_v2 }
 0x4b0   :  { %4024 = vmatprep.subr.bf16.mxu0 %v1920_v23  ;;  %v1940_v23 = vunpack.c.h.s8.bf16 %v750_v11  ;;  %v1955_v11 = vunpack.c.h.s8.bf16 %v757_v3 }
 0x4b2   :  { %3208 = vmatpush1.bf16.msra.mxu1 %v1311_v26  ;;  %v1331_v26 = vunpack.c.h.s8.bf16 %v445_v18 }
 0x4b3   :  { %4025 = vmatpush1.bf16.msra.mxu0 %v1919_v27  ;;  %3209 = vmatprep.subr.bf16.mxu1 %v1314_v28  ;;  %v1939_v27 = vunpack.c.h.s8.bf16 %v749_v19  ;;  %v1334_v28 = vunpack.c.l.s8.bf16 %v448_v24 }
 0x4b4   :  { %4026 = vmatprep.subr.bf16.mxu0 %v1922_v29  ;;  %v1942_v29 = vunpack.c.l.s8.bf16 %v752_v25 }
 0x4b6   :  { %3210 = vmatpush1.bf16.msra.mxu1 %v1313_v32  ;;  %v1333_v32 = vunpack.c.l.s8.bf16 %v447_v30 }
 0x4b7   :  { %4027 = vmatpush1.bf16.msra.mxu0 %v1921_v33  ;;  %3211 = vmatprep.subr.bf16.mxu1 %v1316_v34  ;;  %v1941_v33 = vunpack.c.l.s8.bf16 %v751_v31  ;;  %v1336_v34 = vunpack.c.h.s8.bf16 %v448_v24 }
 0x4b8   :  { %4028 = vmatprep.subr.bf16.mxu0 %v1924_v35  ;;  %v1944_v35 = vunpack.c.h.s8.bf16 %v752_v25 }
 0x4ba   :  { %3212 = vmatpush1.bf16.msra.mxu1 %v1315_v38  ;;  %v1335_v38 = vunpack.c.h.s8.bf16 %v447_v30 }
 0x4bb   :  { %4029 = vmatpush1.bf16.msra.mxu0 %v1923_v39  ;;  %3213 = vmatprep.subr.bf16.mxu1 %v1318_v40  ;;  %v1943_v39 = vunpack.c.h.s8.bf16 %v751_v31  ;;  %v1338_v40 = vunpack.c.l.s8.bf16 %v450_v36 }
 0x4bc   :  { %4030 = vmatprep.subr.bf16.mxu0 %v1926_v41  ;;  %v1946_v41 = vunpack.c.l.s8.bf16 %v754_v37 }
 0x4be   :  { %3214 = vmatpush1.bf16.msra.mxu1 %v1317_v44  ;;  %v1337_v44 = vunpack.c.l.s8.bf16 %v449_v42 }
 0x4bf   :  { %4031 = vmatpush1.bf16.msra.mxu0 %v1925_v45  ;;  %3215 = vmatprep.subr.bf16.mxu1 %v1320_v46  ;;  %v1945_v45 = vunpack.c.l.s8.bf16 %v753_v43  ;;  %v1340_v46 = vunpack.c.h.s8.bf16 %v450_v36 }
 0x4c0   :  { %4032 = vmatprep.subr.bf16.mxu0 %v1928_v47  ;;  %v1948_v47 = vunpack.c.h.s8.bf16 %v754_v37 }
 0x4c2   :  { %3216 = vmatpush1.bf16.msra.mxu1 %v1319_v50  ;;  %v1339_v50 = vunpack.c.h.s8.bf16 %v449_v42 }
 0x4c3   :  { %4033 = vmatpush1.bf16.msra.mxu0 %v1927_v51  ;;  %3217 = vmatprep.subr.bf16.mxu1 %v1322_v52  ;;  %v1947_v51 = vunpack.c.h.s8.bf16 %v753_v43  ;;  %v1342_v52 = vunpack.c.l.s8.bf16 %v452_v48 }
 0x4c4   :  { %4034 = vmatprep.subr.bf16.mxu0 %v1930_v53  ;;  %v1950_v53 = vunpack.c.l.s8.bf16 %v756_v49 }
 0x4c6   :  { %3218 = vmatpush1.bf16.msra.mxu1 %v1321_v56  ;;  %v1341_v56 = vunpack.c.l.s8.bf16 %v451_v54 }
 0x4c7   :  { %4035 = vmatpush1.bf16.msra.mxu0 %v1929_v57  ;;  %3219 = vmatprep.subr.bf16.mxu1 %v1324_v58  ;;  %v1949_v57 = vunpack.c.l.s8.bf16 %v755_v55  ;;  %v1344_v58 = vunpack.c.h.s8.bf16 %v452_v48  ;;  %v5474_v48 = vld [vmem:[%s6447_s5 + $0x8c] ss:$316 sps:$4 sm:$0xff]  }
 0x4c8   :  { %4036 = vmatprep.subr.bf16.mxu0 %v1932_v59  ;;  %v1952_v59 = vunpack.c.h.s8.bf16 %v756_v49  ;;  %v5477_v49 = vld [vmem:[%s6447_s5 + $0x124] ss:$316 sps:$4 sm:$0xff]  }
 0x4ca   :  { %3220 = vmatpush1.bf16.msra.mxu1 %v1323_v62  ;;  %v1343_v62 = vunpack.c.h.s8.bf16 %v451_v54  ;;  %v461_v54 = vld [vmem:[#allocation2 + $0x890] sm:$0xff] }
 0x4cb   :  { %4037 = vmatpush1.bf16.msra.mxu0 %v1931_v63  ;;  %3232 = vmatprep.subr.bf16.mxu1 %v1326_v0  ;;  %v1951_v63 = vunpack.c.h.s8.bf16 %v755_v55  ;;  %v1346_v0 = vunpack.c.l.s8.bf16 %v454_v60  ;;  %v765_v55 = vld [vmem:[#allocation2 + $0x1210] sm:$0xff] }
 0x4cc   :  { %4049 = vmatprep.subr.bf16.mxu0 %v1934_v1  ;;  %v1954_v1 = vunpack.c.l.s8.bf16 %v758_v61 }
 0x4cd   :  { %3222 = vmatmul.mubr.bf16.vlgmr.msra.gmra.mrb[0].mxu1 %v5460_v4  ;;  %v1345_v4 = vunpack.c.l.s8.bf16 %v453_v2  ;;  %v463_v2 = vld [vmem:[#allocation2 + $0x8a0] sm:$0xff] }
 0x4ce   :  { %4039 = vmatmul.mubr.bf16.vlgmr.msra.gmra.mrb[0].mxu0 %v5463_v5  ;;  %3233 = vmatpush1.bf16.msra.mxu1 %v1325_v6  ;;  %v1953_v5 = vunpack.c.l.s8.bf16 %v757_v3  ;;  %v1348_v6 = vunpack.c.h.s8.bf16 %v454_v60  ;;  %v464_v60 = vld [vmem:[#allocation2 + $0x8a8] sm:$0xff]  ;;  %v767_v3 = vld [vmem:[#allocation2 + $0x1220] sm:$0xff] }
 0x4cf   :  { %4050 = vmatpush1.bf16.msra.mxu0 %v1933_v7  ;;  %3234 = vmatprep.subr.bf16.mxu1 %v1328_v8  ;;  %v1956_v7 = vunpack.c.h.s8.bf16 %v758_v61  ;;  %v456_v8 = vld [vmem:[#allocation2 + $0x868] sm:$0xff] }
 0x4d0   :  { %4051 = vmatprep.subr.bf16.mxu0 %v1936_v9  ;;  %3264 = vmatprep.mubr.bf16.mxu1 %v5468_v12  ;;  %v760_v9 = vld [vmem:[#allocation2 + $0x11e8] sm:$0xff]  ;;  %v1350_v12 = vunpack.c.l.s8.bf16 %v456_v8  ;;  %v1352_v18 = vunpack.c.h.s8.bf16 %v456_v8  ;;  %v466_v8 = vld [vmem:[#allocation2 + $0x8b8] sm:$0xff] }
 0x4d1   :  { %4081 = vmatprep.mubr.bf16.mxu0 %v5471_v13  ;;  %v1958_v13 = vunpack.c.l.s8.bf16 %v760_v9  ;;  %v1960_v19 = vunpack.c.h.s8.bf16 %v760_v9  ;;  %v768_v61 = vld [vmem:[#allocation2 + $0x1228] sm:$0xff]  ;;  %v770_v9 = vld [vmem:[#allocation2 + $0x1238] sm:$0xff] }
 0x4d2   :  { %3235 = vmatpush1.bf16.msra.mxu1 %v1327_v14  ;;  %v455_v14 = vld [vmem:[#allocation2 + $0x860] sm:$0xff] }
 0x4d3   :  { %4052 = vmatpush1.bf16.msra.mxu0 %v1935_v15  ;;  %3236 = vmatprep.subr.bf16.mxu1 %v1330_v16  ;;  %v759_v15 = vld [vmem:[#allocation2 + $0x11e0] sm:$0xff]  ;;  %v1349_v16 = vunpack.c.l.s8.bf16 %v455_v14 }
 0x4d4   :  { %4053 = vmatprep.subr.bf16.mxu0 %v1938_v17  ;;  %v1957_v17 = vunpack.c.l.s8.bf16 %v759_v15 }
 0x4d6   :  { %3237 = vmatpush1.bf16.msra.mxu1 %v1329_v20  ;;  %v458_v20 = vld [vmem:[#allocation2 + $0x878] sm:$0xff] }
 0x4d7   :  { %4054 = vmatpush1.bf16.msra.mxu0 %v1937_v21  ;;  %3238 = vmatprep.subr.bf16.mxu1 %v1332_v22  ;;  %v762_v21 = vld [vmem:[#allocation2 + $0x11f8] sm:$0xff]  ;;  %v1351_v22 = vunpack.c.h.s8.bf16 %v455_v14  ;;  %v1354_v24 = vunpack.c.l.s8.bf16 %v458_v20  ;;  %v1356_v30 = vunpack.c.h.s8.bf16 %v458_v20  ;;  %v465_v14 = vld [vmem:[#allocation2 + $0x8b0] sm:$0xff]  ;;  %v468_v20 = vld [vmem:[#allocation2 + $0x8c8] sm:$0xff] }
 0x4d8   :  { %4055 = vmatprep.subr.bf16.mxu0 %v1940_v23  ;;  %v1959_v23 = vunpack.c.h.s8.bf16 %v759_v15  ;;  %v1962_v25 = vunpack.c.l.s8.bf16 %v762_v21  ;;  %v1964_v31 = vunpack.c.h.s8.bf16 %v762_v21  ;;  %v769_v15 = vld [vmem:[#allocation2 + $0x1230] sm:$0xff]  ;;  %v772_v21 = vld [vmem:[#allocation2 + $0x1248] sm:$0xff] }
 0x4da   :  { %3239 = vmatpush1.bf16.msra.mxu1 %v1331_v26  ;;  %v457_v26 = vld [vmem:[#allocation2 + $0x870] sm:$0xff] }
 0x4db   :  { %4056 = vmatpush1.bf16.msra.mxu0 %v1939_v27  ;;  %3240 = vmatprep.subr.bf16.mxu1 %v1334_v28  ;;  %v761_v27 = vld [vmem:[#allocation2 + $0x11f0] sm:$0xff]  ;;  %v1353_v28 = vunpack.c.l.s8.bf16 %v457_v26 }
 0x4dc   :  { %4057 = vmatprep.subr.bf16.mxu0 %v1942_v29  ;;  %v1961_v29 = vunpack.c.l.s8.bf16 %v761_v27 }
 0x4de   :  { %3241 = vmatpush1.bf16.msra.mxu1 %v1333_v32  ;;  %v460_v32 = vld [vmem:[#allocation2 + $0x888] sm:$0xff] }
 0x4df   :  { %4058 = vmatpush1.bf16.msra.mxu0 %v1941_v33  ;;  %3242 = vmatprep.subr.bf16.mxu1 %v1336_v34  ;;  %v764_v33 = vld [vmem:[#allocation2 + $0x1208] sm:$0xff]  ;;  %v1355_v34 = vunpack.c.h.s8.bf16 %v457_v26  ;;  %v1358_v36 = vunpack.c.l.s8.bf16 %v460_v32  ;;  %v467_v26 = vld [vmem:[#allocation2 + $0x8c0] sm:$0xff] }
 0x4e0   :  { %4059 = vmatprep.subr.bf16.mxu0 %v1944_v35  ;;  %v1963_v35 = vunpack.c.h.s8.bf16 %v761_v27  ;;  %v1966_v37 = vunpack.c.l.s8.bf16 %v764_v33  ;;  %v771_v27 = vld [vmem:[#allocation2 + $0x1240] sm:$0xff] }
 0x4e2   :  { %3243 = vmatpush1.bf16.msra.mxu1 %v1335_v38  ;;  %v459_v38 = vld [vmem:[#allocation2 + $0x880] sm:$0xff] }
 0x4e3   :  { %4060 = vmatpush1.bf16.msra.mxu0 %v1943_v39  ;;  %3244 = vmatprep.subr.bf16.mxu1 %v1338_v40  ;;  %v763_v39 = vld [vmem:[#allocation2 + $0x1200] sm:$0xff]  ;;  %v1357_v42 = vunpack.c.l.s8.bf16 %v459_v38 }
 0x4e4   :  { %4061 = vmatprep.subr.bf16.mxu0 %v1946_v41  ;;  %v5466_v40 = vld [vmem:[%s6447_s5 + $0x80] ss:$316 sps:$4 sm:$0xff]   ;;  %v5469_v41 = vld [vmem:[%s6447_s5 + $0x118] ss:$316 sps:$4 sm:$0xff]   ;;  %v1965_v43 = vunpack.c.l.s8.bf16 %v763_v39 }
 0x4e6   :  { %3245 = vmatpush1.bf16.msra.mxu1 %v1337_v44  ;;  %v1360_v44 = vunpack.c.h.s8.bf16 %v460_v32  ;;  %v470_v32 = vld [vmem:[#allocation2 + $0x8d8] sm:$0xff] }
 0x4e7   :  { %4062 = vmatpush1.bf16.msra.mxu0 %v1945_v45  ;;  %3246 = vmatprep.subr.bf16.mxu1 %v1340_v46  ;;  %v1968_v45 = vunpack.c.h.s8.bf16 %v764_v33  ;;  %v462_v46 = vld [vmem:[#allocation2 + $0x898] sm:$0xff] }
 0x4e8   :  { %4063 = vmatprep.subr.bf16.mxu0 %v1948_v47  ;;  %v766_v47 = vld [vmem:[#allocation2 + $0x1218] sm:$0xff] }
 0x4e9   :  { %v774_v33 = vld [vmem:[#allocation2 + $0x1258] sm:$0xff] }
 0x4ea   :  { %3247 = vmatpush1.bf16.msra.mxu1 %v1339_v50  ;;  %v1359_v50 = vunpack.c.h.s8.bf16 %v459_v38  ;;  %v469_v38 = vld [vmem:[#allocation2 + $0x8d0] sm:$0xff] }
 0x4eb   :  { %4064 = vmatpush1.bf16.msra.mxu0 %v1947_v51  ;;  %3248 = vmatprep.subr.bf16.mxu1 %v1342_v52  ;;  %v1967_v51 = vunpack.c.h.s8.bf16 %v763_v39  ;;  %v1362_v52 = vunpack.c.l.s8.bf16 %v462_v46  ;;  %v773_v39 = vld [vmem:[#allocation2 + $0x1250] sm:$0xff] }
 0x4ec   :  { %4065 = vmatprep.subr.bf16.mxu0 %v1950_v53  ;;  %v1970_v53 = vunpack.c.l.s8.bf16 %v766_v47 }
 0x4ee   :  { %3249 = vmatpush1.bf16.msra.mxu1 %v1341_v56  ;;  %v1361_v56 = vunpack.c.l.s8.bf16 %v461_v54 }
 0x4ef   :  { %4066 = vmatpush1.bf16.msra.mxu0 %v1949_v57  ;;  %3250 = vmatprep.subr.bf16.mxu1 %v1344_v58  ;;  %v1969_v57 = vunpack.c.l.s8.bf16 %v765_v55  ;;  %v1364_v58 = vunpack.c.h.s8.bf16 %v462_v46  ;;  %v1379_v46 = vunpack.c.h.s8.bf16 %v469_v38 }
 0x4f0   :  { %4067 = vmatprep.subr.bf16.mxu0 %v1952_v59  ;;  %v1972_v59 = vunpack.c.h.s8.bf16 %v766_v47  ;;  %v1987_v47 = vunpack.c.h.s8.bf16 %v773_v39 }
 0x4f2   :  { %3251 = vmatpush1.bf16.msra.mxu1 %v1343_v62  ;;  %v1363_v62 = vunpack.c.h.s8.bf16 %v461_v54 }
 0x4f3   :  { %4068 = vmatpush1.bf16.msra.mxu0 %v1951_v63  ;;  %3252 = vmatprep.subr.bf16.mxu1 %v1346_v0  ;;  %v1971_v63 = vunpack.c.h.s8.bf16 %v765_v55  ;;  %v1366_v0 = vunpack.c.l.s8.bf16 %v464_v60 }
 0x4f4   :  { %4069 = vmatprep.subr.bf16.mxu0 %v1954_v1  ;;  %v1974_v1 = vunpack.c.l.s8.bf16 %v768_v61 }
 0x4f6   :  { %3253 = vmatpush1.bf16.msra.mxu1 %v1345_v4  ;;  %v1365_v4 = vunpack.c.l.s8.bf16 %v463_v2 }
 0x4f7   :  { %4070 = vmatpush1.bf16.msra.mxu0 %v1953_v5  ;;  %3254 = vmatprep.subr.bf16.mxu1 %v1348_v6  ;;  %v1973_v5 = vunpack.c.l.s8.bf16 %v767_v3  ;;  %v1368_v6 = vunpack.c.h.s8.bf16 %v464_v60 }
 0x4f8   :  { %4071 = vmatprep.subr.bf16.mxu0 %v1956_v7  ;;  %v1976_v7 = vunpack.c.h.s8.bf16 %v768_v61 }
 0x4fa   :  { %3255 = vmatpush1.bf16.msra.mxu1 %v1347_v10  ;;  %v1367_v10 = vunpack.c.h.s8.bf16 %v463_v2 }
 0x4fb   :  { %4072 = vmatpush1.bf16.msra.mxu0 %v1955_v11  ;;  %3256 = vmatprep.subr.bf16.mxu1 %v1350_v12  ;;  %v1975_v11 = vunpack.c.h.s8.bf16 %v767_v3  ;;  %v1370_v12 = vunpack.c.l.s8.bf16 %v466_v8 }
 0x4fc   :  { %4073 = vmatprep.subr.bf16.mxu0 %v1958_v13  ;;  %v1978_v13 = vunpack.c.l.s8.bf16 %v770_v9 }
 0x4fe   :  { %3257 = vmatpush1.bf16.msra.mxu1 %v1349_v16  ;;  %v1369_v16 = vunpack.c.l.s8.bf16 %v465_v14 }
 0x4ff   :  { %4074 = vmatpush1.bf16.msra.mxu0 %v1957_v17  ;;  %3258 = vmatprep.subr.bf16.mxu1 %v1352_v18  ;;  %v1977_v17 = vunpack.c.l.s8.bf16 %v769_v15  ;;  %v1372_v18 = vunpack.c.h.s8.bf16 %v466_v8 }
 0x500   :  { %4075 = vmatprep.subr.bf16.mxu0 %v1960_v19  ;;  %v1980_v19 = vunpack.c.h.s8.bf16 %v770_v9 }
 0x502   :  { %3259 = vmatpush1.bf16.msra.mxu1 %v1351_v22  ;;  %v1371_v22 = vunpack.c.h.s8.bf16 %v465_v14 }
 0x503   :  { %4076 = vmatpush1.bf16.msra.mxu0 %v1959_v23  ;;  %3260 = vmatprep.subr.bf16.mxu1 %v1354_v24  ;;  %v1979_v23 = vunpack.c.h.s8.bf16 %v769_v15  ;;  %v1374_v24 = vunpack.c.l.s8.bf16 %v468_v20 }
 0x504   :  { %4077 = vmatprep.subr.bf16.mxu0 %v1962_v25  ;;  %v1982_v25 = vunpack.c.l.s8.bf16 %v772_v21 }
 0x506   :  { %3261 = vmatpush1.bf16.msra.mxu1 %v1353_v28  ;;  %v1373_v28 = vunpack.c.l.s8.bf16 %v467_v26 }
 0x507   :  { %4078 = vmatpush1.bf16.msra.mxu0 %v1961_v29  ;;  %3262 = vmatprep.subr.bf16.mxu1 %v1356_v30  ;;  %v1981_v29 = vunpack.c.l.s8.bf16 %v771_v27  ;;  %v1376_v30 = vunpack.c.h.s8.bf16 %v468_v20  ;;  %v5480_v20 = vld [vmem:[%s6447_s5 + $0x94] ss:$316 sps:$4 sm:$0xff]  }
 0x508   :  { %4079 = vmatprep.subr.bf16.mxu0 %v1964_v31  ;;  %v1984_v31 = vunpack.c.h.s8.bf16 %v772_v21  ;;  %v5483_v21 = vld [vmem:[%s6447_s5 + $0x12c] ss:$316 sps:$4 sm:$0xff]  }
 0x50a   :  { %3263 = vmatpush1.bf16.msra.mxu1 %v1355_v34  ;;  %v1375_v34 = vunpack.c.h.s8.bf16 %v467_v26  ;;  %v477_v26 = vld [vmem:[#allocation2 + $0x910] sm:$0xff] }
 0x50b   :  { %4080 = vmatpush1.bf16.msra.mxu0 %v1963_v35  ;;  %3275 = vmatprep.subr.bf16.mxu1 %v1358_v36  ;;  %v1983_v35 = vunpack.c.h.s8.bf16 %v771_v27  ;;  %v1378_v36 = vunpack.c.l.s8.bf16 %v470_v32  ;;  %v781_v27 = vld [vmem:[#allocation2 + $0x1290] sm:$0xff] }
 0x50c   :  { %4092 = vmatprep.subr.bf16.mxu0 %v1966_v37  ;;  %v1986_v37 = vunpack.c.l.s8.bf16 %v774_v33 }
 0x50d   :  { %3265 = vmatmul.mubr.bf16.vlgmr.msra.gmra.mrb[0].mxu1 %v5466_v40  ;;  %v1377_v40 = vunpack.c.l.s8.bf16 %v469_v38  ;;  %v479_v38 = vld [vmem:[#allocation2 + $0x920] sm:$0xff] }
 0x50e   :  { %4082 = vmatmul.mubr.bf16.vlgmr.msra.gmra.mrb[0].mxu0 %v5469_v41  ;;  %3276 = vmatpush1.bf16.msra.mxu1 %v1357_v42  ;;  %v1985_v41 = vunpack.c.l.s8.bf16 %v773_v39  ;;  %v1380_v42 = vunpack.c.h.s8.bf16 %v470_v32  ;;  %v480_v32 = vld [vmem:[#allocation2 + $0x928] sm:$0xff]  ;;  %v783_v39 = vld [vmem:[#allocation2 + $0x12a0] sm:$0xff] }
 0x50f   :  { %4093 = vmatpush1.bf16.msra.mxu0 %v1965_v43  ;;  %3277 = vmatprep.subr.bf16.mxu1 %v1360_v44  ;;  %v1988_v43 = vunpack.c.h.s8.bf16 %v774_v33  ;;  %v472_v44 = vld [vmem:[#allocation2 + $0x8e8] sm:$0xff] }
 0x510   :  { %4094 = vmatprep.subr.bf16.mxu0 %v1968_v45  ;;  %3307 = vmatprep.mubr.bf16.mxu1 %v5474_v48  ;;  %v776_v45 = vld [vmem:[#allocation2 + $0x1268] sm:$0xff]  ;;  %v1382_v48 = vunpack.c.l.s8.bf16 %v472_v44  ;;  %v1384_v54 = vunpack.c.h.s8.bf16 %v472_v44  ;;  %v482_v44 = vld [vmem:[#allocation2 + $0x938] sm:$0xff] }
 0x511   :  { %4124 = vmatprep.mubr.bf16.mxu0 %v5477_v49  ;;  %v1990_v49 = vunpack.c.l.s8.bf16 %v776_v45  ;;  %v1992_v55 = vunpack.c.h.s8.bf16 %v776_v45  ;;  %v784_v33 = vld [vmem:[#allocation2 + $0x12a8] sm:$0xff]  ;;  %v786_v45 = vld [vmem:[#allocation2 + $0x12b8] sm:$0xff] }
 0x512   :  { %3278 = vmatpush1.bf16.msra.mxu1 %v1359_v50  ;;  %v471_v50 = vld [vmem:[#allocation2 + $0x8e0] sm:$0xff] }
 0x513   :  { %4095 = vmatpush1.bf16.msra.mxu0 %v1967_v51  ;;  %3279 = vmatprep.subr.bf16.mxu1 %v1362_v52  ;;  %v775_v51 = vld [vmem:[#allocation2 + $0x1260] sm:$0xff]  ;;  %v1381_v52 = vunpack.c.l.s8.bf16 %v471_v50 }
 0x514   :  { %4096 = vmatprep.subr.bf16.mxu0 %v1970_v53  ;;  %v1989_v53 = vunpack.c.l.s8.bf16 %v775_v51 }
 0x516   :  { %3280 = vmatpush1.bf16.msra.mxu1 %v1361_v56  ;;  %v474_v56 = vld [vmem:[#allocation2 + $0x8f8] sm:$0xff] }
 0x517   :  { %4097 = vmatpush1.bf16.msra.mxu0 %v1969_v57  ;;  %3281 = vmatprep.subr.bf16.mxu1 %v1364_v58  ;;  %v778_v57 = vld [vmem:[#allocation2 + $0x1278] sm:$0xff]  ;;  %v1383_v58 = vunpack.c.h.s8.bf16 %v471_v50  ;;  %v1386_v60 = vunpack.c.l.s8.bf16 %v474_v56  ;;  %v1388_v2 = vunpack.c.h.s8.bf16 %v474_v56  ;;  %v481_v50 = vld [vmem:[#allocation2 + $0x930] sm:$0xff]  ;;  %v484_v56 = vld [vmem:[#allocation2 + $0x948] sm:$0xff] }
 0x518   :  { %4098 = vmatprep.subr.bf16.mxu0 %v1972_v59  ;;  %v1991_v59 = vunpack.c.h.s8.bf16 %v775_v51  ;;  %v1994_v61 = vunpack.c.l.s8.bf16 %v778_v57  ;;  %v1996_v3 = vunpack.c.h.s8.bf16 %v778_v57  ;;  %v785_v51 = vld [vmem:[#allocation2 + $0x12b0] sm:$0xff]  ;;  %v788_v57 = vld [vmem:[#allocation2 + $0x12c8] sm:$0xff] }
 0x51a   :  { %3282 = vmatpush1.bf16.msra.mxu1 %v1363_v62  ;;  %v473_v62 = vld [vmem:[#allocation2 + $0x8f0] sm:$0xff] }
 0x51b   :  { %4099 = vmatpush1.bf16.msra.mxu0 %v1971_v63  ;;  %3283 = vmatprep.subr.bf16.mxu1 %v1366_v0  ;;  %v777_v63 = vld [vmem:[#allocation2 + $0x1270] sm:$0xff]  ;;  %v1385_v0 = vunpack.c.l.s8.bf16 %v473_v62 }
 0x51c   :  { %4100 = vmatprep.subr.bf16.mxu0 %v1974_v1  ;;  %v1993_v1 = vunpack.c.l.s8.bf16 %v777_v63 }
 0x51e   :  { %3284 = vmatpush1.bf16.msra.mxu1 %v1365_v4  ;;  %v476_v4 = vld [vmem:[#allocation2 + $0x908] sm:$0xff] }
 0x51f   :  { %4101 = vmatpush1.bf16.msra.mxu0 %v1973_v5  ;;  %3285 = vmatprep.subr.bf16.mxu1 %v1368_v6  ;;  %v780_v5 = vld [vmem:[#allocation2 + $0x1288] sm:$0xff]  ;;  %v1387_v6 = vunpack.c.h.s8.bf16 %v473_v62  ;;  %v1390_v8 = vunpack.c.l.s8.bf16 %v476_v4  ;;  %v483_v62 = vld [vmem:[#allocation2 + $0x940] sm:$0xff] }
 0x520   :  { %4102 = vmatprep.subr.bf16.mxu0 %v1976_v7  ;;  %v1995_v7 = vunpack.c.h.s8.bf16 %v777_v63  ;;  %v1998_v9 = vunpack.c.l.s8.bf16 %v780_v5  ;;  %v787_v63 = vld [vmem:[#allocation2 + $0x12c0] sm:$0xff] }
 0x522   :  { %3286 = vmatpush1.bf16.msra.mxu1 %v1367_v10  ;;  %v475_v10 = vld [vmem:[#allocation2 + $0x900] sm:$0xff] }
 0x523   :  { %4103 = vmatpush1.bf16.msra.mxu0 %v1975_v11  ;;  %3287 = vmatprep.subr.bf16.mxu1 %v1370_v12  ;;  %v779_v11 = vld [vmem:[#allocation2 + $0x1280] sm:$0xff]  ;;  %v1389_v14 = vunpack.c.l.s8.bf16 %v475_v10 }
 0x524   :  { %4104 = vmatprep.subr.bf16.mxu0 %v1978_v13  ;;  %v5472_v12 = vld [vmem:[%s6447_s5 + $0x88] ss:$316 sps:$4 sm:$0xff]   ;;  %v5475_v13 = vld [vmem:[%s6447_s5 + $0x120] ss:$316 sps:$4 sm:$0xff]   ;;  %v1997_v15 = vunpack.c.l.s8.bf16 %v779_v11 }
 0x526   :  { %3288 = vmatpush1.bf16.msra.mxu1 %v1369_v16  ;;  %v1392_v16 = vunpack.c.h.s8.bf16 %v476_v4  ;;  %v486_v4 = vld [vmem:[#allocation2 + $0x958] sm:$0xff] }
 0x527   :  { %4105 = vmatpush1.bf16.msra.mxu0 %v1977_v17  ;;  %3289 = vmatprep.subr.bf16.mxu1 %v1372_v18  ;;  %v2000_v17 = vunpack.c.h.s8.bf16 %v780_v5  ;;  %v478_v18 = vld [vmem:[#allocation2 + $0x918] sm:$0xff] }
 0x528   :  { %4106 = vmatprep.subr.bf16.mxu0 %v1980_v19  ;;  %v782_v19 = vld [vmem:[#allocation2 + $0x1298] sm:$0xff] }
 0x529   :  { %v790_v5 = vld [vmem:[#allocation2 + $0x12d8] sm:$0xff] }
 0x52a   :  { %3290 = vmatpush1.bf16.msra.mxu1 %v1371_v22  ;;  %v1391_v22 = vunpack.c.h.s8.bf16 %v475_v10  ;;  %v485_v10 = vld [vmem:[#allocation2 + $0x950] sm:$0xff] }
 0x52b   :  { %4107 = vmatpush1.bf16.msra.mxu0 %v1979_v23  ;;  %3291 = vmatprep.subr.bf16.mxu1 %v1374_v24  ;;  %v1999_v23 = vunpack.c.h.s8.bf16 %v779_v11  ;;  %v1394_v24 = vunpack.c.l.s8.bf16 %v478_v18  ;;  %v789_v11 = vld [vmem:[#allocation2 + $0x12d0] sm:$0xff] }
 0x52c   :  { %4108 = vmatprep.subr.bf16.mxu0 %v1982_v25  ;;  %v2002_v25 = vunpack.c.l.s8.bf16 %v782_v19 }
 0x52e   :  { %3292 = vmatpush1.bf16.msra.mxu1 %v1373_v28  ;;  %v1393_v28 = vunpack.c.l.s8.bf16 %v477_v26 }
 0x52f   :  { %4109 = vmatpush1.bf16.msra.mxu0 %v1981_v29  ;;  %3293 = vmatprep.subr.bf16.mxu1 %v1376_v30  ;;  %v2001_v29 = vunpack.c.l.s8.bf16 %v781_v27  ;;  %v1396_v30 = vunpack.c.h.s8.bf16 %v478_v18  ;;  %v1411_v18 = vunpack.c.h.s8.bf16 %v485_v10 }
 0x530   :  { %4110 = vmatprep.subr.bf16.mxu0 %v1984_v31  ;;  %v2004_v31 = vunpack.c.h.s8.bf16 %v782_v19  ;;  %v2019_v19 = vunpack.c.h.s8.bf16 %v789_v11 }
 0x532   :  { %3294 = vmatpush1.bf16.msra.mxu1 %v1375_v34  ;;  %v1395_v34 = vunpack.c.h.s8.bf16 %v477_v26 }
 0x533   :  { %4111 = vmatpush1.bf16.msra.mxu0 %v1983_v35  ;;  %3295 = vmatprep.subr.bf16.mxu1 %v1378_v36  ;;  %v2003_v35 = vunpack.c.h.s8.bf16 %v781_v27  ;;  %v1398_v36 = vunpack.c.l.s8.bf16 %v480_v32 }
 0x534   :  { %4112 = vmatprep.subr.bf16.mxu0 %v1986_v37  ;;  %v2006_v37 = vunpack.c.l.s8.bf16 %v784_v33 }
 0x536   :  { %3296 = vmatpush1.bf16.msra.mxu1 %v1377_v40  ;;  %v1397_v40 = vunpack.c.l.s8.bf16 %v479_v38 }
 0x537   :  { %4113 = vmatpush1.bf16.msra.mxu0 %v1985_v41  ;;  %3297 = vmatprep.subr.bf16.mxu1 %v1380_v42  ;;  %v2005_v41 = vunpack.c.l.s8.bf16 %v783_v39  ;;  %v1400_v42 = vunpack.c.h.s8.bf16 %v480_v32 }
 0x538   :  { %4114 = vmatprep.subr.bf16.mxu0 %v1988_v43  ;;  %v2008_v43 = vunpack.c.h.s8.bf16 %v784_v33 }
 0x53a   :  { %3298 = vmatpush1.bf16.msra.mxu1 %v1379_v46  ;;  %v1399_v46 = vunpack.c.h.s8.bf16 %v479_v38 }
 0x53b   :  { %4115 = vmatpush1.bf16.msra.mxu0 %v1987_v47  ;;  %3299 = vmatprep.subr.bf16.mxu1 %v1382_v48  ;;  %v2007_v47 = vunpack.c.h.s8.bf16 %v783_v39  ;;  %v1402_v48 = vunpack.c.l.s8.bf16 %v482_v44 }
 0x53c   :  { %4116 = vmatprep.subr.bf16.mxu0 %v1990_v49  ;;  %v2010_v49 = vunpack.c.l.s8.bf16 %v786_v45 }
 0x53e   :  { %3300 = vmatpush1.bf16.msra.mxu1 %v1381_v52  ;;  %v1401_v52 = vunpack.c.l.s8.bf16 %v481_v50 }
 0x53f   :  { %4117 = vmatpush1.bf16.msra.mxu0 %v1989_v53  ;;  %3301 = vmatprep.subr.bf16.mxu1 %v1384_v54  ;;  %v2009_v53 = vunpack.c.l.s8.bf16 %v785_v51  ;;  %v1404_v54 = vunpack.c.h.s8.bf16 %v482_v44 }
 0x540   :  { %4118 = vmatprep.subr.bf16.mxu0 %v1992_v55  ;;  %v2012_v55 = vunpack.c.h.s8.bf16 %v786_v45  ;;  %v795_v45 = vld [vmem:[#allocation2 + $0x1300] sm:$0xff] }
 0x542   :  { %3302 = vmatpush1.bf16.msra.mxu1 %v1383_v58  ;;  %v1403_v58 = vunpack.c.h.s8.bf16 %v481_v50  ;;  %v2029_v50 = vunpack.c.l.s8.bf16 %v795_v45 }
 0x543   :  { %4119 = vmatpush1.bf16.msra.mxu0 %v1991_v59  ;;  %3303 = vmatprep.subr.bf16.mxu1 %v1386_v60  ;;  %v2011_v59 = vunpack.c.h.s8.bf16 %v785_v51  ;;  %v1406_v60 = vunpack.c.l.s8.bf16 %v484_v56 }
 0x544   :  { %4120 = vmatprep.subr.bf16.mxu0 %v1994_v61  ;;  %v2014_v61 = vunpack.c.l.s8.bf16 %v788_v57 }
 0x546   :  { %3304 = vmatpush1.bf16.msra.mxu1 %v1385_v0  ;;  %v1405_v0 = vunpack.c.l.s8.bf16 %v483_v62 }
 0x547   :  { %4121 = vmatpush1.bf16.msra.mxu0 %v1993_v1  ;;  %3305 = vmatprep.subr.bf16.mxu1 %v1388_v2  ;;  %v2013_v1 = vunpack.c.l.s8.bf16 %v787_v63  ;;  %v1408_v2 = vunpack.c.h.s8.bf16 %v484_v56  ;;  %v2031_v56 = vunpack.c.h.s8.bf16 %v795_v45 }
 0x548   :  { %4122 = vmatprep.subr.bf16.mxu0 %v1996_v3  ;;  %v2016_v3 = vunpack.c.h.s8.bf16 %v788_v57 }
 0x54a   :  { %3306 = vmatpush1.bf16.msra.mxu1 %v1387_v6  ;;  %v1407_v6 = vunpack.c.h.s8.bf16 %v483_v62 }
 0x54b   :  { %4123 = vmatpush1.bf16.msra.mxu0 %v1995_v7  ;;  %3318 = vmatprep.subr.bf16.mxu1 %v1390_v8  ;;  %v2015_v7 = vunpack.c.h.s8.bf16 %v787_v63  ;;  %v1410_v8 = vunpack.c.l.s8.bf16 %v486_v4 }
 0x54c   :  { %4135 = vmatprep.subr.bf16.mxu0 %v1998_v9  ;;  %v2018_v9 = vunpack.c.l.s8.bf16 %v790_v5 }
 0x54d   :  { %3308 = vmatmul.mubr.bf16.vlgmr.msra.gmra.mrb[0].mxu1 %v5472_v12  ;;  %v1409_v12 = vunpack.c.l.s8.bf16 %v485_v10 }
 0x54e   :  { %4125 = vmatmul.mubr.bf16.vlgmr.msra.gmra.mrb[0].mxu0 %v5475_v13  ;;  %3319 = vmatpush1.bf16.msra.mxu1 %v1389_v14  ;;  %v2017_v13 = vunpack.c.l.s8.bf16 %v789_v11  ;;  %v1412_v14 = vunpack.c.h.s8.bf16 %v486_v4 }
 0x54f   :  { %4136 = vmatpush1.bf16.msra.mxu0 %v1997_v15  ;;  %3320 = vmatprep.subr.bf16.mxu1 %v1392_v16  ;;  %v2020_v15 = vunpack.c.h.s8.bf16 %v790_v5  ;;  %v488_v16 = vld [vmem:[#allocation2 + $0x968] sm:$0xff] }
 0x550   :  { %4137 = vmatprep.subr.bf16.mxu0 %v2000_v17  ;;  %3350 = vmatprep.mubr.bf16.mxu1 %v5480_v20  ;;  %v792_v17 = vld [vmem:[#allocation2 + $0x12e8] sm:$0xff]  ;;  %v1414_v20 = vunpack.c.l.s8.bf16 %v488_v16  ;;  %v1416_v26 = vunpack.c.h.s8.bf16 %v488_v16 }
 0x551   :  { %4167 = vmatprep.mubr.bf16.mxu0 %v5483_v21  ;;  %v2022_v21 = vunpack.c.l.s8.bf16 %v792_v17  ;;  %v2024_v27 = vunpack.c.h.s8.bf16 %v792_v17 }
 0x552   :  { %3321 = vmatpush1.bf16.msra.mxu1 %v1391_v22  ;;  %v487_v22 = vld [vmem:[#allocation2 + $0x960] sm:$0xff] }
 0x553   :  { %4138 = vmatpush1.bf16.msra.mxu0 %v1999_v23  ;;  %3322 = vmatprep.subr.bf16.mxu1 %v1394_v24  ;;  %v791_v23 = vld [vmem:[#allocation2 + $0x12e0] sm:$0xff]  ;;  %v1413_v24 = vunpack.c.l.s8.bf16 %v487_v22 }
 0x554   :  { %4139 = vmatprep.subr.bf16.mxu0 %v2002_v25  ;;  %v2021_v25 = vunpack.c.l.s8.bf16 %v791_v23 }
 0x556   :  { %3323 = vmatpush1.bf16.msra.mxu1 %v1393_v28  ;;  %v490_v28 = vld [vmem:[#allocation2 + $0x978] sm:$0xff] }
 0x557   :  { %4140 = vmatpush1.bf16.msra.mxu0 %v2001_v29  ;;  %3324 = vmatprep.subr.bf16.mxu1 %v1396_v30  ;;  %v794_v29 = vld [vmem:[#allocation2 + $0x12f8] sm:$0xff]  ;;  %v1415_v30 = vunpack.c.h.s8.bf16 %v487_v22  ;;  %v1418_v32 = vunpack.c.l.s8.bf16 %v490_v28  ;;  %v1420_v38 = vunpack.c.h.s8.bf16 %v490_v28 }
 0x558   :  { %4141 = vmatprep.subr.bf16.mxu0 %v2004_v31  ;;  %v2023_v31 = vunpack.c.h.s8.bf16 %v791_v23  ;;  %v2026_v33 = vunpack.c.l.s8.bf16 %v794_v29  ;;  %v2028_v39 = vunpack.c.h.s8.bf16 %v794_v29 }
 0x55a   :  { %3325 = vmatpush1.bf16.msra.mxu1 %v1395_v34  ;;  %v489_v34 = vld [vmem:[#allocation2 + $0x970] sm:$0xff] }
 0x55b   :  { %4142 = vmatpush1.bf16.msra.mxu0 %v2003_v35  ;;  %3326 = vmatprep.subr.bf16.mxu1 %v1398_v36  ;;  %v793_v35 = vld [vmem:[#allocation2 + $0x12f0] sm:$0xff]  ;;  %v1417_v36 = vunpack.c.l.s8.bf16 %v489_v34 }
 0x55c   :  { %4143 = vmatprep.subr.bf16.mxu0 %v2006_v37  ;;  %v2025_v37 = vunpack.c.l.s8.bf16 %v793_v35 }
 0x55e   :  { %3327 = vmatpush1.bf16.msra.mxu1 %v1397_v40  ;;  %v796_v40 = vld [vmem:[#allocation2 + $0x1308] sm:$0xff] }
 0x55f   :  { %4144 = vmatpush1.bf16.msra.mxu0 %v2005_v41  ;;  %3328 = vmatprep.subr.bf16.mxu1 %v1400_v42  ;;  %v812_v41 = vld [vmem:[#allocation2 + $0x1388] sm:$0xff]  ;;  %v1419_v42 = vunpack.c.h.s8.bf16 %v489_v34  ;;  %v2030_v44 = vunpack.c.l.s8.bf16 %v796_v40 }
 0x560   :  { %4145 = vmatprep.subr.bf16.mxu0 %v2008_v43  ;;  %v2027_v43 = vunpack.c.h.s8.bf16 %v793_v35 }
 0x562   :  { %3329 = vmatpush1.bf16.msra.mxu1 %v1399_v46  ;;  %v2062_v46 = vunpack.c.l.s8.bf16 %v812_v41 }
 0x563   :  { %4146 = vmatpush1.bf16.msra.mxu0 %v2007_v47  ;;  %3330 = vmatprep.subr.bf16.mxu1 %v1402_v48  ;;  %v811_v47 = vld [vmem:[#allocation2 + $0x1380] sm:$0xff]  ;;  %v5478_v48 = vld [vmem:[%s6447_s5 + $0x90] ss:$316 sps:$4 sm:$0xff]  }
 0x564   :  { %4147 = vmatprep.subr.bf16.mxu0 %v2010_v49  ;;  %v5481_v49 = vld [vmem:[%s6447_s5 + $0x128] ss:$316 sps:$4 sm:$0xff]   ;;  %v2061_v51 = vunpack.c.l.s8.bf16 %v811_v47  ;;  %v2063_v57 = vunpack.c.h.s8.bf16 %v811_v47  ;;  %v4302_v47 = vld [vmem:[%s6432_s4 + $0x10] sm:$0xff] }
 0x566   :  { %3331 = vmatpush1.bf16.msra.mxu1 %v1401_v52  ;;  %v2032_v52 = vunpack.c.h.s8.bf16 %v796_v40  ;;  %v4300_v40 = vld [vmem:[%s6432_s4] sm:$0xff] }
 0x567   :  { %4148 = vmatpush1.bf16.msra.mxu0 %v2009_v53  ;;  %3332 = vmatprep.subr.bf16.mxu1 %v1404_v54  ;;  %v2064_v53 = vunpack.c.h.s8.bf16 %v812_v41  ;;  %v798_v54 = vld [vmem:[#allocation2 + $0x1318] sm:$0xff] }
 0x568   :  { %4149 = vmatprep.subr.bf16.mxu0 %v2012_v55  ;;  %v5486_v55 = vld [vmem:[%s6447_s5 + $0x134] ss:$316 sps:$4 sm:$0xff]   ;;  %v2036_v63 = vunpack.c.h.s8.bf16 %v798_v54 }
 0x56a   :  { %3333 = vmatpush1.bf16.msra.mxu1 %v1403_v58  ;;  %v2034_v58 = vunpack.c.l.s8.bf16 %v798_v54  ;;  %v4305_v54 = vld [vmem:[%s6432_s4 + $0x28] sm:$0xff] }
 0x56b   :  { %4150 = vmatpush1.bf16.msra.mxu0 %v2011_v59  ;;  %3334 = vmatprep.subr.bf16.mxu1 %v1406_v60  ;;  %v797_v59 = vld [vmem:[#allocation2 + $0x1310] sm:$0xff]  ;;  %v5781_v60 = vmov 0  }
 0x56c   :  { %4151 = vmatprep.subr.bf16.mxu0 %v2014_v61  ;;  %v5487_v61 = vld [vmem:[%s6447_s5 + $0x138] ss:$316 sps:$4 sm:$0xff]   ;;  %v2033_v62 = vunpack.c.l.s8.bf16 %v797_v59 }
 0x56e   :  { %3335 = vmatpush1.bf16.msra.mxu1 %v1405_v0  ;;  %v800_v0 = vld [vmem:[#allocation2 + $0x1328] sm:$0xff] }
 0x56f   :  { %4152 = vmatpush1.bf16.msra.mxu0 %v2013_v1  ;;  %3336 = vmatprep.subr.bf16.mxu1 %v1408_v2  ;;  %v2035_v1 = vunpack.c.h.s8.bf16 %v797_v59  ;;  %v2038_v2 = vunpack.c.l.s8.bf16 %v800_v0  ;;  %v2040_v5 = vunpack.c.h.s8.bf16 %v800_v0  ;;  %v4306_v59 = vld [vmem:[%s6432_s4 + $0x30] sm:$0xff] }
 0x570   :  { %4153 = vmatprep.subr.bf16.mxu0 %v2016_v3  ;;  %v799_v3 = vld [vmem:[#allocation2 + $0x1320] sm:$0xff] }
 0x571   :  { %v2037_v4 = vunpack.c.l.s8.bf16 %v799_v3 }
 0x572   :  { %3337 = vmatpush1.bf16.msra.mxu1 %v1407_v6  ;;  %v802_v6 = vld [vmem:[#allocation2 + $0x1338] sm:$0xff] }
 0x573   :  { %4154 = vmatpush1.bf16.msra.mxu0 %v2015_v7  ;;  %3338 = vmatprep.subr.bf16.mxu1 %v1410_v8  ;;  %v2039_v7 = vunpack.c.h.s8.bf16 %v799_v3  ;;  %v2042_v8 = vunpack.c.l.s8.bf16 %v802_v6  ;;  %v2044_v11 = vunpack.c.h.s8.bf16 %v802_v6 }
 0x574   :  { %4155 = vmatprep.subr.bf16.mxu0 %v2018_v9  ;;  %v801_v9 = vld [vmem:[#allocation2 + $0x1330] sm:$0xff] }
 0x575   :  { %v2041_v10 = vunpack.c.l.s8.bf16 %v801_v9 }
 0x576   :  { %3339 = vmatpush1.bf16.msra.mxu1 %v1409_v12  ;;  %v804_v12 = vld [vmem:[#allocation2 + $0x1348] sm:$0xff] }
 0x577   :  { %4156 = vmatpush1.bf16.msra.mxu0 %v2017_v13  ;;  %3340 = vmatprep.subr.bf16.mxu1 %v1412_v14  ;;  %v2043_v13 = vunpack.c.h.s8.bf16 %v801_v9  ;;  %v2046_v14 = vunpack.c.l.s8.bf16 %v804_v12  ;;  %v2048_v17 = vunpack.c.h.s8.bf16 %v804_v12 }
 0x578   :  { %4157 = vmatprep.subr.bf16.mxu0 %v2020_v15  ;;  %v803_v15 = vld [vmem:[#allocation2 + $0x1340] sm:$0xff] }
 0x579   :  { %v2045_v16 = vunpack.c.l.s8.bf16 %v803_v15 }
 0x57a   :  { %3341 = vmatpush1.bf16.msra.mxu1 %v1411_v18  ;;  %v806_v18 = vld [vmem:[#allocation2 + $0x1358] sm:$0xff] }
 0x57b   :  { %4158 = vmatpush1.bf16.msra.mxu0 %v2019_v19  ;;  %3342 = vmatprep.subr.bf16.mxu1 %v1414_v20  ;;  %v2047_v19 = vunpack.c.h.s8.bf16 %v803_v15  ;;  %v2050_v20 = vunpack.c.l.s8.bf16 %v806_v18  ;;  %v2052_v23 = vunpack.c.h.s8.bf16 %v806_v18 }
 0x57c   :  { %4159 = vmatprep.subr.bf16.mxu0 %v2022_v21  ;;  %v805_v21 = vld [vmem:[#allocation2 + $0x1350] sm:$0xff] }
 0x57d   :  { %v2049_v22 = vunpack.c.l.s8.bf16 %v805_v21 }
 0x57e   :  { %3343 = vmatpush1.bf16.msra.mxu1 %v1413_v24  ;;  %v808_v24 = vld [vmem:[#allocation2 + $0x1368] sm:$0xff] }
 0x57f   :  { %4160 = vmatpush1.bf16.msra.mxu0 %v2021_v25  ;;  %3344 = vmatprep.subr.bf16.mxu1 %v1416_v26  ;;  %v2051_v25 = vunpack.c.h.s8.bf16 %v805_v21  ;;  %v2054_v26 = vunpack.c.l.s8.bf16 %v808_v24  ;;  %v2056_v29 = vunpack.c.h.s8.bf16 %v808_v24 }
 0x580   :  { %4161 = vmatprep.subr.bf16.mxu0 %v2024_v27  ;;  %v807_v27 = vld [vmem:[#allocation2 + $0x1360] sm:$0xff] }
 0x581   :  { %v2053_v28 = vunpack.c.l.s8.bf16 %v807_v27 }
 0x582   :  { %3345 = vmatpush1.bf16.msra.mxu1 %v1415_v30  ;;  %v810_v30 = vld [vmem:[#allocation2 + $0x1378] sm:$0xff] }
 0x583   :  { %4162 = vmatpush1.bf16.msra.mxu0 %v2023_v31  ;;  %3346 = vmatprep.subr.bf16.mxu1 %v1418_v32  ;;  %v2055_v31 = vunpack.c.h.s8.bf16 %v807_v27  ;;  %v2058_v32 = vunpack.c.l.s8.bf16 %v810_v30  ;;  %v2060_v35 = vunpack.c.h.s8.bf16 %v810_v30  ;;  %v4266_v30 = vlaneseq }
 0x584   :  { %4163 = vmatprep.subr.bf16.mxu0 %v2026_v33  ;;  %v809_v33 = vld [vmem:[#allocation2 + $0x1370] sm:$0xff] }
 0x585   :  { %v2057_v34 = vunpack.c.l.s8.bf16 %v809_v33 }
 0x586   :  { %3347 = vmatpush1.bf16.msra.mxu1 %v1417_v36  ;;  %v2059_v36 = vunpack.c.h.s8.bf16 %v809_v33  ;;  %v4264_v33 = vld [vmem:[#allocation4] sm:$0x3] }
 0x587   :  { %4164 = vmatpush1.bf16.msra.mxu0 %v2025_v37  ;;  %3348 = vmatprep.subr.bf16.mxu1 %v1420_v38  ;;  %v5484_v37 = vld [vmem:[%s6447_s5 + $0x130] ss:$316 sps:$4 sm:$0xff]   ;;  %v4316_v38 = vld [vmem:[%s6432_s4 + $0x80] sm:$0xff] }
 0x588   :  { %4165 = vmatprep.subr.bf16.mxu0 %v2028_v39  ;;  %v4317_v39 = vld [vmem:[%s6432_s4 + $0x88] sm:$0xff] }
 0x589   :  { %v5148_v41 = vpack.c.bf16 %v4317_v39, %v4316_v38 }
 0x58a   :  { %3349 = vmatpush1.bf16.msra.mxu1 %v1419_v42  ;;  %v4301_v42 = vld [vmem:[%s6432_s4 + $0x8] sm:$0xff] }
 0x58b   :  { %4166 = vmatpush1.bf16.msra.mxu0 %v2027_v43  ;;  %4221 = vmatprep.subr.bf16.mxu1 %v2062_v46  ;;  %v4318_v43 = vld [vmem:[%s6432_s4 + $0x90] sm:$0xff]  ;;  %v5150_v45 = vpack.c.bf16 %v4301_v42, %v4300_v40 }
 0x58c   :  { %4178 = vmatprep.subr.bf16.mxu0 %v2030_v44  ;;  %v4319_v44 = vld [vmem:[%s6432_s4 + $0x98] sm:$0xff] }
 0x58d   :  { %3351 = vmatmul.mubr.bf16.vlgmr.msra.gmra.mrb[0].mxu1 %v5478_v48  ;;  %v5152_v46 = vpack.c.bf16 %v4319_v44, %v4318_v43  ;;  %v4303_v48 = vld [vmem:[%s6432_s4 + $0x18] sm:$0xff] }
 0x58e   :  { %4168 = vmatmul.mubr.bf16.vlgmr.msra.gmra.mrb[0].mxu0 %v5481_v49  ;;  %4222 = vmatpush1.bf16.msra.mxu1 %v2061_v51  ;;  %v4320_v49 = vld [vmem:[%s6432_s4 + $0xa0] sm:$0xff]  ;;  %v5154_v51 = vpack.c.bf16 %v4303_v48, %v4302_v47 }
 0x58f   :  { %4179 = vmatpush1.bf16.msra.mxu0 %v2029_v50  ;;  %4223 = vmatprep.subr.bf16.mxu1 %v2064_v53  ;;  %v4321_v50 = vld [vmem:[%s6432_s4 + $0xa8] sm:$0xff]  ;;  %v4304_v53 = vld [vmem:[%s6432_s4 + $0x20] sm:$0xff] }
 0x590   :  { %4180 = vmatprep.subr.bf16.mxu0 %v2032_v52  ;;  %4253 = vmatprep.mubr.bf16.mxu1 %v5781_v60  ;;  %v5156_v52 = vpack.c.bf16 %v4321_v50, %v4320_v49  ;;  %v4307_v60 = vld [vmem:[%s6432_s4 + $0x38] sm:$0xff] }
 0x591   :  { %4210 = vmatprep.mubr.bf16.mxu0 %v5486_v55  ;;  %v4322_v55 = vld [vmem:[%s6432_s4 + $0xb0] sm:$0xff] }
 0x592   :  { %4224 = vmatpush1.bf16.msra.mxu1 %v2063_v57  ;;  %v5158_v57 = vpack.c.bf16 %v4305_v54, %v4304_v53 }
 0x593   :  { %4181 = vmatpush1.bf16.msra.mxu0 %v2031_v56  ;;  %5149 = vmatprep.subr.bf16.mxu1 %v5148_v41  ;;  %v4323_v56 = vld [vmem:[%s6432_s4 + $0xb8] sm:$0xff] }
 0x594   :  { %4182 = vmatprep.subr.bf16.mxu0 %v2034_v58  ;;  %v5160_v58 = vpack.c.bf16 %v4323_v56, %v4322_v55 }
 0x595   :  { %5049 = vmatmul.mubr.msk.bf16.vlgmr.msra.gmra.mrb[4].mxu1 %vm2540_vm0, %v5487_v61  ;;  %v4324_v61 = vld [vmem:[%s6432_s4 + $0xc0] sm:$0xff] }
 0x596   :  { %5151 = vmatpush3.bf16.msra.mxu1 %v5150_v45 }
 0x597   :  { %4183 = vmatpush1.bf16.msra.mxu0 %v2033_v62  ;;  %5153 = vmatprep.subr.bf16.mxu1 %v5152_v46  ;;  %v4325_v62 = vld [vmem:[%s6432_s4 + $0xc8] sm:$0xff] }
 0x598   :  { %4184 = vmatprep.subr.bf16.mxu0 %v2036_v63  ;;  %v5162_v63 = vpack.c.bf16 %v4307_v60, %v4306_v59  ;;  %v5164_v0 = vpack.c.bf16 %v4325_v62, %v4324_v61 }
 0x59a   :  { %5155 = vmatpush3.bf16.msra.mxu1 %v5154_v51 }
 0x59b   :  { %4185 = vmatpush1.bf16.msra.mxu0 %v2035_v1  ;;  %5157 = vmatprep.subr.bf16.mxu1 %v5156_v52  ;;  %v4308_v1 = vld [vmem:[%s6432_s4 + $0x40] sm:$0xff] }
 0x59c   :  { %4186 = vmatprep.subr.bf16.mxu0 %v2038_v2  ;;  %v4309_v2 = vld [vmem:[%s6432_s4 + $0x48] sm:$0xff] }
 0x59d   :  { %v5166_v3 = vpack.c.bf16 %v4309_v2, %v4308_v1  ;;  %v5052_v1 = vld [vmem:[%s6435_s7 + $0x1] ss:$0 sm:$0xff] }
 0x59e   :  { %5159 = vmatpush3.bf16.msra.mxu1 %v5158_v57 }
 0x59f   :  { %4187 = vmatpush1.bf16.msra.mxu0 %v2037_v4  ;;  %5161 = vmatprep.subr.bf16.mxu1 %v5160_v58  ;;  %v4326_v4 = vld [vmem:[%s6432_s4 + $0xd0] sm:$0xff] }
 0x5a0   :  { %4188 = vmatprep.subr.bf16.mxu0 %v2040_v5  ;;  %v4327_v5 = vld [vmem:[%s6432_s4 + $0xd8] sm:$0xff] }
 0x5a1   :  { %v5168_v6 = vpack.c.bf16 %v4327_v5, %v4326_v4  ;;  %v4422_v4 = vld [vmem:[%s6434_s6 + $0x8] sm:$0xff] }
 0x5a2   :  { %5163 = vmatpush3.bf16.msra.mxu1 %v5162_v63  ;;  %v4429_v5 = vadd.f32 %v5052_v1, %v4422_v4 }
 0x5a3   :  { %4189 = vmatpush1.bf16.msra.mxu0 %v2039_v7  ;;  %5165 = vmatprep.subr.bf16.mxu1 %v5164_v0  ;;  %v4310_v7 = vld [vmem:[%s6432_s4 + $0x50] sm:$0xff]  ;;  %v4421_v0 = vld [vmem:[%s6434_s6] sm:$0xff]  ;;  %s5782_s6 = smov 112  }
 0x5a4   :  { %4190 = vmatprep.subr.bf16.mxu0 %v2042_v8  ;;  %v4311_v8 = vld [vmem:[%s6432_s4 + $0x58] sm:$0xff]  ;;  %v4428_v2 = vadd.f32 %v5052_v1, %v4421_v0 }
 0x5a5   :  { %v5170_v9 = vpack.c.bf16 %v4311_v8, %v4310_v7  ;;  %v5050_v8 = vld [vmem:[#allocation7] ss:$0 sm:$0xff] }
 0x5a6   :  { %5167 = vmatpush3.bf16.msra.mxu1 %v5166_v3  ;;  %v4476_v3 = vsel %vm4432_vm1, %v4428_v2, 0.0 }
 0x5a7   :  { %4191 = vmatpush1.bf16.msra.mxu0 %v2041_v10  ;;  %5169 = vmatprep.subr.bf16.mxu1 %v5168_v6  ;;  %v4328_v10 = vld [vmem:[%s6432_s4 + $0xe0] sm:$0xff]  ;;  %v4479_v6 = vsel %vm4432_vm1, %v4429_v5, 0.0 }
 0x5a8   :  { %4192 = vmatprep.subr.bf16.mxu0 %v2044_v11  ;;  %v4329_v11 = vld [vmem:[%s6432_s4 + $0xe8] sm:$0xff]  ;;  %4477 = vadd.xlane.f32.xlu1 %v4476_v3 }
 0x5a9   :  { %v5172_v12 = vpack.c.bf16 %v4329_v11, %v4328_v10  ;;  %v5051_v11 = vld [vmem:[%s6435_s7] ss:$0 sm:$0xff]  ;;  %s5783_s7 = smov 96  }
 0x5aa   :  { %5171 = vmatpush3.bf16.msra.mxu1 %v5170_v9 }
 0x5ab   :  { %4193 = vmatpush1.bf16.msra.mxu0 %v2043_v13  ;;  %v4312_v13 = vld [vmem:[%s6432_s4 + $0x60] sm:$0xff]  ;;  %5173 = vmatprep.subr.bf16.mxu1 %v5172_v12 }
 0x5ac   :  { %4194 = vmatprep.subr.bf16.mxu0 %v2046_v14  ;;  %v4313_v14 = vld [vmem:[%s6432_s4 + $0x68] sm:$0xff]  ;;  %4480 = vadd.xlane.f32.xlu1 %v4479_v6 }
 0x5ad   :  { %v5174_v15 = vpack.c.bf16 %v4313_v14, %v4312_v13 }
 0x5af   :  { %4195 = vmatpush1.bf16.msra.mxu0 %v2045_v16  ;;  %5175 = vmatpush3.bf16.msra.mxu1 %v5174_v15  ;;  %v4330_v16 = vld [vmem:[%s6432_s4 + $0xf0] sm:$0xff] }
 0x5b0   :  { %4196 = vmatprep.subr.bf16.mxu0 %v2048_v17  ;;  %v4331_v17 = vld [vmem:[%s6432_s4 + $0xf8] sm:$0xff] }
 0x5b1   :  { %v5176_v18 = vpack.c.bf16 %v4331_v17, %v4330_v16 }
 0x5b3   :  { %4197 = vmatpush1.bf16.msra.mxu0 %v2047_v19  ;;  %v4314_v19 = vld [vmem:[%s6432_s4 + $0x70] sm:$0xff]  ;;  %5177 = vmatprep.subr.bf16.mxu1 %v5176_v18 }
 0x5b4   :  { %4198 = vmatprep.subr.bf16.mxu0 %v2050_v20  ;;  %v4315_v20 = vld [vmem:[%s6432_s4 + $0x78] sm:$0xff] }
 0x5b5   :  { %v5178_v21 = vpack.c.bf16 %v4315_v20, %v4314_v19 }
 0x5b7   :  { %4199 = vmatpush1.bf16.msra.mxu0 %v2049_v22  ;;  %5179 = vmatpush3.bf16.msra.mxu1 %v5178_v21 }
 0x5b8   :  { %4200 = vmatprep.subr.bf16.mxu0 %v2052_v23 }
 0x5bb   :  { %4201 = vmatpush1.bf16.msra.mxu0 %v2051_v25 }
 0x5bc   :  { %4202 = vmatprep.subr.bf16.mxu0 %v2054_v26 }
 0x5bf   :  { %4203 = vmatpush1.bf16.msra.mxu0 %v2053_v28 }
 0x5c0   :  { %4204 = vmatprep.subr.bf16.mxu0 %v2056_v29 }
 0x5c3   :  { %4205 = vmatpush1.bf16.msra.mxu0 %v2055_v31  ;;  %v4267_v31 = vshrl.u32 %v4266_v30, 7 }
 0x5c4   :  { %4206 = vmatprep.subr.bf16.mxu0 %v2058_v32 }
 0x5c5   :  { %v4268_v32 = vsub.s32 0, %v4267_v31 }
 0x5c7   :  { %4207 = vmatpush1.bf16.msra.mxu0 %v2057_v34  ;;  %v4272_v34 = vsub.s32 1, %v4267_v31  ;;  %v4269_v38 = vrot.slane %v4264_v33, %v4268_v32 }
 0x5c8   :  { %4208 = vmatprep.subr.bf16.mxu0 %v2060_v35 }
 0x5c9   :  { %v4273_v41 = vrot.slane %v4264_v33, %v4272_v34 }
 0x5cb   :  { %4209 = vmatpush1.bf16.msra.mxu0 %v2059_v36  ;;  %v4280_v36 = vld [vmem:[#allocation6] sm:$0x3] }
 0x5cc   :  { %v4285_v44 = vrot.slane %v4280_v36, %v4268_v32  ;;  %v4289_v49 = vrot.slane %v4280_v36, %v4272_v34 }
 0x5ce   :  { %4211 = vmatmul.mubr.bf16.vlgmr.msra.gmra.mrb[0].mxu0 %v5484_v37 }
 0x635   :  { %v4478_v21 = vpop.xlane.xlu1 %4477 }
 0x660   :  { %v3352_v22 = vpop.f32.mrb[0].mxu1 }
 0x661   :  { %v3354_v23 = vpop.f32.mrb[1].mxu1 }
 0x662   :  { %v3356_v24 = vpop.f32.mrb[2].mxu1 }
 0x663   :  { %v3358_v25 = vpop.f32.mrb[3].mxu1 }
 0x668   :  { %v4255_v26 = vpop.f32.mrb[4].mxu1 }
 0x669   :  { %v4257_v27 = vpop.f32.mrb[5].mxu1 }
 0x66a   :  { %v4259_v28 = vpop.f32.mrb[6].mxu1 }
 0x66b   :  { %v4261_v29 = vpop.f32.mrb[7].mxu1 }
 0x6a1   :  { %v4212_v35 = vpop.f32.mrb[0].mxu0 }
 0x6a2   :  { %v5196_v37 = vadd.f32 %v4212_v35, %v3352_v22  ;;  %v4214_v39 = vpop.f32.mrb[1].mxu0  ;;  %v4482_v22 = vmul.f32 0.0625, %v4478_v21 }
 0x6a3   :  { %v5198_v40 = vadd.f32 %v4214_v39, %v3354_v23  ;;  %v4216_v42 = vpop.f32.mrb[2].mxu0  ;;  %v4481_v23 = vpop.xlane.xlu1 %4480 }
 0x6a4   :  { %v5197_v43 = vadd.f32 %v5196_v37, %v4255_v26  ;;  %v5200_v45 = vadd.f32 %v4216_v42, %v3356_v24  ;;  %v4218_v46 = vpop.f32.mrb[3].mxu0  ;;  %v4484_v26 = vsub.f32 %v4428_v2, %v4482_v22  ;;  %v4507_v42 = vld [vmem:[#allocation9 + $0x8] sm:$0xff] }
 0x6a5   :  { %v5199_v47 = vadd.f32 %v5198_v40, %v4257_v27  ;;  %v5202_v48 = vadd.f32 %v4218_v46, %v3358_v25  ;;  %v4483_v27 = vmul.f32 0.0625, %v4481_v23 }
 0x6a6   :  { %v4276_v50 = vmul.f32 %v5197_v43, %v4269_v38  ;;  %v5201_v51 = vadd.f32 %v5200_v45, %v4259_v28  ;;  %v4486_v33 = vmul.f32 %v4484_v26, %v4484_v26 }
 0x6a7   :  { %v4277_v52 = vmul.f32 %v5199_v47, %v4273_v41  ;;  %v5203_v53 = vadd.f32 %v5202_v48, %v4261_v29  ;;  %v4485_v31 = vsub.f32 %v4429_v5, %v4483_v27  ;;  %v4735_v27 = vld [vmem:[#allocation10 + $0x8] sm:$0xff] }
 0x6a8   :  { %v4292_v54 = vadd.f32 %v4285_v44, %v4276_v50  ;;  %v4278_v55 = vmul.f32 %v5201_v51, %v4269_v38  ;;  %v4488_v36 = vsel %vm4432_vm1, %v4486_v33, 0.0 }
 0x6a9   :  { %v4279_v56 = vmul.f32 %v5203_v53, %v4273_v41  ;;  %v4293_v57 = vadd.f32 %v4289_v49, %v4277_v52  ;;  %v4487_v38 = vmul.f32 %v4485_v31, %v4485_v31  ;;  %v4506_v41 = vld [vmem:[#allocation9] sm:$0xff] }
 0x6aa   :  { %v4296_v60 = vmax.f32 %v4292_v54, 0.0  ;;  %v4294_v61 = vadd.f32 %v4285_v44, %v4278_v55  ;;  %v5180_v43 = vpack.c.bf16 %v4507_v42, %v4506_v41 }
 0x6ab   :  { %v4297_v58 = vmax.f32 %v4293_v57, 0.0  ;;  %v4295_v59 = vadd.f32 %v4289_v49, %v4279_v56  ;;  %v4491_v40 = vsel %vm4432_vm1, %v4487_v38, 0.0  ;;  %v5053_v57 = vld [vmem:[#allocation12] ss:$0 sm:$0xff] }
 0x6ac   :  { %v4298_v63 = vmax.f32 %v4294_v61, 0.0  ;;  %5181 = vmatprep.subr.bf16.mxu1 %v5180_v43 }
 0x6ad   :  { %4403 = vmatprep.mubr.f32.mxu1 %v4297_v58  ;;  %v4299_v62 = vmax.f32 %v4295_v59, 0.0  ;;  %v5054_v59 = vld [vmem:[#allocation13] ss:$0 sm:$0xff] }
 0x6ae   :  { %4404 = vmatmul.mubr.f32.vlgmr.msra.gmra.mrb[8].mxu1 %v4296_v60 }
 0x6af   :  { %4408 = vmatprep.mubr.f32.mxu1 %v4299_v62  ;;  %5183 = vmatpush3.bf16.msra.mxu1 %v5180_v43 }
 0x6b0   :  { %5185 = vmatprep.subr.bf16.mxu1 %v5180_v43 }
 0x6b2   :  { %4409 = vmatmul.mubr.f32.gmra.mrb[10].mxu1 %v4298_v63 }
 0x781   :  { %v5098_v7 = vpop.f32.mrb[8].mxu1 }
 0x782   :  { %v5099_v9 = vpop.f32.mrb[9].mxu1 }
 0x783   :  { %v5100_v10 = vadd.f32 %v5099_v9, %v5098_v7 }
 0x785   :  { %v4406_v12 = vadd.f32 %v5100_v10, %v5050_v8  ;;  %v5101_v13 = vpop.f32.mrb[10].mxu1 }
 0x786   :  { %v5102_v14 = vpop.f32.mrb[11].mxu1 }
 0x787   :  { %v5103_v15 = vadd.f32 %v5102_v14, %v5101_v13  ;;  %v4419_v16 = vadd.f32 %v5051_v11, %v4406_v12 }
 0x789   :  { %v4411_v17 = vadd.f32 %v5103_v15, %v5050_v8  ;;  %v4433_v18 = vsel %vm4432_vm1, %v4419_v16, 0.0 }
 0x78a   :  { %4434 = vadd.xlane.f32.xlu0 %v4433_v18 }
 0x78b   :  { %v4420_v19 = vadd.f32 %v5051_v11, %v4411_v17 }
 0x78d   :  { %v4436_v20 = vsel %vm4432_vm1, %v4420_v19, 0.0 }
 0x78e   :  { %4437 = vadd.xlane.f32.xlu0 %v4436_v20 }
 0x817   :  { %v4435_v24 = vpop.xlane.xlu0 %4434 }
 0x818   :  { %v4440_v25 = vmul.f32 0.0625, %v4435_v24 }
 0x81a   :  { %v4442_v28 = vsub.f32 %v4419_v16, %v4440_v25 }
 0x81b   :  { %v4438_v29 = vpop.xlane.xlu0 %4437 }
 0x81c   :  { %v4441_v30 = vmul.f32 0.0625, %v4438_v29  ;;  %v4444_v32 = vmul.f32 %v4442_v28, %v4442_v28 }
 0x81e   :  { %v4443_v34 = vsub.f32 %v4420_v19, %v4441_v30  ;;  %v4446_v35 = vsel %vm4432_vm1, %v4444_v32, 0.0 }
 0x81f   :  { %4447 = vadd.xlane.f32.xlu0 %v4446_v35 }
 0x820   :  { %v4445_v37 = vmul.f32 %v4443_v34, %v4443_v34 }
 0x822   :  { %v4449_v39 = vsel %vm4432_vm1, %v4445_v37, 0.0 }
 0x823   :  { %4489 = vadd.xlane.f32.xlu0 %v4488_v36  ;;  %4450 = vadd.xlane.f32.xlu1 %v4449_v39 }
 0x827   :  { %4492 = vadd.xlane.f32.xlu1 %v4491_v40 }
 0x8ac   :  { %v4448_v44 = vpop.xlane.xlu0 %4447 }
 0x8ad   :  { %v4452_v45 = vmul.f32 0.0625, %v4448_v44 }
 0x8af   :  { %v4454_v46 = vadd.f32 1e-05, %v4452_v45 }
 0x8b0   :  { %v4451_v47 = vpop.xlane.xlu1 %4450  ;;  %v4490_v48 = vpop.xlane.xlu0 %4489 }
 0x8b1   :  { %5488 = vrsqrt.f32 %v4454_v46  ;;  %v4453_v49 = vmul.f32 0.0625, %v4451_v47  ;;  %v4494_v50 = vmul.f32 0.0625, %v4490_v48 }
 0x8b3   :  { %v4455_v51 = vadd.f32 1e-05, %v4453_v49  ;;  %v4496_v52 = vadd.f32 1e-05, %v4494_v50 }
 0x8b4   :  { %v4493_v53 = vpop.xlane.xlu1 %4492 }
 0x8b5   :  { %5490 = vrsqrt.f32 %v4455_v51  ;;  %v4495_v54 = vmul.f32 0.0625, %v4493_v53 }
 0x8b6   :  { %5492 = vrsqrt.f32 %v4496_v52 }
 0x8b7   :  { %v4497_v55 = vadd.f32 1e-05, %v4495_v54 }
 0x8b9   :  { %5494 = vrsqrt.f32 %v4497_v55 }
 0x8bb   :  { %v5489_v56 = vpop.eup %5488 }
 0x8bc   :  { %v4458_v58 = vmul.f32 %v5489_v56, %v4442_v28 }
 0x8be   :  { %v4466_v60 = vmul.f32 %v5053_v57, %v4458_v58 }
 0x8bf   :  { %v5491_v61 = vpop.eup %5490 }
 0x8c0   :  { %v5493_v62 = vpop.eup %5492  ;;  %v4459_v63 = vmul.f32 %v5491_v61, %v4443_v34  ;;  %v6382_v0 = vadd.f32 %v5054_v59, %v4466_v60 }
 0x8c1   :  { %v4500_v1 = vmul.f32 %v5493_v62, %v4484_v26  ;;  %v4734_v26 = vld [vmem:[#allocation10] sm:$0xff] }
 0x8c2   :  { %v4467_v2 = vmul.f32 %v5053_v57, %v4459_v63  ;;  %5124 = vmatprep.mubr.msk.f32.mxu1 %vm4432_vm1, %v6382_v0  ;;  %v5188_v28 = vpack.c.bf16 %v4735_v27, %v4734_v26 }
 0x8c3   :  { %v5495_v3 = vpop.eup %5494  ;;  %v4502_v4 = vmul.f32 %v5053_v57, %v4500_v1 }
 0x8c4   :  { %v4501_v5 = vmul.f32 %v5495_v3, %v4485_v31  ;;  %v6386_v6 = vadd.f32 %v5054_v59, %v4467_v2 }
 0x8c5   :  { %v4504_v7 = vadd.f32 %v5054_v59, %v4502_v4 }
 0x8c6   :  { %5125 = vmatmul.mubr.msk.f32.vlgmr.msra.gmra.mrb[12].mxu1 %vm4432_vm1, %v6386_v6  ;;  %v4503_v8 = vmul.f32 %v5053_v57, %v4501_v5 }
 0x8c7   :  { %5187 = vmatpush3.bf16.msra.mxu1 %v5180_v43  ;;  %5131 = vmatprep.mubr.msk.f32.mxu1 %vm4432_vm1, %v4504_v7 }
 0x8c8   :  { %v4505_v9 = vadd.f32 %v5054_v59, %v4503_v8  ;;  %5189 = vmatprep.subr.bf16.mxu1 %v5188_v28 }
 0x8ca   :  { %5132 = vmatmul.mubr.msk.f32.vlgmr.msra.gmra.mrb[14].mxu1 %vm4432_vm1, %v4505_v9 }
 0x8cb   :  { %5191 = vmatpush3.bf16.msra.mxu1 %v5188_v28 }
 0x999   :  { %v6392_v10 = vpop.f32.mrb[12].mxu1 }
 0x99a   :  { %4674 = vrot.lane.b32.xlu1 %v6392_v10, %s5782_s6  ;;  %v4580_v11 = vpop.f32.mrb[13].mxu1 }
 0x99b   :  { %4672 = vrot.lane.b32.xlu0 %v4580_v11, %s5782_s6 }
 0x99d   :  { %v6395_v12 = vpop.f32.mrb[14].mxu1 }
 0x99e   :  { %v4661_v13 = vpop.f32.mrb[15].mxu1 }
 0x99f   :  { %4690 = vrot.lane.b32.xlu1 %v4661_v13, %s5782_s6 }
 0x9a3   :  { %4692 = vrot.lane.b32.xlu1 %v6395_v12, %s5782_s6 }
 0xa0c   :  { %v4675_v14 = vpop.permute.xlu1 %4674 }
 0xa0d   :  { %v4673_v15 = vpop.permute.xlu0 %4672  ;;  %v4679_v17 = vmul.f32 %v6392_v10, %v4675_v14 }
 0xa0e   :  { %v4678_v16 = vmul.f32 %v4673_v15, %v4580_v11 }
 0xa0f   :  { %v4683_v22 = vsel %vm4432_vm1, %v4679_v17, 0.0 }
 0xa10   :  { %v4680_v18 = vsel %vm4432_vm1, %v4678_v16, 0.0 }
 0xa11   :  { %v4691_v19 = vpop.permute.xlu1 %4690  ;;  %4681 = vadd.xlane.f32.xlu0 %v4680_v18 }
 0xa12   :  { %v4696_v20 = vmul.f32 %v4691_v19, %v4580_v11 }
 0xa14   :  { %v4698_v21 = vsel %vm4432_vm1, %v4696_v20, 0.0  ;;  %v4868_v20 = vld [vmem:[%s6442_s14 + $0x8] sm:$0xff] }
 0xa15   :  { %4699 = vadd.xlane.f32.xlu1 %v4698_v21  ;;  %v4693_v23 = vpop.permute.xlu1 %4692  ;;  %4684 = vadd.xlane.f32.xlu0 %v4683_v22 }
 0xa16   :  { %v4697_v24 = vmul.f32 %v6392_v10, %v4693_v23 }
 0xa18   :  { %v4701_v25 = vsel %vm4432_vm1, %v4697_v24, 0.0 }
 0xa19   :  { %4702 = vadd.xlane.f32.xlu0 %v4701_v25 }
 0xa9e   :  { %v4682_v29 = vpop.xlane.xlu0 %4681 }
 0xa9f   :  { %v4686_v32 = vmul.f32 0.25, %v4682_v29  ;;  %v5061_v29 = vld [vmem:[#allocation15] ss:$0 sm:$0xff] }
 0xaa2   :  { %v4700_v30 = vpop.xlane.xlu1 %4699  ;;  %v4685_v31 = vpop.xlane.xlu0 %4684 }
 0xaa3   :  { %v4704_v33 = vmul.f32 0.25, %v4700_v30  ;;  %v4687_v38 = vmul.f32 0.25, %v4685_v31 }
 0xaa5   :  { %v4706_v34 = vmax.f32 %v4686_v32, %v4704_v33 }
 0xaa6   :  { %v4703_v35 = vpop.xlane.xlu0 %4702 }
 0xaa7   :  { %v4708_v36 = vsub.f32 %v4686_v32, %v4706_v34  ;;  %v4714_v37 = vsub.f32 %v4704_v33, %v4706_v34  ;;  %v4705_v39 = vmul.f32 0.25, %v4703_v35  ;;  %v5062_v33 = vld [vmem:[#allocation16] ss:$0 sm:$0xff] }
 0xaa9   :  { %v4710_v40 = vmul.f32 1.442695, %v4708_v36  ;;  %v4716_v41 = vmul.f32 1.442695, %v4714_v37  ;;  %v4707_v42 = vmax.f32 %v4687_v38, %v4705_v39 }
 0xaab   :  { %5496 = vpow2.f32 %v4710_v40  ;;  %v4709_v43 = vsub.f32 %v4687_v38, %v4707_v42  ;;  %v4715_v44 = vsub.f32 %v4705_v39, %v4707_v42  ;;  %v5063_v38 = vld [vmem:[#allocation18] ss:$0 sm:$0xff] }
 0xaac   :  { %5498 = vpow2.f32 %v4716_v41 }
 0xaad   :  { %v4712_v45 = vmul.f32 1.442695, %v4709_v43  ;;  %v4718_v46 = vmul.f32 1.442695, %v4715_v44 }
 0xaaf   :  { %5500 = vpow2.f32 %v4712_v45 }
 0xab0   :  { %5502 = vpow2.f32 %v4718_v46 }
 0xab5   :  { %v5497_v47 = vpop.eup %5496 }
 0xab6   :  { %v5499_v48 = vpop.eup %5498 }
 0xab7   :  { %v4720_v49 = vadd.f32 %v5499_v48, %v5497_v47 }
 0xab9   :  { %v5501_v50 = vpop.eup %5500  ;;  %5504 = vrcp.f32 %v4720_v49 }
 0xaba   :  { %v5503_v51 = vpop.eup %5502 }
 0xabb   :  { %v4721_v52 = vadd.f32 %v5503_v51, %v5501_v50 }
 0xabd   :  { %5506 = vrcp.f32 %v4721_v52 }
 0xac3   :  { %v5505_v53 = vpop.eup %5504 }
 0xac4   :  { %v4723_v54 = vmul.f32 %v5505_v53, %v5497_v47  ;;  %v4728_v55 = vmul.f32 %v5505_v53, %v5499_v48 }
 0xac6   :  { %v4726_v56 = vmul.f32 %v4723_v54, %v4580_v11  ;;  %v4730_v57 = vmul.f32 %v4728_v55, %v4661_v13 }
 0xac7   :  { %v5507_v58 = vpop.eup %5506 }
 0xac8   :  { %v4732_v59 = vadd.f32 %v4730_v57, %v4726_v56  ;;  %v4725_v60 = vmul.f32 %v5507_v58, %v5501_v50  ;;  %v4729_v61 = vmul.f32 %v5507_v58, %v5503_v51 }
 0xaca   :  { %4738 = vrot.lane.b32.xlu0 %v4732_v59, %s5783_s7  ;;  %v4727_v62 = vmul.f32 %v6392_v10, %v4725_v60  ;;  %v4731_v63 = vmul.f32 %v6395_v12, %v4729_v61 }
 0xacc   :  { %v4733_v1 = vadd.f32 %v4731_v63, %v4727_v62 }
 0xace   :  { %4740 = vrot.lane.b32.xlu1 %v4733_v1, %s5783_s7 }
 0xb3c   :  { %v4739_v2 = vpop.permute.xlu0 %4738 }
 0xb3d   :  { %5138 = vmatprep.mubr.msk.f32.mxu1 %vm4432_vm1, %v4739_v2 }
 0xb40   :  { %v4741_v3 = vpop.permute.xlu1 %4740 }
 0xb41   :  { %5139 = vmatmul.mubr.msk.f32.vlgmr.msra.gmra.mrb[16].mxu1 %vm4432_vm1, %v4741_v3 }
 0xc14   :  { %v5140_v4 = vpop.f32.mrb[16].mxu1 }
 0xc15   :  { %v4822_v5 = vadd.f32 %v5140_v4, %v6386_v6  ;;  %v4812_v7 = vpop.f32.mrb[17].mxu1 }
 0xc16   :  { %v4821_v8 = vadd.f32 %v4812_v7, %v6382_v0  ;;  %v4867_v0 = vld [vmem:[%s6442_s14] sm:$0xff] }
 0xc17   :  { %v4828_v9 = vsel %vm4432_vm1, %v4822_v5, 0.0  ;;  %v5192_v21 = vpack.c.bf16 %v4868_v20, %v4867_v0 }
 0xc18   :  { %4829 = vadd.xlane.f32.xlu0 %v4828_v9  ;;  %v4825_v10 = vsel %vm4432_vm1, %v4821_v8, 0.0 }
 0xc19   :  { %4826 = vadd.xlane.f32.xlu1 %v4825_v10  ;;  %5193 = vmatprep.subr.bf16.mxu1 %v5192_v21 }
 0xc1a   :  { %5195 = vmatpush3.bf16.msra.mxu1 %v5192_v21 }
 0xca5   :  { %v4830_v11 = vpop.xlane.xlu0 %4829 }
 0xca6   :  { %v4832_v12 = vmul.f32 0.0625, %v4830_v11  ;;  %v4827_v13 = vpop.xlane.xlu1 %4826 }
 0xca7   :  { %v4831_v14 = vmul.f32 0.0625, %v4827_v13 }
 0xca8   :  { %v4834_v15 = vsub.f32 %v4822_v5, %v4832_v12 }
 0xca9   :  { %v4833_v16 = vsub.f32 %v4821_v8, %v4831_v14 }
 0xcaa   :  { %v4836_v17 = vmul.f32 %v4834_v15, %v4834_v15 }
 0xcab   :  { %v4835_v18 = vmul.f32 %v4833_v16, %v4833_v16 }
 0xcac   :  { %v4840_v19 = vsel %vm4432_vm1, %v4836_v17, 0.0 }
 0xcad   :  { %4841 = vadd.xlane.f32.xlu1 %v4840_v19  ;;  %v4837_v6 = vsel %vm4432_vm1, %v4835_v18, 0.0 }
 0xcae   :  { %4838 = vadd.xlane.f32.xlu0 %v4837_v6 }
 0xd3a   :  { %v4842_v22 = vpop.xlane.xlu1 %4841 }
 0xd3b   :  { %v4844_v23 = vmul.f32 0.0625, %v4842_v22  ;;  %v4839_v24 = vpop.xlane.xlu0 %4838 }
 0xd3c   :  { %v4843_v25 = vmul.f32 0.0625, %v4839_v24 }
 0xd3d   :  { %v4846_v26 = vadd.f32 1e-05, %v4844_v23 }
 0xd3e   :  { %v4845_v27 = vadd.f32 1e-05, %v4843_v25 }
 0xd3f   :  { %5508 = vrsqrt.f32 %v4846_v26 }
 0xd40   :  { %5510 = vrsqrt.f32 %v4845_v27 }
 0xd49   :  { %v5509_v28 = vpop.eup %5508 }
 0xd4a   :  { %v5511_v30 = vpop.eup %5510  ;;  %v4850_v31 = vmul.f32 %v5509_v28, %v4834_v15 }
 0xd4b   :  { %v4849_v32 = vmul.f32 %v5511_v30, %v4833_v16 }
 0xd4c   :  { %v4858_v34 = vmul.f32 %v5061_v29, %v4850_v31 }
 0xd4d   :  { %v4857_v35 = vmul.f32 %v5061_v29, %v4849_v32 }
 0xd4e   :  { %v4866_v37 = vadd.f32 %v5062_v33, %v4858_v34 }
 0xd4f   :  { %v4865_v36 = vadd.f32 %v5062_v33, %v4857_v35 }
 0xd51   :  { %5145 = vmatprep.mubr.msk.f32.mxu1 %vm4432_vm1, %v4865_v36 }
 0xd52   :  { %5146 = vmatmul.mubr.msk.f32.vlgmr.msra.gmra.mrb[18].mxu1 %vm4432_vm1, %v4866_v37 }
 0xe25   :  { %v5147_v39 = vpop.f32.mrb[18].mxu1 }
 0xe26   :  { %v4954_v40 = vadd.f32 %v5147_v39, %v5063_v38  ;;  %v4948_v41 = vpop.f32.mrb[19].mxu1 }
 0xe27   :  { %v4949_v42 = vadd.f32 %v5063_v38, %v4948_v41 }
 0xe28   :  { %4959 = vst.msk [vmem:[%s6444_s16 + $0x8] sm:$0xff] %vm4957_vm2, %v4954_v40 }
 0xe29   :  { %4958 = vst.msk [vmem:[%s6444_s16] sm:$0xff] %vm4957_vm2, %v4949_v42 }
 0xe2a   :  { %4964 = vsyncpa [#allocation3], 1 }
 0xe2b   :  { %4965 = vsyncpa [#allocation5], 1 }
 0xe2c   :  { %4966 = vsyncpa [#allocation8], 1 }
 0xe2d   :  { %4967 = vsyncpa [#allocation11], 1 }
 0xe2e   :  { %4968 = vsyncpa [#allocation14], 1 }
 0xe2f   :  { %4969 = vsyncpa [#allocation17], 1 }

</bundles_post_ra>
